<compile_context>
chip_gen: v5e
topology: v5e:2x2
jax: 0.10.0
libtpu: 0.0.40
codegen_flags: <defaults>
</compile_context>

<pallas_src>
import jax
import jax.numpy as jnp
from jax.experimental import pallas as pl
from jax.experimental.pallas import tpu as pltpu


def mlp_kernel(x_ref, w1t_ref, b1_ref, w2t_ref, b2_ref, y_ref):
    # x_ref  : [tb, n_in]        (streamed batch tile, natural layout)
    # w1t_ref: [n_in, n_units]   (resident, pre-transposed in the wrapper)
    # b1_ref : [1, n_units]
    # w2t_ref: [n_units, n_out]
    # b2_ref : [1, n_out]
    # y_ref  : [tb, n_out]
    x = x_ref[...]
    h = jnp.dot(x, w1t_ref[...], preferred_element_type=jnp.float32)   # [tb, n_units]
    h = jnp.maximum(h + b1_ref[...], 0.0)                              # bias bcast over rows
    y = jnp.dot(h, w2t_ref[...], preferred_element_type=jnp.float32)   # [tb, n_out]
    y_ref[...] = (y + b2_ref[...]).astype(y_ref.dtype)


def neural_network_forward(x, w1, b1, w2, b2, *, tb=None):
    """x: [B, n_in]; w1: [n_units, n_in]; b1: [n_units]; w2: [n_out, n_units]; b2: [n_out].

    Returns [B, n_out] (same layout as the PyTorch forward, no wrapper-side transposes/pads).
    `tb` = batch rows per grid step.  If None, picked automatically: a handful of large,
    preferably even-count tiles, capped so double-buffered (lane-padded) tiles fit VMEM.
    """
    B, n_in = x.shape
    n_units = w1.shape[0]
    n_out = w2.shape[0]

    # ---- batch-tile selection: few big steps, even count when possible ----------------
    _MAX_TB = 16384  # lane-padded x+y double-buffered at 16K rows ~= 32 MiB VMEM
    if tb is None:
        if B <= 1024:
            tb = B                                # single tile == full array dims
        else:
            tb = min(_MAX_TB, pl.cdiv(B, 2))      # prefer >= 2 tiles (v7x megacore)
            tb = max(8, (tb // 8) * 8)            # sublane constraint
    if tb != B:
        assert tb % 8 == 0, "tb must be a multiple of 8 unless tb == batch size"
    grid = (pl.cdiv(B, tb),)

    # ---- VMEM budget for the enlarged tiles (lane-padded inside VMEM) -----------------
    itemsize = jnp.dtype(x.dtype).itemsize
    lane_pad = lambda n: pl.cdiv(n, 128) * 128
    tile_bytes = tb * (lane_pad(n_in) + lane_pad(n_out)) * itemsize     # one x + one y buffer
    vmem_need = 2 * tile_bytes                                          # double-buffered
    vmem_limit = int(min(max(vmem_need + (8 << 20), 32 << 20), 48 << 20))

    # Tiny one-time parameter reshapes (5x4 / 3x5 matrices -> negligible).
    w1_t = w1.T                      # [n_in, n_units]
    w2_t = w2.T                      # [n_units, n_out]
    b1_r = b1.reshape(1, n_units)
    b2_r = b2.reshape(1, n_out)

    return pl.pallas_call(
        mlp_kernel,
        out_shape=jax.ShapeDtypeStruct((B, n_out), x.dtype),
        grid=grid,
        in_specs=[
            pl.BlockSpec((tb, n_in), lambda i: (i, 0)),          # streamed batch tile
            pl.BlockSpec((n_in, n_units), lambda i: (0, 0)),     # resident weights/biases
            pl.BlockSpec((1, n_units), lambda i: (0, 0)),
            pl.BlockSpec((n_units, n_out), lambda i: (0, 0)),
            pl.BlockSpec((1, n_out), lambda i: (0, 0)),
        ],
        out_specs=pl.BlockSpec((tb, n_out), lambda i: (i, 0)),
        compiler_params=pltpu.CompilerParams(
            dimension_semantics=("parallel",),                   # megacore-shardable batch axis
            vmem_limit_bytes=vmem_limit,
        ),
    )(x, w1_t, b1_r, w2_t, b2_r)


def _reference(x, w1, b1, w2, b2):
    h = jnp.maximum(x @ w1.T + b1, 0.0)
    return h @ w2.T + b2


if __name__ == "__main__":
    # Iris-implied sizes: n_in=4 features, n_units=5 hidden, n_out=3 classes.
    n_in, n_units, n_out = 4, 5, 3

    key = jax.random.PRNGKey(0)
    kx, k1, kb1, k2, kb2, kx2 = jax.random.split(key, 6)

    # Deterministic synthetic parameters (PyTorch Linear shapes: [out, in]).
    w1 = jax.random.normal(k1, (n_units, n_in), dtype=jnp.float32) * 0.5
    b1 = jax.random.normal(kb1, (n_units,), dtype=jnp.float32) * 0.1
    w2 = jax.random.normal(k2, (n_out, n_units), dtype=jnp.float32) * 0.5
    b2 = jax.random.normal(kb2, (n_out,), dtype=jnp.float32) * 0.1

    # Multi-tile path: B=4096 -> tb=2048, grid=(2,) (even -> both v7x cores get a tile).
    x_big = jax.random.normal(kx, (4096, n_in), dtype=jnp.float32)
    y_big = jax.block_until_ready(neural_network_forward(x_big, w1, b1, w2, b2))
    y_big_ref = _reference(x_big, w1, b1, w2, b2)
    assert y_big.shape == (4096, n_out)
    assert jnp.allclose(y_big, y_big_ref, atol=1e-5, rtol=1e-5), "mismatch (multi-tile)"

    # Single-tile path: Iris-sized batch B=150 -> tb=150, grid=(1,).
    x_small = jax.random.normal(kx2, (150, n_in), dtype=jnp.float32)
    y_small = jax.block_until_ready(neural_network_forward(x_small, w1, b1, w2, b2))
    y_small_ref = _reference(x_small, w1, b1, w2, b2)
    assert y_small.shape == (150, n_out)
    assert jnp.allclose(y_small, y_small_ref, atol=1e-5, rtol=1e-5), "mismatch (single-tile)"

    print("KERNEL_OK")
</pallas_src>

<mosaic_0001>
module attributes {stable_mosaic.version = 11 : i64} {
  func.func @mlp_kernel(%arg0: i32, %arg1: memref<2048x4xf32, #tpu.memory_space<vmem>>, %arg2: memref<4x5xf32, #tpu.memory_space<vmem>>, %arg3: memref<1x5xf32, #tpu.memory_space<vmem>>, %arg4: memref<5x3xf32, #tpu.memory_space<vmem>>, %arg5: memref<1x3xf32, #tpu.memory_space<vmem>>, %arg6: memref<2048x3xf32, #tpu.memory_space<vmem>>) attributes {dimension_semantics = [#tpu.dimension_semantics<parallel>], iteration_bounds = array<i64: 2>, scalar_prefetch = 0 : i64, scratch_operands = 0 : i64, tpu.core_type = #tpu.core_type<tc>, window_params = [{transform_indices = @transform_0, window_bounds = array<i64: 2048, 4>}, {pipeline_mode = #tpu.pipeline_mode<synchronous>, transform_indices = @transform_1, window_bounds = array<i64: 4, 5>}, {pipeline_mode = #tpu.pipeline_mode<synchronous>, transform_indices = @transform_2, window_bounds = array<i64: 1, 5>}, {pipeline_mode = #tpu.pipeline_mode<synchronous>, transform_indices = @transform_3, window_bounds = array<i64: 5, 3>}, {pipeline_mode = #tpu.pipeline_mode<synchronous>, transform_indices = @transform_4, window_bounds = array<i64: 1, 3>}, {transform_indices = @transform_5, window_bounds = array<i64: 2048, 3>}]} {
    %c0 = arith.constant 0 : index
    %c0_0 = arith.constant 0 : index
    %0 = vector.load %arg1[%c0, %c0_0] : memref<2048x4xf32, #tpu.memory_space<vmem>>, vector<2048x4xf32>
    %c0_1 = arith.constant 0 : index
    %c0_2 = arith.constant 0 : index
    %1 = vector.load %arg2[%c0_1, %c0_2] : memref<4x5xf32, #tpu.memory_space<vmem>>, vector<4x5xf32>
    %cst = arith.constant dense<0.000000e+00> : vector<2048x5xf32>
    %2 = tpu.matmul %0, %1, %cst {dimension_numbers = #tpu.dot_dimension_numbers<[1], [0], [0], [1], [0, 0, 1, 1], [], []>} : vector<2048x4xf32>, vector<4x5xf32>, vector<2048x5xf32> -> vector<2048x5xf32>
    %c0_3 = arith.constant 0 : index
    %c0_4 = arith.constant 0 : index
    %3 = vector.load %arg3[%c0_3, %c0_4] : memref<1x5xf32, #tpu.memory_space<vmem>>, vector<1x5xf32>
    %4 = vector.broadcast %3 : vector<1x5xf32> to vector<2048x5xf32>
    %5 = arith.addf %2, %4 : vector<2048x5xf32>
    %cst_5 = arith.constant 0.000000e+00 : f32
    %6 = vector.broadcast %cst_5 : f32 to vector<2048x5xf32>
    %7 = arith.maximumf %5, %6 : vector<2048x5xf32>
    %c0_6 = arith.constant 0 : index
    %c0_7 = arith.constant 0 : index
    %8 = vector.load %arg4[%c0_6, %c0_7] : memref<5x3xf32, #tpu.memory_space<vmem>>, vector<5x3xf32>
    %cst_8 = arith.constant dense<0.000000e+00> : vector<2048x3xf32>
    %9 = tpu.matmul %7, %8, %cst_8 {dimension_numbers = #tpu.dot_dimension_numbers<[1], [0], [0], [1], [0, 0, 1, 1], [], []>} : vector<2048x5xf32>, vector<5x3xf32>, vector<2048x3xf32> -> vector<2048x3xf32>
    %c0_9 = arith.constant 0 : index
    %c0_10 = arith.constant 0 : index
    %10 = vector.load %arg5[%c0_9, %c0_10] : memref<1x3xf32, #tpu.memory_space<vmem>>, vector<1x3xf32>
    %11 = vector.broadcast %10 : vector<1x3xf32> to vector<2048x3xf32>
    %12 = arith.addf %9, %11 : vector<2048x3xf32>
    %c0_11 = arith.constant 0 : index
    %c0_12 = arith.constant 0 : index
    %13 = vector.load %arg6[%c0_11, %c0_12] : memref<2048x3xf32, #tpu.memory_space<vmem>>, vector<2048x3xf32>
    tpu.vector_store %arg6[%c0_11, %c0_12], %12 {strides = array<i32>} : memref<2048x3xf32, #tpu.memory_space<vmem>>, vector<2048x3xf32>,
    return
  }
  func.func @transform_0(%arg0: i32) -> (i32, i32) {
    %c0_i32 = arith.constant 0 : i32
    %c0_i32_0 = arith.constant 0 : i32
    return %arg0, %c0_i32 : i32, i32
  }
  func.func @transform_1(%arg0: i32) -> (i32, i32) {
    %c0_i32 = arith.constant 0 : i32
    %c0_i32_0 = arith.constant 0 : i32
    %c0_i32_1 = arith.constant 0 : i32
    return %c0_i32, %c0_i32_0 : i32, i32
  }
  func.func @transform_2(%arg0: i32) -> (i32, i32) {
    %c0_i32 = arith.constant 0 : i32
    %c0_i32_0 = arith.constant 0 : i32
    %c0_i32_1 = arith.constant 0 : i32
    return %c0_i32, %c0_i32_0 : i32, i32
  }
  func.func @transform_3(%arg0: i32) -> (i32, i32) {
    %c0_i32 = arith.constant 0 : i32
    %c0_i32_0 = arith.constant 0 : i32
    %c0_i32_1 = arith.constant 0 : i32
    return %c0_i32, %c0_i32_0 : i32, i32
  }
  func.func @transform_4(%arg0: i32) -> (i32, i32) {
    %c0_i32 = arith.constant 0 : i32
    %c0_i32_0 = arith.constant 0 : i32
    %c0_i32_1 = arith.constant 0 : i32
    return %c0_i32, %c0_i32_0 : i32, i32
  }
  func.func @transform_5(%arg0: i32) -> (i32, i32) {
    %c0_i32 = arith.constant 0 : i32
    %c0_i32_0 = arith.constant 0 : i32
    return %arg0, %c0_i32 : i32, i32
  }
}

</mosaic_0001>

<bundles_post_ra>
// kernel: tpu_custom_call.1
= control target key start
LH: loop header
LB: loop body
LE: loop exit
PB: predicated region body
PF: predicated region fallthrough
CT: control target
= control target key end

     0   :  { %s4761_s18 = smov 0   ;;  %s6632_s0 = inlined_call_operand.vmem [shape: f32[4096,4], index: 0, kind: input, shape index: {}]   ;;  %s6633_s1 = inlined_call_operand.vmem [shape: f32[4,5], index: 1, kind: input, shape index: {}]   ;;  %s6634_s2 = inlined_call_operand.vmem [shape: f32[1,5], index: 2, kind: input, shape index: {}]   ;;  %s6635_s3 = inlined_call_operand.vmem [shape: f32[5,3], index: 3, kind: input, shape index: {}]   ;;  %s6636_s4 = inlined_call_operand.vmem [shape: f32[1,3], index: 4, kind: input, shape index: {}]   ;;  %s6637_s5 = inlined_call_operand.vmem [shape: f32[4096,3], index: 5, kind: output, shape index: {}]  }
   0x1 LB: > { %s4179_s19 = sadd.s32 4294967295, %s4729_s18   ;;  %p4183_p0 = scmp.ge.s32.totalorder %s4729_s18, 1  ;;  %s4729_s18 = sphi %s4761_s18, %s15_s18  }
   0x2   : > { %p188_p1 = scmp.lt.s32.totalorder %s4729_s18, 3 }
   0x4   : > { %p189_p2 = pnand %p4183_p0, %p188_p1 }
   0x5   : > { %s4184_s22 = sshll.u32 (!%p189_p2), %s4179_s19, 8 }
   0x6   : > { %192 = sbr.rel (%p189_p2) target bundleno = 1302 (0x516), region = 40  ;;  %p217_p3 = scmp.lt.s32.totalorder (!%p189_p2), %s4184_s22, 511 }
   0xb   : > { %v484_v0 = vld [vmem:[%s6633_s1] sm:$0xf]  ;;  %vm1258_vm0 = vcmask 1043456   ;;  %s6639_s22 = smov (!%p217_p3, %s4184_s22), 511  ;;  %vm489_vm1 = vcmask 31744   ;;  %vm3077_vm2 = vcmask 1044480  }
   0xc   : > { %4704 = vmatpush.msk.msra.mxu2 %vm1258_vm0, %v484_v0  ;;  %4188 = vmatpush.msk.msra.mxu0 %vm1258_vm0, %v484_v0  ;;  %s4185_s23 = sshll.u32 %s6639_s22, 3  ;;  %v2303_v29 = vld [vmem:[%s6635_s3] sm:$0x1f]  ;;  %vm2308_vm3 = vcmask 39936   ;;  %vm3866_vm4 = vcmask 23552  }
   0xd   : > { %s4780_s26 = scalar_lea.vmem %s6632_s0, %s4185_s23  ;;  %4705 = vmatpush.msk.msra.mxu3 %vm3077_vm2, %v2303_v29  ;;  %4445 = vmatpush.msk.msra.mxu1 %vm3077_vm2, %v2303_v29  ;;  %v4852_v34 = vld [vmem:[%s6634_s2] ss:$0 sm:$0xff]  ;;  %s4994_s10 = scalar_lea.vmem %s6637_s5, %s4185_s23 }
   0xe   : > { %v356_v1 = vld [vmem:[%s4780_s26 + $0x400] sm:$0xff]  ;;  %v357_v3 = vld [vmem:[%s4780_s26 + $0x408] sm:$0xff]  ;;  %v358_v5 = vld [vmem:[%s4780_s26 + $0x410] sm:$0xff] }
   0xf   : > { %v228_v2 = vld [vmem:[%s4780_s26] sm:$0xff]  ;;  %4317 = vmatmul.msk.f32.vlgmr.msra.gmra.mxu2 %vm489_vm1, %v356_v1  ;;  %v229_v4 = vld [vmem:[%s4780_s26 + $0x8] sm:$0xff]  ;;  %v230_v6 = vld [vmem:[%s4780_s26 + $0x10] sm:$0xff] }
  0x10   : > { %4189 = vmatmul.msk.f32.vlgmr.msra.gmra.mxu0 %vm489_vm1, %v228_v2  ;;  %v359_v7 = vld [vmem:[%s4780_s26 + $0x418] sm:$0xff]  ;;  %v360_v9 = vld [vmem:[%s4780_s26 + $0x420] sm:$0xff]  ;;  %v361_v11 = vld [vmem:[%s4780_s26 + $0x428] sm:$0xff] }
  0x11   : > { %v231_v8 = vld [vmem:[%s4780_s26 + $0x18] sm:$0xff]  ;;  %v232_v10 = vld [vmem:[%s4780_s26 + $0x20] sm:$0xff]  ;;  %v233_v12 = vld [vmem:[%s4780_s26 + $0x28] sm:$0xff] }
  0x12   : > { %v362_v13 = vld [vmem:[%s4780_s26 + $0x430] sm:$0xff]  ;;  %v363_v15 = vld [vmem:[%s4780_s26 + $0x438] sm:$0xff]  ;;  %v364_v17 = vld [vmem:[%s4780_s26 + $0x440] sm:$0xff] }
  0x13   : > { %v234_v14 = vld [vmem:[%s4780_s26 + $0x30] sm:$0xff]  ;;  %v235_v16 = vld [vmem:[%s4780_s26 + $0x38] sm:$0xff]  ;;  %v236_v18 = vld [vmem:[%s4780_s26 + $0x40] sm:$0xff] }
  0x14   : > { %v365_v19 = vld [vmem:[%s4780_s26 + $0x448] sm:$0xff]  ;;  %v366_v21 = vld [vmem:[%s4780_s26 + $0x450] sm:$0xff]  ;;  %v367_v23 = vld [vmem:[%s4780_s26 + $0x458] sm:$0xff] }
  0x15   : > { %v237_v20 = vld [vmem:[%s4780_s26 + $0x48] sm:$0xff]  ;;  %v238_v22 = vld [vmem:[%s4780_s26 + $0x50] sm:$0xff]  ;;  %v239_v24 = vld [vmem:[%s4780_s26 + $0x58] sm:$0xff] }
  0x16   : > { %v368_v25 = vld [vmem:[%s4780_s26 + $0x460] sm:$0xff]  ;;  %v369_v27 = vld [vmem:[%s4780_s26 + $0x468] sm:$0xff]  ;;  %v370_v30 = vld [vmem:[%s4780_s26 + $0x470] sm:$0xff] }
  0x17   : > { %4318 = vmatmul.msk.f32.gmra.mxu2 %vm489_vm1, %v357_v3  ;;  %v240_v26 = vld [vmem:[%s4780_s26 + $0x60] sm:$0xff]  ;;  %v241_v28 = vld [vmem:[%s4780_s26 + $0x68] sm:$0xff]  ;;  %v242_v31 = vld [vmem:[%s4780_s26 + $0x70] sm:$0xff] }
  0x18   : > { %4190 = vmatmul.msk.f32.gmra.mxu0 %vm489_vm1, %v229_v4  ;;  %v371_v32 = vld [vmem:[%s4780_s26 + $0x478] sm:$0xff]  ;;  %v372_v35 = vld [vmem:[%s4780_s26 + $0x480] sm:$0xff]  ;;  %v373_v42 = vld [vmem:[%s4780_s26 + $0x488] sm:$0xff] }
  0x19   : > { %v243_v33 = vld [vmem:[%s4780_s26 + $0x78] sm:$0xff]  ;;  %v244_v37 = vld [vmem:[%s4780_s26 + $0x80] sm:$0xff]  ;;  %v245_v46 = vld [vmem:[%s4780_s26 + $0x88] sm:$0xff] }
  0x1a   : > { %v374_v50 = vld [vmem:[%s4780_s26 + $0x490] sm:$0xff]  ;;  %v375_v58 = vld [vmem:[%s4780_s26 + $0x498] sm:$0xff]  ;;  %v376_v2 = vld [vmem:[%s4780_s26 + $0x4a0] sm:$0xff] }
  0x1b   : > { %v246_v54 = vld [vmem:[%s4780_s26 + $0x90] sm:$0xff]  ;;  %v247_v62 = vld [vmem:[%s4780_s26 + $0x98] sm:$0xff] }
  0x1f   : > { %4319 = vmatmul.msk.f32.gmra.mxu2 %vm489_vm1, %v358_v5 }
  0x20   : > { %4191 = vmatmul.msk.f32.gmra.mxu0 %vm489_vm1, %v230_v6  ;;  %v248_v6 = vld [vmem:[%s4780_s26 + $0xa0] sm:$0xff] }
  0x27   : > { %4320 = vmatmul.msk.f32.gmra.mxu2 %vm489_vm1, %v359_v7 }
  0x28   : > { %4192 = vmatmul.msk.f32.gmra.mxu0 %vm489_vm1, %v231_v8 }
  0x2f   : > { %4321 = vmatmul.msk.f32.gmra.mxu2 %vm489_vm1, %v360_v9 }
  0x30   : > { %4193 = vmatmul.msk.f32.gmra.mxu0 %vm489_vm1, %v232_v10  ;;  %v377_v10 = vld [vmem:[%s4780_s26 + $0x4a8] sm:$0xff] }
  0x37   : > { %4322 = vmatmul.msk.f32.gmra.mxu2 %vm489_vm1, %v361_v11 }
  0x38   : > { %4194 = vmatmul.msk.f32.gmra.mxu0 %vm489_vm1, %v233_v12 }
  0x3f   : > { %4323 = vmatmul.msk.f32.gmra.mxu2 %vm489_vm1, %v362_v13 }
  0x40   : > { %4195 = vmatmul.msk.f32.gmra.mxu0 %vm489_vm1, %v234_v14  ;;  %v249_v14 = vld [vmem:[%s4780_s26 + $0xa8] sm:$0xff] }
  0x47   : > { %4324 = vmatmul.msk.f32.gmra.mxu2 %vm489_vm1, %v363_v15 }
  0x48   : > { %4196 = vmatmul.msk.f32.gmra.mxu0 %vm489_vm1, %v235_v16 }
  0x4f   : > { %4325 = vmatmul.msk.f32.gmra.mxu2 %vm489_vm1, %v364_v17 }
  0x50   : > { %4197 = vmatmul.msk.f32.gmra.mxu0 %vm489_vm1, %v236_v18  ;;  %v378_v18 = vld [vmem:[%s4780_s26 + $0x4b0] sm:$0xff] }
  0x57   : > { %4326 = vmatmul.msk.f32.gmra.mxu2 %vm489_vm1, %v365_v19 }
  0x58   : > { %4198 = vmatmul.msk.f32.gmra.mxu0 %vm489_vm1, %v237_v20 }
  0x5f   : > { %4327 = vmatmul.msk.f32.gmra.mxu2 %vm489_vm1, %v366_v21 }
  0x60   : > { %4199 = vmatmul.msk.f32.gmra.mxu0 %vm489_vm1, %v238_v22  ;;  %v250_v22 = vld [vmem:[%s4780_s26 + $0xb0] sm:$0xff] }
  0x67   : > { %4328 = vmatmul.msk.f32.gmra.mxu2 %vm489_vm1, %v367_v23 }
  0x68   : > { %4200 = vmatmul.msk.f32.gmra.mxu0 %vm489_vm1, %v239_v24 }
  0x6f   : > { %4329 = vmatmul.msk.f32.gmra.mxu2 %vm489_vm1, %v368_v25 }
  0x70   : > { %4201 = vmatmul.msk.f32.gmra.mxu0 %vm489_vm1, %v240_v26  ;;  %v379_v26 = vld [vmem:[%s4780_s26 + $0x4b8] sm:$0xff] }
  0x77   : > { %4330 = vmatmul.msk.f32.gmra.mxu2 %vm489_vm1, %v369_v27 }
  0x78   : > { %4202 = vmatmul.msk.f32.gmra.mxu0 %vm489_vm1, %v241_v28 }
  0x7f   : > { %4331 = vmatmul.msk.f32.gmra.mxu2 %vm489_vm1, %v370_v30  ;;  %v251_v30 = vld [vmem:[%s4780_s26 + $0xb8] sm:$0xff] }
  0x80   : > { %4203 = vmatmul.msk.f32.gmra.mxu0 %vm489_vm1, %v242_v31 }
  0x87   : > { %4332 = vmatmul.msk.f32.gmra.mxu2 %vm489_vm1, %v371_v32 }
  0x88   : > { %4204 = vmatmul.msk.f32.gmra.mxu0 %vm489_vm1, %v243_v33 }
  0x8d   : > { %v1279_v36 = vpop.f32.mrf.mxu0 }
  0x8e   : > { %v1280_v38 = vadd.f32 %v4852_v34, %v1279_v36 }
  0x8f   : > { %4333 = vmatmul.msk.f32.gmra.mxu2 %vm489_vm1, %v372_v35  ;;  %v380_v35 = vld [vmem:[%s4780_s26 + $0x4c0] sm:$0xff] }
  0x90   : > { %v2047_v39 = vmax.f32 %v1280_v38, 0.0  ;;  %4205 = vmatmul.msk.f32.gmra.mxu0 %vm489_vm1, %v244_v37 }
  0x92   : > { %4446 = vmatmul.msk.f32.vlgmr.msra.gmra.mxu1 %vm2308_vm3, %v2047_v39  ;;  %v1663_v40 = vpop.f32.mrf.mxu2  ;;  %v252_v39 = vld [vmem:[%s4780_s26 + $0xc0] sm:$0xff] }
  0x93   : > { %v1664_v41 = vadd.f32 %v4852_v34, %v1663_v40 }
  0x95   : > { %v1282_v43 = vpop.f32.mrf.mxu0  ;;  %v2175_v44 = vmax.f32 %v1664_v41, 0.0 }
  0x96   : > { %v1283_v45 = vadd.f32 %v4852_v34, %v1282_v43  ;;  %v381_v43 = vld [vmem:[%s4780_s26 + $0x4c8] sm:$0xff] }
  0x97   : > { %4334 = vmatmul.msk.f32.gmra.mxu2 %vm489_vm1, %v373_v42  ;;  %4574 = vmatmul.msk.f32.vlgmr.msra.gmra.mxu3 %vm2308_vm3, %v2175_v44 }
  0x98   : > { %v2048_v47 = vmax.f32 %v1283_v45, 0.0  ;;  %4206 = vmatmul.msk.f32.gmra.mxu0 %vm489_vm1, %v245_v46 }
  0x9a   : > { %4447 = vmatmul.msk.f32.gmra.mxu1 %vm2308_vm3, %v2048_v47  ;;  %v1666_v48 = vpop.f32.mrf.mxu2  ;;  %v253_v47 = vld [vmem:[%s4780_s26 + $0xc8] sm:$0xff] }
  0x9b   : > { %v1667_v49 = vadd.f32 %v4852_v34, %v1666_v48 }
  0x9d   : > { %v1285_v51 = vpop.f32.mrf.mxu0  ;;  %v2176_v52 = vmax.f32 %v1667_v49, 0.0 }
  0x9e   : > { %v1286_v53 = vadd.f32 %v4852_v34, %v1285_v51  ;;  %v382_v51 = vld [vmem:[%s4780_s26 + $0x4d0] sm:$0xff] }
  0x9f   : > { %4335 = vmatmul.msk.f32.gmra.mxu2 %vm489_vm1, %v374_v50  ;;  %4575 = vmatmul.msk.f32.gmra.mxu3 %vm2308_vm3, %v2176_v52 }
  0xa0   : > { %v2049_v55 = vmax.f32 %v1286_v53, 0.0  ;;  %4207 = vmatmul.msk.f32.gmra.mxu0 %vm489_vm1, %v246_v54 }
  0xa2   : > { %4448 = vmatmul.msk.f32.gmra.mxu1 %vm2308_vm3, %v2049_v55  ;;  %v1669_v56 = vpop.f32.mrf.mxu2  ;;  %v254_v55 = vld [vmem:[%s4780_s26 + $0xd0] sm:$0xff] }
  0xa3   : > { %v1670_v57 = vadd.f32 %v4852_v34, %v1669_v56 }
  0xa5   : > { %v1288_v59 = vpop.f32.mrf.mxu0  ;;  %v2177_v60 = vmax.f32 %v1670_v57, 0.0 }
  0xa6   : > { %v1289_v61 = vadd.f32 %v4852_v34, %v1288_v59  ;;  %v383_v59 = vld [vmem:[%s4780_s26 + $0x4d8] sm:$0xff] }
  0xa7   : > { %4336 = vmatmul.msk.f32.gmra.mxu2 %vm489_vm1, %v375_v58  ;;  %4576 = vmatmul.msk.f32.gmra.mxu3 %vm2308_vm3, %v2177_v60 }
  0xa8   : > { %v2050_v63 = vmax.f32 %v1289_v61, 0.0  ;;  %4208 = vmatmul.msk.f32.gmra.mxu0 %vm489_vm1, %v247_v62 }
  0xaa   : > { %4449 = vmatmul.msk.f32.gmra.mxu1 %vm2308_vm3, %v2050_v63  ;;  %v1672_v0 = vpop.f32.mrf.mxu2  ;;  %v255_v63 = vld [vmem:[%s4780_s26 + $0xd8] sm:$0xff] }
  0xab   : > { %v1673_v1 = vadd.f32 %v4852_v34, %v1672_v0 }
  0xad   : > { %v1291_v3 = vpop.f32.mrf.mxu0  ;;  %v2178_v4 = vmax.f32 %v1673_v1, 0.0 }
  0xae   : > { %v1292_v5 = vadd.f32 %v4852_v34, %v1291_v3  ;;  %v384_v3 = vld [vmem:[%s4780_s26 + $0x4e0] sm:$0xff] }
  0xaf   : > { %4337 = vmatmul.msk.f32.gmra.mxu2 %vm489_vm1, %v376_v2  ;;  %4577 = vmatmul.msk.f32.gmra.mxu3 %vm2308_vm3, %v2178_v4 }
  0xb0   : > { %v2051_v7 = vmax.f32 %v1292_v5, 0.0  ;;  %4209 = vmatmul.msk.f32.gmra.mxu0 %vm489_vm1, %v248_v6 }
  0xb2   : > { %4450 = vmatmul.msk.f32.gmra.mxu1 %vm2308_vm3, %v2051_v7  ;;  %v1675_v8 = vpop.f32.mrf.mxu2  ;;  %v256_v7 = vld [vmem:[%s4780_s26 + $0xe0] sm:$0xff] }
  0xb3   : > { %v1676_v9 = vadd.f32 %v4852_v34, %v1675_v8 }
  0xb5   : > { %v1294_v11 = vpop.f32.mrf.mxu0  ;;  %v2179_v12 = vmax.f32 %v1676_v9, 0.0 }
  0xb6   : > { %v1295_v13 = vadd.f32 %v4852_v34, %v1294_v11  ;;  %v385_v11 = vld [vmem:[%s4780_s26 + $0x4e8] sm:$0xff] }
  0xb7   : > { %4338 = vmatmul.msk.f32.gmra.mxu2 %vm489_vm1, %v377_v10  ;;  %4578 = vmatmul.msk.f32.gmra.mxu3 %vm2308_vm3, %v2179_v12 }
  0xb8   : > { %v2052_v15 = vmax.f32 %v1295_v13, 0.0  ;;  %4210 = vmatmul.msk.f32.gmra.mxu0 %vm489_vm1, %v249_v14 }
  0xba   : > { %4451 = vmatmul.msk.f32.gmra.mxu1 %vm2308_vm3, %v2052_v15  ;;  %v1678_v16 = vpop.f32.mrf.mxu2  ;;  %v257_v15 = vld [vmem:[%s4780_s26 + $0xe8] sm:$0xff] }
  0xbb   : > { %v1679_v17 = vadd.f32 %v4852_v34, %v1678_v16 }
  0xbd   : > { %v1297_v19 = vpop.f32.mrf.mxu0  ;;  %v2180_v20 = vmax.f32 %v1679_v17, 0.0 }
  0xbe   : > { %v1298_v21 = vadd.f32 %v4852_v34, %v1297_v19  ;;  %v386_v19 = vld [vmem:[%s4780_s26 + $0x4f0] sm:$0xff] }
  0xbf   : > { %4339 = vmatmul.msk.f32.gmra.mxu2 %vm489_vm1, %v378_v18  ;;  %4579 = vmatmul.msk.f32.gmra.mxu3 %vm2308_vm3, %v2180_v20 }
  0xc0   : > { %v2053_v23 = vmax.f32 %v1298_v21, 0.0  ;;  %4211 = vmatmul.msk.f32.gmra.mxu0 %vm489_vm1, %v250_v22 }
  0xc2   : > { %4452 = vmatmul.msk.f32.gmra.mxu1 %vm2308_vm3, %v2053_v23  ;;  %v1681_v24 = vpop.f32.mrf.mxu2  ;;  %v258_v23 = vld [vmem:[%s4780_s26 + $0xf0] sm:$0xff] }
  0xc3   : > { %v1682_v25 = vadd.f32 %v4852_v34, %v1681_v24 }
  0xc5   : > { %v1300_v27 = vpop.f32.mrf.mxu0  ;;  %v2181_v28 = vmax.f32 %v1682_v25, 0.0 }
  0xc6   : > { %v1301_v29 = vadd.f32 %v4852_v34, %v1300_v27  ;;  %v387_v27 = vld [vmem:[%s4780_s26 + $0x4f8] sm:$0xff] }
  0xc7   : > { %4340 = vmatmul.msk.f32.gmra.mxu2 %vm489_vm1, %v379_v26  ;;  %4580 = vmatmul.msk.f32.gmra.mxu3 %vm2308_vm3, %v2181_v28 }
  0xc8   : > { %v2054_v31 = vmax.f32 %v1301_v29, 0.0  ;;  %4212 = vmatmul.msk.f32.gmra.mxu0 %vm489_vm1, %v251_v30 }
  0xca   : > { %4453 = vmatmul.msk.f32.gmra.mxu1 %vm2308_vm3, %v2054_v31  ;;  %v1684_v32 = vpop.f32.mrf.mxu2  ;;  %v259_v31 = vld [vmem:[%s4780_s26 + $0xf8] sm:$0xff] }
  0xcb   : > { %v1685_v33 = vadd.f32 %v4852_v34, %v1684_v32 }
  0xcd   : > { %v1303_v36 = vpop.f32.mrf.mxu0  ;;  %v2182_v37 = vmax.f32 %v1685_v33, 0.0 }
  0xce   : > { %v1304_v38 = vadd.f32 %v4852_v34, %v1303_v36  ;;  %v4984_v36 = vld [vmem:[%s6636_s4] ss:$0 sm:$0xff] }
  0xcf   : > { %4341 = vmatmul.msk.f32.gmra.mxu2 %vm489_vm1, %v380_v35  ;;  %4581 = vmatmul.msk.f32.gmra.mxu3 %vm2308_vm3, %v2182_v37  ;;  %v388_v37 = vld [vmem:[%s4780_s26 + $0x500] sm:$0xff] }
  0xd0   : > { %v2055_v40 = vmax.f32 %v1304_v38, 0.0  ;;  %4213 = vmatmul.msk.f32.gmra.mxu0 %vm489_vm1, %v252_v39 }
  0xd2   : > { %4454 = vmatmul.msk.f32.gmra.mxu1 %vm2308_vm3, %v2055_v40  ;;  %v1687_v41 = vpop.f32.mrf.mxu2 }
  0xd3   : > { %v1688_v42 = vadd.f32 %v4852_v34, %v1687_v41  ;;  %v260_v41 = vld [vmem:[%s4780_s26 + $0x100] sm:$0xff] }
  0xd5   : > { %v1306_v44 = vpop.f32.mrf.mxu0  ;;  %v2183_v45 = vmax.f32 %v1688_v42, 0.0 }
  0xd6   : > { %v1307_v46 = vadd.f32 %v4852_v34, %v1306_v44 }
  0xd7   : > { %4342 = vmatmul.msk.f32.gmra.mxu2 %vm489_vm1, %v381_v43  ;;  %4582 = vmatmul.msk.f32.gmra.mxu3 %vm2308_vm3, %v2183_v45 }
  0xd8   : > { %v2056_v48 = vmax.f32 %v1307_v46, 0.0  ;;  %4214 = vmatmul.msk.f32.gmra.mxu0 %vm489_vm1, %v253_v47  ;;  %v389_v47 = vld [vmem:[%s4780_s26 + $0x508] sm:$0xff] }
  0xda   : > { %4455 = vmatmul.msk.f32.gmra.mxu1 %vm2308_vm3, %v2056_v48  ;;  %v1690_v49 = vpop.f32.mrf.mxu2 }
  0xdb   : > { %v1691_v50 = vadd.f32 %v4852_v34, %v1690_v49 }
  0xdd   : > { %v1309_v52 = vpop.f32.mrf.mxu0  ;;  %v2184_v53 = vmax.f32 %v1691_v50, 0.0  ;;  %v261_v50 = vld [vmem:[%s4780_s26 + $0x108] sm:$0xff] }
  0xde   : > { %v1310_v54 = vadd.f32 %v4852_v34, %v1309_v52 }
  0xdf   : > { %4343 = vmatmul.msk.f32.gmra.mxu2 %vm489_vm1, %v382_v51  ;;  %4583 = vmatmul.msk.f32.gmra.mxu3 %vm2308_vm3, %v2184_v53 }
  0xe0   : > { %v2057_v56 = vmax.f32 %v1310_v54, 0.0  ;;  %4215 = vmatmul.msk.f32.gmra.mxu0 %vm489_vm1, %v254_v55 }
  0xe2   : > { %4456 = vmatmul.msk.f32.gmra.mxu1 %vm2308_vm3, %v2057_v56  ;;  %v1693_v57 = vpop.f32.mrf.mxu2 }
  0xe3   : > { %v1694_v58 = vadd.f32 %v4852_v34, %v1693_v57 }
  0xe5   : > { %v1312_v60 = vpop.f32.mrf.mxu0  ;;  %v2185_v61 = vmax.f32 %v1694_v58, 0.0 }
  0xe6   : > { %v1313_v62 = vadd.f32 %v4852_v34, %v1312_v60 }
  0xe7   : > { %4344 = vmatmul.msk.f32.gmra.mxu2 %vm489_vm1, %v383_v59  ;;  %4584 = vmatmul.msk.f32.gmra.mxu3 %vm2308_vm3, %v2185_v61  ;;  %v390_v59 = vld [vmem:[%s4780_s26 + $0x510] sm:$0xff] }
  0xe8   : > { %v2058_v0 = vmax.f32 %v1313_v62, 0.0  ;;  %4216 = vmatmul.msk.f32.gmra.mxu0 %vm489_vm1, %v255_v63  ;;  %v262_v62 = vld [vmem:[%s4780_s26 + $0x110] sm:$0xff] }
  0xea   : > { %4457 = vmatmul.msk.f32.gmra.mxu1 %vm2308_vm3, %v2058_v0  ;;  %v1696_v1 = vpop.f32.mrf.mxu2 }
  0xeb   : > { %v1697_v2 = vadd.f32 %v4852_v34, %v1696_v1 }
  0xed   : > { %v1315_v4 = vpop.f32.mrf.mxu0  ;;  %v2186_v5 = vmax.f32 %v1697_v2, 0.0 }
  0xee   : > { %v1316_v6 = vadd.f32 %v4852_v34, %v1315_v4 }
  0xef   : > { %4345 = vmatmul.msk.f32.gmra.mxu2 %vm489_vm1, %v384_v3  ;;  %4585 = vmatmul.msk.f32.gmra.mxu3 %vm2308_vm3, %v2186_v5 }
  0xf0   : > { %v2059_v8 = vmax.f32 %v1316_v6, 0.0  ;;  %4217 = vmatmul.msk.f32.gmra.mxu0 %vm489_vm1, %v256_v7  ;;  %v391_v7 = vld [vmem:[%s4780_s26 + $0x518] sm:$0xff] }
  0xf2   : > { %4458 = vmatmul.msk.f32.gmra.mxu1 %vm2308_vm3, %v2059_v8  ;;  %v1699_v9 = vpop.f32.mrf.mxu2 }
  0xf3   : > { %v1700_v10 = vadd.f32 %v4852_v34, %v1699_v9 }
  0xf5   : > { %v1318_v12 = vpop.f32.mrf.mxu0  ;;  %v2187_v13 = vmax.f32 %v1700_v10, 0.0  ;;  %v263_v10 = vld [vmem:[%s4780_s26 + $0x118] sm:$0xff] }
  0xf6   : > { %v1319_v14 = vadd.f32 %v4852_v34, %v1318_v12 }
  0xf7   : > { %4346 = vmatmul.msk.f32.gmra.mxu2 %vm489_vm1, %v385_v11  ;;  %4586 = vmatmul.msk.f32.gmra.mxu3 %vm2308_vm3, %v2187_v13 }
  0xf8   : > { %v2060_v16 = vmax.f32 %v1319_v14, 0.0  ;;  %4218 = vmatmul.msk.f32.gmra.mxu0 %vm489_vm1, %v257_v15 }
  0xfa   : > { %4459 = vmatmul.msk.f32.gmra.mxu1 %vm2308_vm3, %v2060_v16  ;;  %v1702_v17 = vpop.f32.mrf.mxu2 }
  0xfb   : > { %v1703_v18 = vadd.f32 %v4852_v34, %v1702_v17 }
  0xfd   : > { %v1321_v20 = vpop.f32.mrf.mxu0  ;;  %v2188_v21 = vmax.f32 %v1703_v18, 0.0 }
  0xfe   : > { %v1322_v22 = vadd.f32 %v4852_v34, %v1321_v20 }
  0xff   : > { %4347 = vmatmul.msk.f32.gmra.mxu2 %vm489_vm1, %v386_v19  ;;  %4587 = vmatmul.msk.f32.gmra.mxu3 %vm2308_vm3, %v2188_v21  ;;  %v392_v19 = vld [vmem:[%s4780_s26 + $0x520] sm:$0xff] }
 0x100   : > { %v2061_v24 = vmax.f32 %v1322_v22, 0.0  ;;  %4219 = vmatmul.msk.f32.gmra.mxu0 %vm489_vm1, %v258_v23  ;;  %v264_v22 = vld [vmem:[%s4780_s26 + $0x120] sm:$0xff] }
 0x102   : > { %4460 = vmatmul.msk.f32.gmra.mxu1 %vm2308_vm3, %v2061_v24  ;;  %v1705_v25 = vpop.f32.mrf.mxu2 }
 0x103   : > { %v1706_v26 = vadd.f32 %v4852_v34, %v1705_v25 }
 0x105   : > { %v1324_v28 = vpop.f32.mrf.mxu0  ;;  %v2189_v29 = vmax.f32 %v1706_v26, 0.0 }
 0x106   : > { %v1325_v30 = vadd.f32 %v4852_v34, %v1324_v28 }
 0x107   : > { %4348 = vmatmul.msk.f32.gmra.mxu2 %vm489_vm1, %v387_v27  ;;  %4588 = vmatmul.msk.f32.gmra.mxu3 %vm2308_vm3, %v2189_v29 }
 0x108   : > { %v2062_v32 = vmax.f32 %v1325_v30, 0.0  ;;  %4220 = vmatmul.msk.f32.gmra.mxu0 %vm489_vm1, %v259_v31  ;;  %v393_v31 = vld [vmem:[%s4780_s26 + $0x528] sm:$0xff] }
 0x10a   : > { %4461 = vmatmul.msk.f32.gmra.mxu1 %vm2308_vm3, %v2062_v32  ;;  %v1708_v33 = vpop.f32.mrf.mxu2 }
 0x10b   : > { %v1709_v35 = vadd.f32 %v4852_v34, %v1708_v33 }
 0x10d   : > { %v1327_v38 = vpop.f32.mrf.mxu0  ;;  %v2190_v39 = vmax.f32 %v1709_v35, 0.0  ;;  %v265_v35 = vld [vmem:[%s4780_s26 + $0x128] sm:$0xff] }
 0x10e   : > { %v1328_v40 = vadd.f32 %v4852_v34, %v1327_v38 }
 0x10f   : > { %v3098_v42 = vpop.f32.mrf.mxu1  ;;  %4349 = vmatmul.msk.f32.gmra.mxu2 %vm489_vm1, %v388_v37  ;;  %4589 = vmatmul.msk.f32.gmra.mxu3 %vm2308_vm3, %v2190_v39 }
 0x110   : > { %v2063_v43 = vmax.f32 %v1328_v40, 0.0  ;;  %v3099_v44 = vadd.f32 %v4984_v36, %v3098_v42  ;;  %4221 = vmatmul.msk.f32.gmra.mxu0 %vm489_vm1, %v260_v41 }
 0x112   : > { %3867 = vst.msk [vmem:[%s4994_s10] sm:$0xff] %vm3866_vm4, %v3099_v44  ;;  %4462 = vmatmul.msk.f32.gmra.mxu1 %vm2308_vm3, %v2063_v43  ;;  %v1711_v45 = vpop.f32.mrf.mxu2 }
 0x113   : > { %v1712_v46 = vadd.f32 %v4852_v34, %v1711_v45  ;;  %v394_v45 = vld [vmem:[%s4780_s26 + $0x530] sm:$0xff] }
 0x115   : > { %v2191_v48 = vmax.f32 %v1712_v46, 0.0  ;;  %v1330_v49 = vpop.f32.mrf.mxu0 }
 0x116   : > { %v1331_v51 = vadd.f32 %v4852_v34, %v1330_v49 }
 0x117   : > { %v3101_v52 = vpop.f32.mrf.mxu1  ;;  %4350 = vmatmul.msk.f32.gmra.mxu2 %vm489_vm1, %v389_v47  ;;  %4590 = vmatmul.msk.f32.gmra.mxu3 %vm2308_vm3, %v2191_v48  ;;  %v266_v48 = vld [vmem:[%s4780_s26 + $0x130] sm:$0xff] }
 0x118   : > { %v3102_v53 = vadd.f32 %v4984_v36, %v3101_v52  ;;  %v2064_v54 = vmax.f32 %v1331_v51, 0.0  ;;  %4222 = vmatmul.msk.f32.gmra.mxu0 %vm489_vm1, %v261_v50 }
 0x11a   : > { %3868 = vst.msk [vmem:[%s4994_s10 + $0x8] sm:$0xff] %vm3866_vm4, %v3102_v53  ;;  %v1714_v55 = vpop.f32.mrf.mxu2  ;;  %v3482_v56 = vpop.f32.mrf.mxu3  ;;  %4463 = vmatmul.msk.f32.gmra.mxu1 %vm2308_vm3, %v2064_v54 }
 0x11b   : > { %v1715_v57 = vadd.f32 %v4852_v34, %v1714_v55  ;;  %v3483_v58 = vadd.f32 %v4984_v36, %v3482_v56 }
 0x11d   : > { %v2192_v60 = vmax.f32 %v1715_v57, 0.0  ;;  %3995 = vst.msk [vmem:[%s4994_s10 + $0x400] sm:$0xff] %vm3866_vm4, %v3483_v58  ;;  %v1333_v61 = vpop.f32.mrf.mxu0  ;;  %v395_v57 = vld [vmem:[%s4780_s26 + $0x538] sm:$0xff] }
 0x11e   : > { %v1334_v63 = vadd.f32 %v4852_v34, %v1333_v61 }
 0x11f   : > { %v3104_v0 = vpop.f32.mrf.mxu1  ;;  %4351 = vmatmul.msk.f32.gmra.mxu2 %vm489_vm1, %v390_v59  ;;  %4591 = vmatmul.msk.f32.gmra.mxu3 %vm2308_vm3, %v2192_v60  ;;  %v267_v60 = vld [vmem:[%s4780_s26 + $0x138] sm:$0xff] }
 0x120   : > { %v3105_v1 = vadd.f32 %v4984_v36, %v3104_v0  ;;  %v2065_v2 = vmax.f32 %v1334_v63, 0.0  ;;  %4223 = vmatmul.msk.f32.gmra.mxu0 %vm489_vm1, %v262_v62 }
 0x122   : > { %3869 = vst.msk [vmem:[%s4994_s10 + $0x10] sm:$0xff] %vm3866_vm4, %v3105_v1  ;;  %v1717_v3 = vpop.f32.mrf.mxu2  ;;  %v3485_v4 = vpop.f32.mrf.mxu3  ;;  %4464 = vmatmul.msk.f32.gmra.mxu1 %vm2308_vm3, %v2065_v2 }
 0x123   : > { %v1718_v5 = vadd.f32 %v4852_v34, %v1717_v3  ;;  %v3486_v6 = vadd.f32 %v4984_v36, %v3485_v4 }
 0x125   : > { %v2193_v8 = vmax.f32 %v1718_v5, 0.0  ;;  %3996 = vst.msk [vmem:[%s4994_s10 + $0x408] sm:$0xff] %vm3866_vm4, %v3486_v6  ;;  %v1336_v9 = vpop.f32.mrf.mxu0  ;;  %v396_v5 = vld [vmem:[%s4780_s26 + $0x540] sm:$0xff] }
 0x126   : > { %v1337_v11 = vadd.f32 %v4852_v34, %v1336_v9 }
 0x127   : > { %v3107_v12 = vpop.f32.mrf.mxu1  ;;  %4352 = vmatmul.msk.f32.gmra.mxu2 %vm489_vm1, %v391_v7  ;;  %4592 = vmatmul.msk.f32.gmra.mxu3 %vm2308_vm3, %v2193_v8  ;;  %v268_v8 = vld [vmem:[%s4780_s26 + $0x140] sm:$0xff] }
 0x128   : > { %v3108_v13 = vadd.f32 %v4984_v36, %v3107_v12  ;;  %v2066_v14 = vmax.f32 %v1337_v11, 0.0  ;;  %4224 = vmatmul.msk.f32.gmra.mxu0 %vm489_vm1, %v263_v10 }
 0x12a   : > { %3870 = vst.msk [vmem:[%s4994_s10 + $0x18] sm:$0xff] %vm3866_vm4, %v3108_v13  ;;  %v1720_v15 = vpop.f32.mrf.mxu2  ;;  %v3488_v16 = vpop.f32.mrf.mxu3  ;;  %4465 = vmatmul.msk.f32.gmra.mxu1 %vm2308_vm3, %v2066_v14 }
 0x12b   : > { %v1721_v17 = vadd.f32 %v4852_v34, %v1720_v15  ;;  %v3489_v18 = vadd.f32 %v4984_v36, %v3488_v16 }
 0x12d   : > { %v2194_v20 = vmax.f32 %v1721_v17, 0.0  ;;  %3997 = vst.msk [vmem:[%s4994_s10 + $0x410] sm:$0xff] %vm3866_vm4, %v3489_v18  ;;  %v1339_v21 = vpop.f32.mrf.mxu0  ;;  %v397_v17 = vld [vmem:[%s4780_s26 + $0x548] sm:$0xff] }
 0x12e   : > { %v1340_v23 = vadd.f32 %v4852_v34, %v1339_v21 }
 0x12f   : > { %v3110_v24 = vpop.f32.mrf.mxu1  ;;  %4353 = vmatmul.msk.f32.gmra.mxu2 %vm489_vm1, %v392_v19  ;;  %4593 = vmatmul.msk.f32.gmra.mxu3 %vm2308_vm3, %v2194_v20  ;;  %v269_v20 = vld [vmem:[%s4780_s26 + $0x148] sm:$0xff] }
 0x130   : > { %v3111_v25 = vadd.f32 %v4984_v36, %v3110_v24  ;;  %v2067_v26 = vmax.f32 %v1340_v23, 0.0  ;;  %4225 = vmatmul.msk.f32.gmra.mxu0 %vm489_vm1, %v264_v22 }
 0x132   : > { %3871 = vst.msk [vmem:[%s4994_s10 + $0x20] sm:$0xff] %vm3866_vm4, %v3111_v25  ;;  %v1723_v27 = vpop.f32.mrf.mxu2  ;;  %v3491_v28 = vpop.f32.mrf.mxu3  ;;  %4466 = vmatmul.msk.f32.gmra.mxu1 %vm2308_vm3, %v2067_v26 }
 0x133   : > { %v1724_v29 = vadd.f32 %v4852_v34, %v1723_v27  ;;  %v3492_v30 = vadd.f32 %v4984_v36, %v3491_v28 }
 0x135   : > { %v2195_v32 = vmax.f32 %v1724_v29, 0.0  ;;  %3998 = vst.msk [vmem:[%s4994_s10 + $0x418] sm:$0xff] %vm3866_vm4, %v3492_v30  ;;  %v1342_v33 = vpop.f32.mrf.mxu0  ;;  %v398_v29 = vld [vmem:[%s4780_s26 + $0x550] sm:$0xff] }
 0x136   : > { %v1343_v37 = vadd.f32 %v4852_v34, %v1342_v33 }
 0x137   : > { %v3113_v38 = vpop.f32.mrf.mxu1  ;;  %4354 = vmatmul.msk.f32.gmra.mxu2 %vm489_vm1, %v393_v31  ;;  %4594 = vmatmul.msk.f32.gmra.mxu3 %vm2308_vm3, %v2195_v32  ;;  %v270_v32 = vld [vmem:[%s4780_s26 + $0x150] sm:$0xff] }
 0x138   : > { %v3114_v39 = vadd.f32 %v4984_v36, %v3113_v38  ;;  %v2068_v40 = vmax.f32 %v1343_v37, 0.0  ;;  %4226 = vmatmul.msk.f32.gmra.mxu0 %vm489_vm1, %v265_v35 }
 0x13a   : > { %3872 = vst.msk [vmem:[%s4994_s10 + $0x28] sm:$0xff] %vm3866_vm4, %v3114_v39  ;;  %v1726_v41 = vpop.f32.mrf.mxu2  ;;  %v3494_v42 = vpop.f32.mrf.mxu3  ;;  %4467 = vmatmul.msk.f32.gmra.mxu1 %vm2308_vm3, %v2068_v40 }
 0x13b   : > { %v1727_v43 = vadd.f32 %v4852_v34, %v1726_v41  ;;  %v3495_v44 = vadd.f32 %v4984_v36, %v3494_v42 }
 0x13d   : > { %v2196_v46 = vmax.f32 %v1727_v43, 0.0  ;;  %3999 = vst.msk [vmem:[%s4994_s10 + $0x420] sm:$0xff] %vm3866_vm4, %v3495_v44  ;;  %v1345_v47 = vpop.f32.mrf.mxu0  ;;  %v399_v43 = vld [vmem:[%s4780_s26 + $0x558] sm:$0xff] }
 0x13e   : > { %v1346_v49 = vadd.f32 %v4852_v34, %v1345_v47 }
 0x13f   : > { %v3116_v50 = vpop.f32.mrf.mxu1  ;;  %4355 = vmatmul.msk.f32.gmra.mxu2 %vm489_vm1, %v394_v45  ;;  %4595 = vmatmul.msk.f32.gmra.mxu3 %vm2308_vm3, %v2196_v46  ;;  %v271_v46 = vld [vmem:[%s4780_s26 + $0x158] sm:$0xff] }
 0x140   : > { %v3117_v51 = vadd.f32 %v4984_v36, %v3116_v50  ;;  %v2069_v52 = vmax.f32 %v1346_v49, 0.0  ;;  %4227 = vmatmul.msk.f32.gmra.mxu0 %vm489_vm1, %v266_v48 }
 0x142   : > { %3873 = vst.msk [vmem:[%s4994_s10 + $0x30] sm:$0xff] %vm3866_vm4, %v3117_v51  ;;  %v1729_v53 = vpop.f32.mrf.mxu2  ;;  %v3497_v54 = vpop.f32.mrf.mxu3  ;;  %4468 = vmatmul.msk.f32.gmra.mxu1 %vm2308_vm3, %v2069_v52 }
 0x143   : > { %v1730_v55 = vadd.f32 %v4852_v34, %v1729_v53  ;;  %v3498_v56 = vadd.f32 %v4984_v36, %v3497_v54 }
 0x145   : > { %v2197_v58 = vmax.f32 %v1730_v55, 0.0  ;;  %4000 = vst.msk [vmem:[%s4994_s10 + $0x428] sm:$0xff] %vm3866_vm4, %v3498_v56  ;;  %v1348_v59 = vpop.f32.mrf.mxu0  ;;  %v400_v55 = vld [vmem:[%s4780_s26 + $0x560] sm:$0xff] }
 0x146   : > { %v1349_v61 = vadd.f32 %v4852_v34, %v1348_v59 }
 0x147   : > { %v3119_v62 = vpop.f32.mrf.mxu1  ;;  %4356 = vmatmul.msk.f32.gmra.mxu2 %vm489_vm1, %v395_v57  ;;  %4596 = vmatmul.msk.f32.gmra.mxu3 %vm2308_vm3, %v2197_v58  ;;  %v272_v58 = vld [vmem:[%s4780_s26 + $0x160] sm:$0xff] }
 0x148   : > { %v3120_v63 = vadd.f32 %v4984_v36, %v3119_v62  ;;  %v2070_v0 = vmax.f32 %v1349_v61, 0.0  ;;  %4228 = vmatmul.msk.f32.gmra.mxu0 %vm489_vm1, %v267_v60 }
 0x14a   : > { %3874 = vst.msk [vmem:[%s4994_s10 + $0x38] sm:$0xff] %vm3866_vm4, %v3120_v63  ;;  %v1732_v1 = vpop.f32.mrf.mxu2  ;;  %v3500_v2 = vpop.f32.mrf.mxu3  ;;  %4469 = vmatmul.msk.f32.gmra.mxu1 %vm2308_vm3, %v2070_v0 }
 0x14b   : > { %v1733_v3 = vadd.f32 %v4852_v34, %v1732_v1  ;;  %v3501_v4 = vadd.f32 %v4984_v36, %v3500_v2 }
 0x14d   : > { %v2198_v6 = vmax.f32 %v1733_v3, 0.0  ;;  %4001 = vst.msk [vmem:[%s4994_s10 + $0x430] sm:$0xff] %vm3866_vm4, %v3501_v4  ;;  %v1351_v7 = vpop.f32.mrf.mxu0  ;;  %v401_v3 = vld [vmem:[%s4780_s26 + $0x568] sm:$0xff] }
 0x14e   : > { %v1352_v9 = vadd.f32 %v4852_v34, %v1351_v7 }
 0x14f   : > { %v3122_v10 = vpop.f32.mrf.mxu1  ;;  %4357 = vmatmul.msk.f32.gmra.mxu2 %vm489_vm1, %v396_v5  ;;  %4597 = vmatmul.msk.f32.gmra.mxu3 %vm2308_vm3, %v2198_v6  ;;  %v273_v6 = vld [vmem:[%s4780_s26 + $0x168] sm:$0xff] }
 0x150   : > { %v3123_v11 = vadd.f32 %v4984_v36, %v3122_v10  ;;  %v2071_v12 = vmax.f32 %v1352_v9, 0.0  ;;  %4229 = vmatmul.msk.f32.gmra.mxu0 %vm489_vm1, %v268_v8 }
 0x152   : > { %3875 = vst.msk [vmem:[%s4994_s10 + $0x40] sm:$0xff] %vm3866_vm4, %v3123_v11  ;;  %v1735_v13 = vpop.f32.mrf.mxu2  ;;  %v3503_v14 = vpop.f32.mrf.mxu3  ;;  %4470 = vmatmul.msk.f32.gmra.mxu1 %vm2308_vm3, %v2071_v12 }
 0x153   : > { %v1736_v15 = vadd.f32 %v4852_v34, %v1735_v13  ;;  %v3504_v16 = vadd.f32 %v4984_v36, %v3503_v14 }
 0x155   : > { %v2199_v18 = vmax.f32 %v1736_v15, 0.0  ;;  %4002 = vst.msk [vmem:[%s4994_s10 + $0x438] sm:$0xff] %vm3866_vm4, %v3504_v16  ;;  %v1354_v19 = vpop.f32.mrf.mxu0  ;;  %v402_v15 = vld [vmem:[%s4780_s26 + $0x570] sm:$0xff] }
 0x156   : > { %v1355_v21 = vadd.f32 %v4852_v34, %v1354_v19 }
 0x157   : > { %v3125_v22 = vpop.f32.mrf.mxu1  ;;  %4358 = vmatmul.msk.f32.gmra.mxu2 %vm489_vm1, %v397_v17  ;;  %4598 = vmatmul.msk.f32.gmra.mxu3 %vm2308_vm3, %v2199_v18  ;;  %v274_v18 = vld [vmem:[%s4780_s26 + $0x170] sm:$0xff] }
 0x158   : > { %v3126_v23 = vadd.f32 %v4984_v36, %v3125_v22  ;;  %v2072_v24 = vmax.f32 %v1355_v21, 0.0  ;;  %4230 = vmatmul.msk.f32.gmra.mxu0 %vm489_vm1, %v269_v20 }
 0x15a   : > { %3876 = vst.msk [vmem:[%s4994_s10 + $0x48] sm:$0xff] %vm3866_vm4, %v3126_v23  ;;  %v1738_v25 = vpop.f32.mrf.mxu2  ;;  %v3506_v26 = vpop.f32.mrf.mxu3  ;;  %4471 = vmatmul.msk.f32.gmra.mxu1 %vm2308_vm3, %v2072_v24 }
 0x15b   : > { %v1739_v27 = vadd.f32 %v4852_v34, %v1738_v25  ;;  %v3507_v28 = vadd.f32 %v4984_v36, %v3506_v26 }
 0x15d   : > { %v2200_v30 = vmax.f32 %v1739_v27, 0.0  ;;  %4003 = vst.msk [vmem:[%s4994_s10 + $0x440] sm:$0xff] %vm3866_vm4, %v3507_v28  ;;  %v1357_v31 = vpop.f32.mrf.mxu0  ;;  %v403_v27 = vld [vmem:[%s4780_s26 + $0x578] sm:$0xff] }
 0x15e   : > { %v1358_v33 = vadd.f32 %v4852_v34, %v1357_v31 }
 0x15f   : > { %v3128_v35 = vpop.f32.mrf.mxu1  ;;  %4359 = vmatmul.msk.f32.gmra.mxu2 %vm489_vm1, %v398_v29  ;;  %4599 = vmatmul.msk.f32.gmra.mxu3 %vm2308_vm3, %v2200_v30  ;;  %v275_v30 = vld [vmem:[%s4780_s26 + $0x178] sm:$0xff] }
 0x160   : > { %v3129_v37 = vadd.f32 %v4984_v36, %v3128_v35  ;;  %v2073_v38 = vmax.f32 %v1358_v33, 0.0  ;;  %4231 = vmatmul.msk.f32.gmra.mxu0 %vm489_vm1, %v270_v32 }
 0x162   : > { %3877 = vst.msk [vmem:[%s4994_s10 + $0x50] sm:$0xff] %vm3866_vm4, %v3129_v37  ;;  %v1741_v39 = vpop.f32.mrf.mxu2  ;;  %v3509_v40 = vpop.f32.mrf.mxu3  ;;  %4472 = vmatmul.msk.f32.gmra.mxu1 %vm2308_vm3, %v2073_v38 }
 0x163   : > { %v1742_v41 = vadd.f32 %v4852_v34, %v1741_v39  ;;  %v3510_v42 = vadd.f32 %v4984_v36, %v3509_v40 }
 0x165   : > { %v2201_v44 = vmax.f32 %v1742_v41, 0.0  ;;  %4004 = vst.msk [vmem:[%s4994_s10 + $0x448] sm:$0xff] %vm3866_vm4, %v3510_v42  ;;  %v1360_v45 = vpop.f32.mrf.mxu0  ;;  %v404_v41 = vld [vmem:[%s4780_s26 + $0x580] sm:$0xff] }
 0x166   : > { %v1361_v47 = vadd.f32 %v4852_v34, %v1360_v45 }
 0x167   : > { %v3131_v48 = vpop.f32.mrf.mxu1  ;;  %4360 = vmatmul.msk.f32.gmra.mxu2 %vm489_vm1, %v399_v43  ;;  %4600 = vmatmul.msk.f32.gmra.mxu3 %vm2308_vm3, %v2201_v44  ;;  %v276_v44 = vld [vmem:[%s4780_s26 + $0x180] sm:$0xff] }
 0x168   : > { %v3132_v49 = vadd.f32 %v4984_v36, %v3131_v48  ;;  %v2074_v50 = vmax.f32 %v1361_v47, 0.0  ;;  %4232 = vmatmul.msk.f32.gmra.mxu0 %vm489_vm1, %v271_v46 }
 0x16a   : > { %3878 = vst.msk [vmem:[%s4994_s10 + $0x58] sm:$0xff] %vm3866_vm4, %v3132_v49  ;;  %v1744_v51 = vpop.f32.mrf.mxu2  ;;  %v3512_v52 = vpop.f32.mrf.mxu3  ;;  %4473 = vmatmul.msk.f32.gmra.mxu1 %vm2308_vm3, %v2074_v50 }
 0x16b   : > { %v1745_v53 = vadd.f32 %v4852_v34, %v1744_v51  ;;  %v3513_v54 = vadd.f32 %v4984_v36, %v3512_v52 }
 0x16d   : > { %v2202_v56 = vmax.f32 %v1745_v53, 0.0  ;;  %4005 = vst.msk [vmem:[%s4994_s10 + $0x450] sm:$0xff] %vm3866_vm4, %v3513_v54  ;;  %v1363_v57 = vpop.f32.mrf.mxu0  ;;  %v405_v53 = vld [vmem:[%s4780_s26 + $0x588] sm:$0xff] }
 0x16e   : > { %v1364_v59 = vadd.f32 %v4852_v34, %v1363_v57 }
 0x16f   : > { %v3134_v60 = vpop.f32.mrf.mxu1  ;;  %4361 = vmatmul.msk.f32.gmra.mxu2 %vm489_vm1, %v400_v55  ;;  %4601 = vmatmul.msk.f32.gmra.mxu3 %vm2308_vm3, %v2202_v56  ;;  %v277_v56 = vld [vmem:[%s4780_s26 + $0x188] sm:$0xff] }
 0x170   : > { %v3135_v61 = vadd.f32 %v4984_v36, %v3134_v60  ;;  %v2075_v62 = vmax.f32 %v1364_v59, 0.0  ;;  %4233 = vmatmul.msk.f32.gmra.mxu0 %vm489_vm1, %v272_v58 }
 0x172   : > { %3879 = vst.msk [vmem:[%s4994_s10 + $0x60] sm:$0xff] %vm3866_vm4, %v3135_v61  ;;  %v1747_v63 = vpop.f32.mrf.mxu2  ;;  %v3515_v0 = vpop.f32.mrf.mxu3  ;;  %4474 = vmatmul.msk.f32.gmra.mxu1 %vm2308_vm3, %v2075_v62 }
 0x173   : > { %v1748_v1 = vadd.f32 %v4852_v34, %v1747_v63  ;;  %v3516_v2 = vadd.f32 %v4984_v36, %v3515_v0 }
 0x175   : > { %v2203_v4 = vmax.f32 %v1748_v1, 0.0  ;;  %4006 = vst.msk [vmem:[%s4994_s10 + $0x458] sm:$0xff] %vm3866_vm4, %v3516_v2  ;;  %v1366_v5 = vpop.f32.mrf.mxu0  ;;  %v406_v1 = vld [vmem:[%s4780_s26 + $0x590] sm:$0xff] }
 0x176   : > { %v1367_v7 = vadd.f32 %v4852_v34, %v1366_v5 }
 0x177   : > { %v3137_v8 = vpop.f32.mrf.mxu1  ;;  %4362 = vmatmul.msk.f32.gmra.mxu2 %vm489_vm1, %v401_v3  ;;  %4602 = vmatmul.msk.f32.gmra.mxu3 %vm2308_vm3, %v2203_v4  ;;  %v278_v4 = vld [vmem:[%s4780_s26 + $0x190] sm:$0xff] }
 0x178   : > { %v3138_v9 = vadd.f32 %v4984_v36, %v3137_v8  ;;  %v2076_v10 = vmax.f32 %v1367_v7, 0.0  ;;  %4234 = vmatmul.msk.f32.gmra.mxu0 %vm489_vm1, %v273_v6 }
 0x17a   : > { %3880 = vst.msk [vmem:[%s4994_s10 + $0x68] sm:$0xff] %vm3866_vm4, %v3138_v9  ;;  %v1750_v11 = vpop.f32.mrf.mxu2  ;;  %v3518_v12 = vpop.f32.mrf.mxu3  ;;  %4475 = vmatmul.msk.f32.gmra.mxu1 %vm2308_vm3, %v2076_v10 }
 0x17b   : > { %v1751_v13 = vadd.f32 %v4852_v34, %v1750_v11  ;;  %v3519_v14 = vadd.f32 %v4984_v36, %v3518_v12 }
 0x17d   : > { %v2204_v16 = vmax.f32 %v1751_v13, 0.0  ;;  %4007 = vst.msk [vmem:[%s4994_s10 + $0x460] sm:$0xff] %vm3866_vm4, %v3519_v14  ;;  %v1369_v17 = vpop.f32.mrf.mxu0  ;;  %v407_v13 = vld [vmem:[%s4780_s26 + $0x598] sm:$0xff] }
 0x17e   : > { %v1370_v19 = vadd.f32 %v4852_v34, %v1369_v17 }
 0x17f   : > { %v3140_v20 = vpop.f32.mrf.mxu1  ;;  %4363 = vmatmul.msk.f32.gmra.mxu2 %vm489_vm1, %v402_v15  ;;  %4603 = vmatmul.msk.f32.gmra.mxu3 %vm2308_vm3, %v2204_v16  ;;  %v279_v16 = vld [vmem:[%s4780_s26 + $0x198] sm:$0xff] }
 0x180   : > { %v3141_v21 = vadd.f32 %v4984_v36, %v3140_v20  ;;  %v2077_v22 = vmax.f32 %v1370_v19, 0.0  ;;  %4235 = vmatmul.msk.f32.gmra.mxu0 %vm489_vm1, %v274_v18 }
 0x182   : > { %3881 = vst.msk [vmem:[%s4994_s10 + $0x70] sm:$0xff] %vm3866_vm4, %v3141_v21  ;;  %v1753_v23 = vpop.f32.mrf.mxu2  ;;  %v3521_v24 = vpop.f32.mrf.mxu3  ;;  %4476 = vmatmul.msk.f32.gmra.mxu1 %vm2308_vm3, %v2077_v22 }
 0x183   : > { %v1754_v25 = vadd.f32 %v4852_v34, %v1753_v23  ;;  %v3522_v26 = vadd.f32 %v4984_v36, %v3521_v24 }
 0x185   : > { %v2205_v28 = vmax.f32 %v1754_v25, 0.0  ;;  %4008 = vst.msk [vmem:[%s4994_s10 + $0x468] sm:$0xff] %vm3866_vm4, %v3522_v26  ;;  %v1372_v29 = vpop.f32.mrf.mxu0  ;;  %v408_v25 = vld [vmem:[%s4780_s26 + $0x5a0] sm:$0xff] }
 0x186   : > { %v1373_v31 = vadd.f32 %v4852_v34, %v1372_v29 }
 0x187   : > { %v3143_v32 = vpop.f32.mrf.mxu1  ;;  %4364 = vmatmul.msk.f32.gmra.mxu2 %vm489_vm1, %v403_v27  ;;  %4604 = vmatmul.msk.f32.gmra.mxu3 %vm2308_vm3, %v2205_v28  ;;  %v280_v28 = vld [vmem:[%s4780_s26 + $0x1a0] sm:$0xff] }
 0x188   : > { %v3144_v33 = vadd.f32 %v4984_v36, %v3143_v32  ;;  %v2078_v35 = vmax.f32 %v1373_v31, 0.0  ;;  %4236 = vmatmul.msk.f32.gmra.mxu0 %vm489_vm1, %v275_v30 }
 0x18a   : > { %3882 = vst.msk [vmem:[%s4994_s10 + $0x78] sm:$0xff] %vm3866_vm4, %v3144_v33  ;;  %v1756_v37 = vpop.f32.mrf.mxu2  ;;  %v3524_v38 = vpop.f32.mrf.mxu3  ;;  %4477 = vmatmul.msk.f32.gmra.mxu1 %vm2308_vm3, %v2078_v35 }
 0x18b   : > { %v1757_v39 = vadd.f32 %v4852_v34, %v1756_v37  ;;  %v3525_v40 = vadd.f32 %v4984_v36, %v3524_v38 }
 0x18d   : > { %v2206_v42 = vmax.f32 %v1757_v39, 0.0  ;;  %4009 = vst.msk [vmem:[%s4994_s10 + $0x470] sm:$0xff] %vm3866_vm4, %v3525_v40  ;;  %v1375_v43 = vpop.f32.mrf.mxu0  ;;  %v409_v39 = vld [vmem:[%s4780_s26 + $0x5a8] sm:$0xff] }
 0x18e   : > { %v1376_v45 = vadd.f32 %v4852_v34, %v1375_v43 }
 0x18f   : > { %v3146_v46 = vpop.f32.mrf.mxu1  ;;  %4365 = vmatmul.msk.f32.gmra.mxu2 %vm489_vm1, %v404_v41  ;;  %4605 = vmatmul.msk.f32.gmra.mxu3 %vm2308_vm3, %v2206_v42  ;;  %v281_v42 = vld [vmem:[%s4780_s26 + $0x1a8] sm:$0xff] }
 0x190   : > { %v3147_v47 = vadd.f32 %v4984_v36, %v3146_v46  ;;  %v2079_v48 = vmax.f32 %v1376_v45, 0.0  ;;  %4237 = vmatmul.msk.f32.gmra.mxu0 %vm489_vm1, %v276_v44 }
 0x192   : > { %3883 = vst.msk [vmem:[%s4994_s10 + $0x80] sm:$0xff] %vm3866_vm4, %v3147_v47  ;;  %v1759_v49 = vpop.f32.mrf.mxu2  ;;  %v3527_v50 = vpop.f32.mrf.mxu3  ;;  %4478 = vmatmul.msk.f32.gmra.mxu1 %vm2308_vm3, %v2079_v48 }
 0x193   : > { %v1760_v51 = vadd.f32 %v4852_v34, %v1759_v49  ;;  %v3528_v52 = vadd.f32 %v4984_v36, %v3527_v50 }
 0x195   : > { %v2207_v54 = vmax.f32 %v1760_v51, 0.0  ;;  %4010 = vst.msk [vmem:[%s4994_s10 + $0x478] sm:$0xff] %vm3866_vm4, %v3528_v52  ;;  %v1378_v55 = vpop.f32.mrf.mxu0  ;;  %v410_v51 = vld [vmem:[%s4780_s26 + $0x5b0] sm:$0xff] }
 0x196   : > { %v1379_v57 = vadd.f32 %v4852_v34, %v1378_v55  ;;  %v5241_v34 = vld [vmem:[%s6634_s2] ss:$0 sm:$0xff] }
 0x197   : > { %4366 = vmatmul.msk.f32.gmra.mxu2 %vm489_vm1, %v405_v53  ;;  %4606 = vmatmul.msk.f32.gmra.mxu3 %vm2308_vm3, %v2207_v54  ;;  %v3149_v58 = vpop.f32.mrf.mxu1  ;;  %v282_v54 = vld [vmem:[%s4780_s26 + $0x1b0] sm:$0xff] }
 0x198   : > { %v2080_v59 = vmax.f32 %v1379_v57, 0.0  ;;  %v3150_v60 = vadd.f32 %v4984_v36, %v3149_v58  ;;  %4238 = vmatmul.msk.f32.gmra.mxu0 %vm489_vm1, %v277_v56 }
 0x19a   : > { %v1762_v61 = vpop.f32.mrf.mxu2  ;;  %v3530_v62 = vpop.f32.mrf.mxu3  ;;  %3884 = vst.msk [vmem:[%s4994_s10 + $0x88] sm:$0xff] %vm3866_vm4, %v3150_v60  ;;  %4479 = vmatmul.msk.f32.gmra.mxu1 %vm2308_vm3, %v2080_v59 }
 0x19b   : > { %v1763_v63 = vadd.f32 %v5241_v34, %v1762_v61  ;;  %v3531_v0 = vadd.f32 %v4984_v36, %v3530_v62 }
 0x19d   : > { %v2208_v2 = vmax.f32 %v1763_v63, 0.0  ;;  %4011 = vst.msk [vmem:[%s4994_s10 + $0x480] sm:$0xff] %vm3866_vm4, %v3531_v0  ;;  %v1381_v3 = vpop.f32.mrf.mxu0  ;;  %v411_v63 = vld [vmem:[%s4780_s26 + $0x5b8] sm:$0xff] }
 0x19e   : > { %v1382_v5 = vadd.f32 %v5241_v34, %v1381_v3 }
 0x19f   : > { %4367 = vmatmul.msk.f32.gmra.mxu2 %vm489_vm1, %v406_v1  ;;  %4607 = vmatmul.msk.f32.gmra.mxu3 %vm2308_vm3, %v2208_v2  ;;  %v3152_v6 = vpop.f32.mrf.mxu1  ;;  %v283_v2 = vld [vmem:[%s4780_s26 + $0x1b8] sm:$0xff] }
 0x1a0   : > { %v2081_v7 = vmax.f32 %v1382_v5, 0.0  ;;  %v3153_v8 = vadd.f32 %v4984_v36, %v3152_v6  ;;  %4239 = vmatmul.msk.f32.gmra.mxu0 %vm489_vm1, %v278_v4 }
 0x1a2   : > { %v1765_v9 = vpop.f32.mrf.mxu2  ;;  %v3533_v10 = vpop.f32.mrf.mxu3  ;;  %3885 = vst.msk [vmem:[%s4994_s10 + $0x90] sm:$0xff] %vm3866_vm4, %v3153_v8  ;;  %4480 = vmatmul.msk.f32.gmra.mxu1 %vm2308_vm3, %v2081_v7 }
 0x1a3   : > { %v1766_v11 = vadd.f32 %v5241_v34, %v1765_v9  ;;  %v3534_v12 = vadd.f32 %v4984_v36, %v3533_v10 }
 0x1a5   : > { %v2209_v14 = vmax.f32 %v1766_v11, 0.0  ;;  %4012 = vst.msk [vmem:[%s4994_s10 + $0x488] sm:$0xff] %vm3866_vm4, %v3534_v12  ;;  %v1384_v15 = vpop.f32.mrf.mxu0  ;;  %v412_v11 = vld [vmem:[%s4780_s26 + $0x5c0] sm:$0xff] }
 0x1a6   : > { %v1385_v17 = vadd.f32 %v5241_v34, %v1384_v15 }
 0x1a7   : > { %4368 = vmatmul.msk.f32.gmra.mxu2 %vm489_vm1, %v407_v13  ;;  %4608 = vmatmul.msk.f32.gmra.mxu3 %vm2308_vm3, %v2209_v14  ;;  %v3155_v18 = vpop.f32.mrf.mxu1  ;;  %v284_v14 = vld [vmem:[%s4780_s26 + $0x1c0] sm:$0xff] }
 0x1a8   : > { %v2082_v19 = vmax.f32 %v1385_v17, 0.0  ;;  %v3156_v20 = vadd.f32 %v4984_v36, %v3155_v18  ;;  %4240 = vmatmul.msk.f32.gmra.mxu0 %vm489_vm1, %v279_v16 }
 0x1aa   : > { %v1768_v21 = vpop.f32.mrf.mxu2  ;;  %v3536_v22 = vpop.f32.mrf.mxu3  ;;  %3886 = vst.msk [vmem:[%s4994_s10 + $0x98] sm:$0xff] %vm3866_vm4, %v3156_v20  ;;  %4481 = vmatmul.msk.f32.gmra.mxu1 %vm2308_vm3, %v2082_v19 }
 0x1ab   : > { %v1769_v23 = vadd.f32 %v5241_v34, %v1768_v21  ;;  %v3537_v24 = vadd.f32 %v4984_v36, %v3536_v22 }
 0x1ad   : > { %v2210_v26 = vmax.f32 %v1769_v23, 0.0  ;;  %4013 = vst.msk [vmem:[%s4994_s10 + $0x490] sm:$0xff] %vm3866_vm4, %v3537_v24  ;;  %v1387_v27 = vpop.f32.mrf.mxu0  ;;  %v413_v23 = vld [vmem:[%s4780_s26 + $0x5c8] sm:$0xff] }
 0x1ae   : > { %v1388_v29 = vadd.f32 %v5241_v34, %v1387_v27 }
 0x1af   : > { %4369 = vmatmul.msk.f32.gmra.mxu2 %vm489_vm1, %v408_v25  ;;  %4609 = vmatmul.msk.f32.gmra.mxu3 %vm2308_vm3, %v2210_v26  ;;  %v3158_v30 = vpop.f32.mrf.mxu1  ;;  %v285_v26 = vld [vmem:[%s4780_s26 + $0x1c8] sm:$0xff] }
 0x1b0   : > { %v2083_v31 = vmax.f32 %v1388_v29, 0.0  ;;  %v3159_v32 = vadd.f32 %v4984_v36, %v3158_v30  ;;  %4241 = vmatmul.msk.f32.gmra.mxu0 %vm489_vm1, %v280_v28 }
 0x1b2   : > { %v1771_v33 = vpop.f32.mrf.mxu2  ;;  %v3539_v35 = vpop.f32.mrf.mxu3  ;;  %3887 = vst.msk [vmem:[%s4994_s10 + $0xa0] sm:$0xff] %vm3866_vm4, %v3159_v32  ;;  %4482 = vmatmul.msk.f32.gmra.mxu1 %vm2308_vm3, %v2083_v31 }
 0x1b3   : > { %v1772_v37 = vadd.f32 %v5241_v34, %v1771_v33  ;;  %v3540_v38 = vadd.f32 %v4984_v36, %v3539_v35 }
 0x1b5   : > { %v2211_v40 = vmax.f32 %v1772_v37, 0.0  ;;  %4014 = vst.msk [vmem:[%s4994_s10 + $0x498] sm:$0xff] %vm3866_vm4, %v3540_v38  ;;  %v1390_v41 = vpop.f32.mrf.mxu0  ;;  %v414_v37 = vld [vmem:[%s4780_s26 + $0x5d0] sm:$0xff] }
 0x1b6   : > { %v1391_v43 = vadd.f32 %v5241_v34, %v1390_v41 }
 0x1b7   : > { %4370 = vmatmul.msk.f32.gmra.mxu2 %vm489_vm1, %v409_v39  ;;  %4610 = vmatmul.msk.f32.gmra.mxu3 %vm2308_vm3, %v2211_v40  ;;  %v3161_v44 = vpop.f32.mrf.mxu1  ;;  %v286_v40 = vld [vmem:[%s4780_s26 + $0x1d0] sm:$0xff] }
 0x1b8   : > { %v2084_v45 = vmax.f32 %v1391_v43, 0.0  ;;  %v3162_v46 = vadd.f32 %v4984_v36, %v3161_v44  ;;  %4242 = vmatmul.msk.f32.gmra.mxu0 %vm489_vm1, %v281_v42 }
 0x1ba   : > { %v1774_v47 = vpop.f32.mrf.mxu2  ;;  %v3542_v48 = vpop.f32.mrf.mxu3  ;;  %3888 = vst.msk [vmem:[%s4994_s10 + $0xa8] sm:$0xff] %vm3866_vm4, %v3162_v46  ;;  %4483 = vmatmul.msk.f32.gmra.mxu1 %vm2308_vm3, %v2084_v45 }
 0x1bb   : > { %v1775_v49 = vadd.f32 %v5241_v34, %v1774_v47  ;;  %v3543_v50 = vadd.f32 %v4984_v36, %v3542_v48 }
 0x1bd   : > { %v2212_v52 = vmax.f32 %v1775_v49, 0.0  ;;  %4015 = vst.msk [vmem:[%s4994_s10 + $0x4a0] sm:$0xff] %vm3866_vm4, %v3543_v50  ;;  %v1393_v53 = vpop.f32.mrf.mxu0  ;;  %v415_v49 = vld [vmem:[%s4780_s26 + $0x5d8] sm:$0xff] }
 0x1be   : > { %v1394_v55 = vadd.f32 %v5241_v34, %v1393_v53 }
 0x1bf   : > { %4371 = vmatmul.msk.f32.gmra.mxu2 %vm489_vm1, %v410_v51  ;;  %4611 = vmatmul.msk.f32.gmra.mxu3 %vm2308_vm3, %v2212_v52  ;;  %v3164_v56 = vpop.f32.mrf.mxu1  ;;  %v287_v52 = vld [vmem:[%s4780_s26 + $0x1d8] sm:$0xff] }
 0x1c0   : > { %v2085_v57 = vmax.f32 %v1394_v55, 0.0  ;;  %v3165_v58 = vadd.f32 %v4984_v36, %v3164_v56  ;;  %4243 = vmatmul.msk.f32.gmra.mxu0 %vm489_vm1, %v282_v54 }
 0x1c2   : > { %v1777_v59 = vpop.f32.mrf.mxu2  ;;  %v3545_v60 = vpop.f32.mrf.mxu3  ;;  %3889 = vst.msk [vmem:[%s4994_s10 + $0xb0] sm:$0xff] %vm3866_vm4, %v3165_v58  ;;  %4484 = vmatmul.msk.f32.gmra.mxu1 %vm2308_vm3, %v2085_v57 }
 0x1c3   : > { %v1778_v61 = vadd.f32 %v5241_v34, %v1777_v59  ;;  %v3546_v62 = vadd.f32 %v4984_v36, %v3545_v60 }
 0x1c5   : > { %v2213_v0 = vmax.f32 %v1778_v61, 0.0  ;;  %4016 = vst.msk [vmem:[%s4994_s10 + $0x4a8] sm:$0xff] %vm3866_vm4, %v3546_v62  ;;  %v1396_v1 = vpop.f32.mrf.mxu0  ;;  %v416_v61 = vld [vmem:[%s4780_s26 + $0x5e0] sm:$0xff] }
 0x1c6   : > { %v1397_v3 = vadd.f32 %v5241_v34, %v1396_v1 }
 0x1c7   : > { %4372 = vmatmul.msk.f32.gmra.mxu2 %vm489_vm1, %v411_v63  ;;  %4612 = vmatmul.msk.f32.gmra.mxu3 %vm2308_vm3, %v2213_v0  ;;  %v3167_v4 = vpop.f32.mrf.mxu1  ;;  %v288_v0 = vld [vmem:[%s4780_s26 + $0x1e0] sm:$0xff] }
 0x1c8   : > { %v2086_v5 = vmax.f32 %v1397_v3, 0.0  ;;  %v3168_v6 = vadd.f32 %v4984_v36, %v3167_v4  ;;  %4244 = vmatmul.msk.f32.gmra.mxu0 %vm489_vm1, %v283_v2 }
 0x1ca   : > { %v1780_v7 = vpop.f32.mrf.mxu2  ;;  %v3548_v8 = vpop.f32.mrf.mxu3  ;;  %3890 = vst.msk [vmem:[%s4994_s10 + $0xb8] sm:$0xff] %vm3866_vm4, %v3168_v6  ;;  %4485 = vmatmul.msk.f32.gmra.mxu1 %vm2308_vm3, %v2086_v5 }
 0x1cb   : > { %v1781_v9 = vadd.f32 %v5241_v34, %v1780_v7  ;;  %v3549_v10 = vadd.f32 %v4984_v36, %v3548_v8 }
 0x1cd   : > { %v2214_v12 = vmax.f32 %v1781_v9, 0.0  ;;  %4017 = vst.msk [vmem:[%s4994_s10 + $0x4b0] sm:$0xff] %vm3866_vm4, %v3549_v10  ;;  %v1399_v13 = vpop.f32.mrf.mxu0  ;;  %v417_v9 = vld [vmem:[%s4780_s26 + $0x5e8] sm:$0xff] }
 0x1ce   : > { %v1400_v15 = vadd.f32 %v5241_v34, %v1399_v13 }
 0x1cf   : > { %4373 = vmatmul.msk.f32.gmra.mxu2 %vm489_vm1, %v412_v11  ;;  %4613 = vmatmul.msk.f32.gmra.mxu3 %vm2308_vm3, %v2214_v12  ;;  %v3170_v16 = vpop.f32.mrf.mxu1  ;;  %v289_v12 = vld [vmem:[%s4780_s26 + $0x1e8] sm:$0xff] }
 0x1d0   : > { %v2087_v17 = vmax.f32 %v1400_v15, 0.0  ;;  %v3171_v18 = vadd.f32 %v4984_v36, %v3170_v16  ;;  %4245 = vmatmul.msk.f32.gmra.mxu0 %vm489_vm1, %v284_v14 }
 0x1d2   : > { %v1783_v19 = vpop.f32.mrf.mxu2  ;;  %v3551_v20 = vpop.f32.mrf.mxu3  ;;  %3891 = vst.msk [vmem:[%s4994_s10 + $0xc0] sm:$0xff] %vm3866_vm4, %v3171_v18  ;;  %4486 = vmatmul.msk.f32.gmra.mxu1 %vm2308_vm3, %v2087_v17 }
 0x1d3   : > { %v1784_v21 = vadd.f32 %v5241_v34, %v1783_v19  ;;  %v3552_v22 = vadd.f32 %v4984_v36, %v3551_v20 }
 0x1d5   : > { %v2215_v24 = vmax.f32 %v1784_v21, 0.0  ;;  %4018 = vst.msk [vmem:[%s4994_s10 + $0x4b8] sm:$0xff] %vm3866_vm4, %v3552_v22  ;;  %v1402_v25 = vpop.f32.mrf.mxu0  ;;  %v418_v21 = vld [vmem:[%s4780_s26 + $0x5f0] sm:$0xff] }
 0x1d6   : > { %v1403_v27 = vadd.f32 %v5241_v34, %v1402_v25 }
 0x1d7   : > { %4374 = vmatmul.msk.f32.gmra.mxu2 %vm489_vm1, %v413_v23  ;;  %4614 = vmatmul.msk.f32.gmra.mxu3 %vm2308_vm3, %v2215_v24  ;;  %v3173_v28 = vpop.f32.mrf.mxu1  ;;  %v290_v24 = vld [vmem:[%s4780_s26 + $0x1f0] sm:$0xff] }
 0x1d8   : > { %v2088_v29 = vmax.f32 %v1403_v27, 0.0  ;;  %v3174_v30 = vadd.f32 %v4984_v36, %v3173_v28  ;;  %4246 = vmatmul.msk.f32.gmra.mxu0 %vm489_vm1, %v285_v26 }
 0x1da   : > { %v1786_v31 = vpop.f32.mrf.mxu2  ;;  %v3554_v32 = vpop.f32.mrf.mxu3  ;;  %3892 = vst.msk [vmem:[%s4994_s10 + $0xc8] sm:$0xff] %vm3866_vm4, %v3174_v30  ;;  %4487 = vmatmul.msk.f32.gmra.mxu1 %vm2308_vm3, %v2088_v29 }
 0x1db   : > { %v1787_v33 = vadd.f32 %v5241_v34, %v1786_v31  ;;  %v3555_v35 = vadd.f32 %v4984_v36, %v3554_v32 }
 0x1dd   : > { %v2216_v38 = vmax.f32 %v1787_v33, 0.0  ;;  %4019 = vst.msk [vmem:[%s4994_s10 + $0x4c0] sm:$0xff] %vm3866_vm4, %v3555_v35  ;;  %v1405_v39 = vpop.f32.mrf.mxu0  ;;  %v419_v33 = vld [vmem:[%s4780_s26 + $0x5f8] sm:$0xff] }
 0x1de   : > { %v1406_v41 = vadd.f32 %v5241_v34, %v1405_v39 }
 0x1df   : > { %4375 = vmatmul.msk.f32.gmra.mxu2 %vm489_vm1, %v414_v37  ;;  %4615 = vmatmul.msk.f32.gmra.mxu3 %vm2308_vm3, %v2216_v38  ;;  %v3176_v42 = vpop.f32.mrf.mxu1  ;;  %v291_v38 = vld [vmem:[%s4780_s26 + $0x1f8] sm:$0xff] }
 0x1e0   : > { %v2089_v43 = vmax.f32 %v1406_v41, 0.0  ;;  %v3177_v44 = vadd.f32 %v4984_v36, %v3176_v42  ;;  %4247 = vmatmul.msk.f32.gmra.mxu0 %vm489_vm1, %v286_v40 }
 0x1e2   : > { %v1789_v45 = vpop.f32.mrf.mxu2  ;;  %v3557_v46 = vpop.f32.mrf.mxu3  ;;  %3893 = vst.msk [vmem:[%s4994_s10 + $0xd0] sm:$0xff] %vm3866_vm4, %v3177_v44  ;;  %4488 = vmatmul.msk.f32.gmra.mxu1 %vm2308_vm3, %v2089_v43 }
 0x1e3   : > { %v1790_v47 = vadd.f32 %v5241_v34, %v1789_v45  ;;  %v3558_v48 = vadd.f32 %v4984_v36, %v3557_v46 }
 0x1e5   : > { %v2217_v50 = vmax.f32 %v1790_v47, 0.0  ;;  %4020 = vst.msk [vmem:[%s4994_s10 + $0x4c8] sm:$0xff] %vm3866_vm4, %v3558_v48  ;;  %v1408_v51 = vpop.f32.mrf.mxu0  ;;  %v420_v47 = vld [vmem:[%s4780_s26 + $0x600] sm:$0xff] }
 0x1e6   : > { %v1409_v53 = vadd.f32 %v5241_v34, %v1408_v51 }
 0x1e7   : > { %4376 = vmatmul.msk.f32.gmra.mxu2 %vm489_vm1, %v415_v49  ;;  %4616 = vmatmul.msk.f32.gmra.mxu3 %vm2308_vm3, %v2217_v50  ;;  %v3179_v54 = vpop.f32.mrf.mxu1  ;;  %v292_v50 = vld [vmem:[%s4780_s26 + $0x200] sm:$0xff] }
 0x1e8   : > { %v2090_v55 = vmax.f32 %v1409_v53, 0.0  ;;  %v3180_v56 = vadd.f32 %v4984_v36, %v3179_v54  ;;  %4248 = vmatmul.msk.f32.gmra.mxu0 %vm489_vm1, %v287_v52 }
 0x1ea   : > { %v1792_v57 = vpop.f32.mrf.mxu2  ;;  %v3560_v58 = vpop.f32.mrf.mxu3  ;;  %3894 = vst.msk [vmem:[%s4994_s10 + $0xd8] sm:$0xff] %vm3866_vm4, %v3180_v56  ;;  %4489 = vmatmul.msk.f32.gmra.mxu1 %vm2308_vm3, %v2090_v55 }
 0x1eb   : > { %v1793_v59 = vadd.f32 %v5241_v34, %v1792_v57  ;;  %v3561_v60 = vadd.f32 %v4984_v36, %v3560_v58  ;;  %v5395_v36 = vld [vmem:[%s6636_s4] ss:$0 sm:$0xff] }
 0x1ed   : > { %v2218_v62 = vmax.f32 %v1793_v59, 0.0  ;;  %4021 = vst.msk [vmem:[%s4994_s10 + $0x4d0] sm:$0xff] %vm3866_vm4, %v3561_v60  ;;  %v1411_v63 = vpop.f32.mrf.mxu0  ;;  %v421_v59 = vld [vmem:[%s4780_s26 + $0x608] sm:$0xff] }
 0x1ee   : > { %v1412_v1 = vadd.f32 %v5241_v34, %v1411_v63 }
 0x1ef   : > { %4377 = vmatmul.msk.f32.gmra.mxu2 %vm489_vm1, %v416_v61  ;;  %4617 = vmatmul.msk.f32.gmra.mxu3 %vm2308_vm3, %v2218_v62  ;;  %v3182_v2 = vpop.f32.mrf.mxu1  ;;  %v293_v62 = vld [vmem:[%s4780_s26 + $0x208] sm:$0xff] }
 0x1f0   : > { %v2091_v3 = vmax.f32 %v1412_v1, 0.0  ;;  %v3183_v4 = vadd.f32 %v5395_v36, %v3182_v2  ;;  %4249 = vmatmul.msk.f32.gmra.mxu0 %vm489_vm1, %v288_v0 }
 0x1f2   : > { %v1795_v5 = vpop.f32.mrf.mxu2  ;;  %v3563_v6 = vpop.f32.mrf.mxu3  ;;  %3895 = vst.msk [vmem:[%s4994_s10 + $0xe0] sm:$0xff] %vm3866_vm4, %v3183_v4  ;;  %4490 = vmatmul.msk.f32.gmra.mxu1 %vm2308_vm3, %v2091_v3 }
 0x1f3   : > { %v1796_v7 = vadd.f32 %v5241_v34, %v1795_v5  ;;  %v3564_v8 = vadd.f32 %v5395_v36, %v3563_v6 }
 0x1f5   : > { %v2219_v10 = vmax.f32 %v1796_v7, 0.0  ;;  %4022 = vst.msk [vmem:[%s4994_s10 + $0x4d8] sm:$0xff] %vm3866_vm4, %v3564_v8  ;;  %v1414_v11 = vpop.f32.mrf.mxu0  ;;  %v422_v7 = vld [vmem:[%s4780_s26 + $0x610] sm:$0xff] }
 0x1f6   : > { %v1415_v13 = vadd.f32 %v5241_v34, %v1414_v11 }
 0x1f7   : > { %4378 = vmatmul.msk.f32.gmra.mxu2 %vm489_vm1, %v417_v9  ;;  %4618 = vmatmul.msk.f32.gmra.mxu3 %vm2308_vm3, %v2219_v10  ;;  %v3185_v14 = vpop.f32.mrf.mxu1  ;;  %v294_v10 = vld [vmem:[%s4780_s26 + $0x210] sm:$0xff] }
 0x1f8   : > { %v2092_v15 = vmax.f32 %v1415_v13, 0.0  ;;  %v3186_v16 = vadd.f32 %v5395_v36, %v3185_v14  ;;  %4250 = vmatmul.msk.f32.gmra.mxu0 %vm489_vm1, %v289_v12 }
 0x1fa   : > { %v1798_v17 = vpop.f32.mrf.mxu2  ;;  %v3566_v18 = vpop.f32.mrf.mxu3  ;;  %3896 = vst.msk [vmem:[%s4994_s10 + $0xe8] sm:$0xff] %vm3866_vm4, %v3186_v16  ;;  %4491 = vmatmul.msk.f32.gmra.mxu1 %vm2308_vm3, %v2092_v15 }
 0x1fb   : > { %v1799_v19 = vadd.f32 %v5241_v34, %v1798_v17  ;;  %v3567_v20 = vadd.f32 %v5395_v36, %v3566_v18 }
 0x1fd   : > { %v2220_v22 = vmax.f32 %v1799_v19, 0.0  ;;  %4023 = vst.msk [vmem:[%s4994_s10 + $0x4e0] sm:$0xff] %vm3866_vm4, %v3567_v20  ;;  %v1417_v23 = vpop.f32.mrf.mxu0  ;;  %v423_v19 = vld [vmem:[%s4780_s26 + $0x618] sm:$0xff] }
 0x1fe   : > { %v1418_v25 = vadd.f32 %v5241_v34, %v1417_v23 }
 0x1ff   : > { %4379 = vmatmul.msk.f32.gmra.mxu2 %vm489_vm1, %v418_v21  ;;  %4619 = vmatmul.msk.f32.gmra.mxu3 %vm2308_vm3, %v2220_v22  ;;  %v3188_v26 = vpop.f32.mrf.mxu1  ;;  %v295_v22 = vld [vmem:[%s4780_s26 + $0x218] sm:$0xff] }
 0x200   : > { %v2093_v27 = vmax.f32 %v1418_v25, 0.0  ;;  %v3189_v28 = vadd.f32 %v5395_v36, %v3188_v26  ;;  %4251 = vmatmul.msk.f32.gmra.mxu0 %vm489_vm1, %v290_v24 }
 0x202   : > { %v1801_v29 = vpop.f32.mrf.mxu2  ;;  %v3569_v30 = vpop.f32.mrf.mxu3  ;;  %3897 = vst.msk [vmem:[%s4994_s10 + $0xf0] sm:$0xff] %vm3866_vm4, %v3189_v28  ;;  %4492 = vmatmul.msk.f32.gmra.mxu1 %vm2308_vm3, %v2093_v27 }
 0x203   : > { %v1802_v31 = vadd.f32 %v5241_v34, %v1801_v29  ;;  %v3570_v32 = vadd.f32 %v5395_v36, %v3569_v30 }
 0x205   : > { %v2221_v35 = vmax.f32 %v1802_v31, 0.0  ;;  %4024 = vst.msk [vmem:[%s4994_s10 + $0x4e8] sm:$0xff] %vm3866_vm4, %v3570_v32  ;;  %v1420_v37 = vpop.f32.mrf.mxu0  ;;  %v424_v31 = vld [vmem:[%s4780_s26 + $0x620] sm:$0xff] }
 0x206   : > { %v1421_v39 = vadd.f32 %v5241_v34, %v1420_v37 }
 0x207   : > { %4380 = vmatmul.msk.f32.gmra.mxu2 %vm489_vm1, %v419_v33  ;;  %4620 = vmatmul.msk.f32.gmra.mxu3 %vm2308_vm3, %v2221_v35  ;;  %v3191_v40 = vpop.f32.mrf.mxu1  ;;  %v296_v35 = vld [vmem:[%s4780_s26 + $0x220] sm:$0xff] }
 0x208   : > { %v2094_v41 = vmax.f32 %v1421_v39, 0.0  ;;  %v3192_v42 = vadd.f32 %v5395_v36, %v3191_v40  ;;  %4252 = vmatmul.msk.f32.gmra.mxu0 %vm489_vm1, %v291_v38 }
 0x20a   : > { %v1804_v43 = vpop.f32.mrf.mxu2  ;;  %v3572_v44 = vpop.f32.mrf.mxu3  ;;  %3898 = vst.msk [vmem:[%s4994_s10 + $0xf8] sm:$0xff] %vm3866_vm4, %v3192_v42  ;;  %4493 = vmatmul.msk.f32.gmra.mxu1 %vm2308_vm3, %v2094_v41 }
 0x20b   : > { %v1805_v45 = vadd.f32 %v5241_v34, %v1804_v43  ;;  %v3573_v46 = vadd.f32 %v5395_v36, %v3572_v44 }
 0x20d   : > { %v2222_v48 = vmax.f32 %v1805_v45, 0.0  ;;  %4025 = vst.msk [vmem:[%s4994_s10 + $0x4f0] sm:$0xff] %vm3866_vm4, %v3573_v46  ;;  %v1423_v49 = vpop.f32.mrf.mxu0  ;;  %v425_v45 = vld [vmem:[%s4780_s26 + $0x628] sm:$0xff] }
 0x20e   : > { %v1424_v51 = vadd.f32 %v5241_v34, %v1423_v49 }
 0x20f   : > { %4381 = vmatmul.msk.f32.gmra.mxu2 %vm489_vm1, %v420_v47  ;;  %4621 = vmatmul.msk.f32.gmra.mxu3 %vm2308_vm3, %v2222_v48  ;;  %v3194_v52 = vpop.f32.mrf.mxu1  ;;  %v297_v48 = vld [vmem:[%s4780_s26 + $0x228] sm:$0xff] }
 0x210   : > { %v2095_v53 = vmax.f32 %v1424_v51, 0.0  ;;  %v3195_v54 = vadd.f32 %v5395_v36, %v3194_v52  ;;  %4253 = vmatmul.msk.f32.gmra.mxu0 %vm489_vm1, %v292_v50 }
 0x212   : > { %v1807_v55 = vpop.f32.mrf.mxu2  ;;  %v3575_v56 = vpop.f32.mrf.mxu3  ;;  %3899 = vst.msk [vmem:[%s4994_s10 + $0x100] sm:$0xff] %vm3866_vm4, %v3195_v54  ;;  %4494 = vmatmul.msk.f32.gmra.mxu1 %vm2308_vm3, %v2095_v53 }
 0x213   : > { %v1808_v57 = vadd.f32 %v5241_v34, %v1807_v55  ;;  %v3576_v58 = vadd.f32 %v5395_v36, %v3575_v56 }
 0x215   : > { %v2223_v60 = vmax.f32 %v1808_v57, 0.0  ;;  %4026 = vst.msk [vmem:[%s4994_s10 + $0x4f8] sm:$0xff] %vm3866_vm4, %v3576_v58  ;;  %v1426_v61 = vpop.f32.mrf.mxu0  ;;  %v426_v57 = vld [vmem:[%s4780_s26 + $0x630] sm:$0xff] }
 0x216   : > { %v1427_v63 = vadd.f32 %v5241_v34, %v1426_v61 }
 0x217   : > { %4382 = vmatmul.msk.f32.gmra.mxu2 %vm489_vm1, %v421_v59  ;;  %4622 = vmatmul.msk.f32.gmra.mxu3 %vm2308_vm3, %v2223_v60  ;;  %v3197_v0 = vpop.f32.mrf.mxu1  ;;  %v298_v60 = vld [vmem:[%s4780_s26 + $0x230] sm:$0xff] }
 0x218   : > { %v2096_v1 = vmax.f32 %v1427_v63, 0.0  ;;  %v3198_v2 = vadd.f32 %v5395_v36, %v3197_v0  ;;  %4254 = vmatmul.msk.f32.gmra.mxu0 %vm489_vm1, %v293_v62 }
 0x21a   : > { %v1810_v3 = vpop.f32.mrf.mxu2  ;;  %v3578_v4 = vpop.f32.mrf.mxu3  ;;  %3900 = vst.msk [vmem:[%s4994_s10 + $0x108] sm:$0xff] %vm3866_vm4, %v3198_v2  ;;  %4495 = vmatmul.msk.f32.gmra.mxu1 %vm2308_vm3, %v2096_v1 }
 0x21b   : > { %v1811_v5 = vadd.f32 %v5241_v34, %v1810_v3  ;;  %v3579_v6 = vadd.f32 %v5395_v36, %v3578_v4 }
 0x21d   : > { %v2224_v8 = vmax.f32 %v1811_v5, 0.0  ;;  %4027 = vst.msk [vmem:[%s4994_s10 + $0x500] sm:$0xff] %vm3866_vm4, %v3579_v6  ;;  %v1429_v9 = vpop.f32.mrf.mxu0  ;;  %v427_v5 = vld [vmem:[%s4780_s26 + $0x638] sm:$0xff] }
 0x21e   : > { %v1430_v11 = vadd.f32 %v5241_v34, %v1429_v9 }
 0x21f   : > { %4383 = vmatmul.msk.f32.gmra.mxu2 %vm489_vm1, %v422_v7  ;;  %4623 = vmatmul.msk.f32.gmra.mxu3 %vm2308_vm3, %v2224_v8  ;;  %v3200_v12 = vpop.f32.mrf.mxu1  ;;  %v299_v8 = vld [vmem:[%s4780_s26 + $0x238] sm:$0xff] }
 0x220   : > { %v2097_v13 = vmax.f32 %v1430_v11, 0.0  ;;  %v3201_v14 = vadd.f32 %v5395_v36, %v3200_v12  ;;  %4255 = vmatmul.msk.f32.gmra.mxu0 %vm489_vm1, %v294_v10 }
 0x222   : > { %v1813_v15 = vpop.f32.mrf.mxu2  ;;  %v3581_v16 = vpop.f32.mrf.mxu3  ;;  %3901 = vst.msk [vmem:[%s4994_s10 + $0x110] sm:$0xff] %vm3866_vm4, %v3201_v14  ;;  %4496 = vmatmul.msk.f32.gmra.mxu1 %vm2308_vm3, %v2097_v13 }
 0x223   : > { %v1814_v17 = vadd.f32 %v5241_v34, %v1813_v15  ;;  %v3582_v18 = vadd.f32 %v5395_v36, %v3581_v16 }
 0x225   : > { %v2225_v20 = vmax.f32 %v1814_v17, 0.0  ;;  %4028 = vst.msk [vmem:[%s4994_s10 + $0x508] sm:$0xff] %vm3866_vm4, %v3582_v18  ;;  %v1432_v21 = vpop.f32.mrf.mxu0  ;;  %v428_v17 = vld [vmem:[%s4780_s26 + $0x640] sm:$0xff] }
 0x226   : > { %v1433_v23 = vadd.f32 %v5241_v34, %v1432_v21 }
 0x227   : > { %4384 = vmatmul.msk.f32.gmra.mxu2 %vm489_vm1, %v423_v19  ;;  %4624 = vmatmul.msk.f32.gmra.mxu3 %vm2308_vm3, %v2225_v20  ;;  %v3203_v24 = vpop.f32.mrf.mxu1  ;;  %v300_v20 = vld [vmem:[%s4780_s26 + $0x240] sm:$0xff] }
 0x228   : > { %v2098_v25 = vmax.f32 %v1433_v23, 0.0  ;;  %v3204_v26 = vadd.f32 %v5395_v36, %v3203_v24  ;;  %4256 = vmatmul.msk.f32.gmra.mxu0 %vm489_vm1, %v295_v22 }
 0x22a   : > { %v1816_v27 = vpop.f32.mrf.mxu2  ;;  %v3584_v28 = vpop.f32.mrf.mxu3  ;;  %3902 = vst.msk [vmem:[%s4994_s10 + $0x118] sm:$0xff] %vm3866_vm4, %v3204_v26  ;;  %4497 = vmatmul.msk.f32.gmra.mxu1 %vm2308_vm3, %v2098_v25 }
 0x22b   : > { %v1817_v29 = vadd.f32 %v5241_v34, %v1816_v27  ;;  %v3585_v30 = vadd.f32 %v5395_v36, %v3584_v28 }
 0x22d   : > { %v2226_v32 = vmax.f32 %v1817_v29, 0.0  ;;  %4029 = vst.msk [vmem:[%s4994_s10 + $0x510] sm:$0xff] %vm3866_vm4, %v3585_v30  ;;  %v1435_v33 = vpop.f32.mrf.mxu0  ;;  %v429_v29 = vld [vmem:[%s4780_s26 + $0x648] sm:$0xff] }
 0x22e   : > { %v1436_v37 = vadd.f32 %v5241_v34, %v1435_v33 }
 0x22f   : > { %4385 = vmatmul.msk.f32.gmra.mxu2 %vm489_vm1, %v424_v31  ;;  %4625 = vmatmul.msk.f32.gmra.mxu3 %vm2308_vm3, %v2226_v32  ;;  %v3206_v38 = vpop.f32.mrf.mxu1  ;;  %v301_v32 = vld [vmem:[%s4780_s26 + $0x248] sm:$0xff] }
 0x230   : > { %v2099_v39 = vmax.f32 %v1436_v37, 0.0  ;;  %v3207_v40 = vadd.f32 %v5395_v36, %v3206_v38  ;;  %4257 = vmatmul.msk.f32.gmra.mxu0 %vm489_vm1, %v296_v35 }
 0x232   : > { %v1819_v41 = vpop.f32.mrf.mxu2  ;;  %v3587_v42 = vpop.f32.mrf.mxu3  ;;  %3903 = vst.msk [vmem:[%s4994_s10 + $0x120] sm:$0xff] %vm3866_vm4, %v3207_v40  ;;  %4498 = vmatmul.msk.f32.gmra.mxu1 %vm2308_vm3, %v2099_v39 }
 0x233   : > { %v1820_v43 = vadd.f32 %v5241_v34, %v1819_v41  ;;  %v3588_v44 = vadd.f32 %v5395_v36, %v3587_v42 }
 0x235   : > { %v2227_v46 = vmax.f32 %v1820_v43, 0.0  ;;  %4030 = vst.msk [vmem:[%s4994_s10 + $0x518] sm:$0xff] %vm3866_vm4, %v3588_v44  ;;  %v1438_v47 = vpop.f32.mrf.mxu0  ;;  %v430_v43 = vld [vmem:[%s4780_s26 + $0x650] sm:$0xff] }
 0x236   : > { %v1439_v49 = vadd.f32 %v5241_v34, %v1438_v47 }
 0x237   : > { %4386 = vmatmul.msk.f32.gmra.mxu2 %vm489_vm1, %v425_v45  ;;  %4626 = vmatmul.msk.f32.gmra.mxu3 %vm2308_vm3, %v2227_v46  ;;  %v3209_v50 = vpop.f32.mrf.mxu1  ;;  %v302_v46 = vld [vmem:[%s4780_s26 + $0x250] sm:$0xff] }
 0x238   : > { %v2100_v51 = vmax.f32 %v1439_v49, 0.0  ;;  %v3210_v52 = vadd.f32 %v5395_v36, %v3209_v50  ;;  %4258 = vmatmul.msk.f32.gmra.mxu0 %vm489_vm1, %v297_v48 }
 0x23a   : > { %v1822_v53 = vpop.f32.mrf.mxu2  ;;  %v3590_v54 = vpop.f32.mrf.mxu3  ;;  %3904 = vst.msk [vmem:[%s4994_s10 + $0x128] sm:$0xff] %vm3866_vm4, %v3210_v52  ;;  %4499 = vmatmul.msk.f32.gmra.mxu1 %vm2308_vm3, %v2100_v51 }
 0x23b   : > { %v1823_v55 = vadd.f32 %v5241_v34, %v1822_v53  ;;  %v3591_v56 = vadd.f32 %v5395_v36, %v3590_v54 }
 0x23d   : > { %v2228_v58 = vmax.f32 %v1823_v55, 0.0  ;;  %4031 = vst.msk [vmem:[%s4994_s10 + $0x520] sm:$0xff] %vm3866_vm4, %v3591_v56  ;;  %v1441_v59 = vpop.f32.mrf.mxu0  ;;  %v431_v55 = vld [vmem:[%s4780_s26 + $0x658] sm:$0xff] }
 0x23e   : > { %v1442_v61 = vadd.f32 %v5241_v34, %v1441_v59 }
 0x23f   : > { %4387 = vmatmul.msk.f32.gmra.mxu2 %vm489_vm1, %v426_v57  ;;  %4627 = vmatmul.msk.f32.gmra.mxu3 %vm2308_vm3, %v2228_v58  ;;  %v3212_v62 = vpop.f32.mrf.mxu1  ;;  %v303_v58 = vld [vmem:[%s4780_s26 + $0x258] sm:$0xff] }
 0x240   : > { %v2101_v63 = vmax.f32 %v1442_v61, 0.0  ;;  %v3213_v0 = vadd.f32 %v5395_v36, %v3212_v62  ;;  %4259 = vmatmul.msk.f32.gmra.mxu0 %vm489_vm1, %v298_v60 }
 0x242   : > { %v1825_v1 = vpop.f32.mrf.mxu2  ;;  %v3593_v2 = vpop.f32.mrf.mxu3  ;;  %3905 = vst.msk [vmem:[%s4994_s10 + $0x130] sm:$0xff] %vm3866_vm4, %v3213_v0  ;;  %4500 = vmatmul.msk.f32.gmra.mxu1 %vm2308_vm3, %v2101_v63 }
 0x243   : > { %v1826_v3 = vadd.f32 %v5241_v34, %v1825_v1  ;;  %v3594_v4 = vadd.f32 %v5395_v36, %v3593_v2 }
 0x245   : > { %v2229_v6 = vmax.f32 %v1826_v3, 0.0  ;;  %4032 = vst.msk [vmem:[%s4994_s10 + $0x528] sm:$0xff] %vm3866_vm4, %v3594_v4  ;;  %v1444_v7 = vpop.f32.mrf.mxu0  ;;  %v432_v3 = vld [vmem:[%s4780_s26 + $0x660] sm:$0xff] }
 0x246   : > { %v1445_v9 = vadd.f32 %v5241_v34, %v1444_v7 }
 0x247   : > { %4388 = vmatmul.msk.f32.gmra.mxu2 %vm489_vm1, %v427_v5  ;;  %4628 = vmatmul.msk.f32.gmra.mxu3 %vm2308_vm3, %v2229_v6  ;;  %v3215_v10 = vpop.f32.mrf.mxu1  ;;  %v304_v6 = vld [vmem:[%s4780_s26 + $0x260] sm:$0xff] }
 0x248   : > { %v2102_v11 = vmax.f32 %v1445_v9, 0.0  ;;  %v3216_v12 = vadd.f32 %v5395_v36, %v3215_v10  ;;  %4260 = vmatmul.msk.f32.gmra.mxu0 %vm489_vm1, %v299_v8 }
 0x24a   : > { %v1828_v13 = vpop.f32.mrf.mxu2  ;;  %v3596_v14 = vpop.f32.mrf.mxu3  ;;  %3906 = vst.msk [vmem:[%s4994_s10 + $0x138] sm:$0xff] %vm3866_vm4, %v3216_v12  ;;  %4501 = vmatmul.msk.f32.gmra.mxu1 %vm2308_vm3, %v2102_v11 }
 0x24b   : > { %v1829_v15 = vadd.f32 %v5241_v34, %v1828_v13  ;;  %v3597_v16 = vadd.f32 %v5395_v36, %v3596_v14 }
 0x24d   : > { %v2230_v18 = vmax.f32 %v1829_v15, 0.0  ;;  %4033 = vst.msk [vmem:[%s4994_s10 + $0x530] sm:$0xff] %vm3866_vm4, %v3597_v16  ;;  %v1447_v19 = vpop.f32.mrf.mxu0  ;;  %v433_v15 = vld [vmem:[%s4780_s26 + $0x668] sm:$0xff] }
 0x24e   : > { %v1448_v21 = vadd.f32 %v5241_v34, %v1447_v19 }
 0x24f   : > { %4389 = vmatmul.msk.f32.gmra.mxu2 %vm489_vm1, %v428_v17  ;;  %4629 = vmatmul.msk.f32.gmra.mxu3 %vm2308_vm3, %v2230_v18  ;;  %v3218_v22 = vpop.f32.mrf.mxu1  ;;  %v305_v18 = vld [vmem:[%s4780_s26 + $0x268] sm:$0xff] }
 0x250   : > { %v2103_v23 = vmax.f32 %v1448_v21, 0.0  ;;  %v3219_v24 = vadd.f32 %v5395_v36, %v3218_v22  ;;  %4261 = vmatmul.msk.f32.gmra.mxu0 %vm489_vm1, %v300_v20 }
 0x252   : > { %v1831_v25 = vpop.f32.mrf.mxu2  ;;  %v3599_v26 = vpop.f32.mrf.mxu3  ;;  %3907 = vst.msk [vmem:[%s4994_s10 + $0x140] sm:$0xff] %vm3866_vm4, %v3219_v24  ;;  %4502 = vmatmul.msk.f32.gmra.mxu1 %vm2308_vm3, %v2103_v23 }
 0x253   : > { %v1832_v27 = vadd.f32 %v5241_v34, %v1831_v25  ;;  %v3600_v28 = vadd.f32 %v5395_v36, %v3599_v26 }
 0x255   : > { %v2231_v30 = vmax.f32 %v1832_v27, 0.0  ;;  %4034 = vst.msk [vmem:[%s4994_s10 + $0x538] sm:$0xff] %vm3866_vm4, %v3600_v28  ;;  %v1450_v31 = vpop.f32.mrf.mxu0  ;;  %v434_v27 = vld [vmem:[%s4780_s26 + $0x670] sm:$0xff] }
 0x256   : > { %v1451_v33 = vadd.f32 %v5241_v34, %v1450_v31 }
 0x257   : > { %4390 = vmatmul.msk.f32.gmra.mxu2 %vm489_vm1, %v429_v29  ;;  %4630 = vmatmul.msk.f32.gmra.mxu3 %vm2308_vm3, %v2231_v30  ;;  %v3221_v35 = vpop.f32.mrf.mxu1  ;;  %v306_v30 = vld [vmem:[%s4780_s26 + $0x270] sm:$0xff] }
 0x258   : > { %v2104_v37 = vmax.f32 %v1451_v33, 0.0  ;;  %v3222_v38 = vadd.f32 %v5395_v36, %v3221_v35  ;;  %4262 = vmatmul.msk.f32.gmra.mxu0 %vm489_vm1, %v301_v32 }
 0x25a   : > { %v1834_v39 = vpop.f32.mrf.mxu2  ;;  %v3602_v40 = vpop.f32.mrf.mxu3  ;;  %3908 = vst.msk [vmem:[%s4994_s10 + $0x148] sm:$0xff] %vm3866_vm4, %v3222_v38  ;;  %4503 = vmatmul.msk.f32.gmra.mxu1 %vm2308_vm3, %v2104_v37 }
 0x25b   : > { %v1835_v41 = vadd.f32 %v5241_v34, %v1834_v39  ;;  %v3603_v42 = vadd.f32 %v5395_v36, %v3602_v40 }
 0x25d   : > { %v2232_v44 = vmax.f32 %v1835_v41, 0.0  ;;  %4035 = vst.msk [vmem:[%s4994_s10 + $0x540] sm:$0xff] %vm3866_vm4, %v3603_v42  ;;  %v1453_v45 = vpop.f32.mrf.mxu0  ;;  %v435_v41 = vld [vmem:[%s4780_s26 + $0x678] sm:$0xff] }
 0x25e   : > { %v1454_v47 = vadd.f32 %v5241_v34, %v1453_v45 }
 0x25f   : > { %4391 = vmatmul.msk.f32.gmra.mxu2 %vm489_vm1, %v430_v43  ;;  %4631 = vmatmul.msk.f32.gmra.mxu3 %vm2308_vm3, %v2232_v44  ;;  %v3224_v48 = vpop.f32.mrf.mxu1  ;;  %v307_v44 = vld [vmem:[%s4780_s26 + $0x278] sm:$0xff] }
 0x260   : > { %v2105_v49 = vmax.f32 %v1454_v47, 0.0  ;;  %v3225_v50 = vadd.f32 %v5395_v36, %v3224_v48  ;;  %4263 = vmatmul.msk.f32.gmra.mxu0 %vm489_vm1, %v302_v46 }
 0x262   : > { %v1837_v51 = vpop.f32.mrf.mxu2  ;;  %v3605_v52 = vpop.f32.mrf.mxu3  ;;  %3909 = vst.msk [vmem:[%s4994_s10 + $0x150] sm:$0xff] %vm3866_vm4, %v3225_v50  ;;  %4504 = vmatmul.msk.f32.gmra.mxu1 %vm2308_vm3, %v2105_v49 }
 0x263   : > { %v1838_v53 = vadd.f32 %v5241_v34, %v1837_v51  ;;  %v3606_v54 = vadd.f32 %v5395_v36, %v3605_v52 }
 0x265   : > { %v2233_v56 = vmax.f32 %v1838_v53, 0.0  ;;  %4036 = vst.msk [vmem:[%s4994_s10 + $0x548] sm:$0xff] %vm3866_vm4, %v3606_v54  ;;  %v1456_v57 = vpop.f32.mrf.mxu0  ;;  %v436_v53 = vld [vmem:[%s4780_s26 + $0x680] sm:$0xff] }
 0x266   : > { %v1457_v59 = vadd.f32 %v5241_v34, %v1456_v57 }
 0x267   : > { %4392 = vmatmul.msk.f32.gmra.mxu2 %vm489_vm1, %v431_v55  ;;  %4632 = vmatmul.msk.f32.gmra.mxu3 %vm2308_vm3, %v2233_v56  ;;  %v3227_v60 = vpop.f32.mrf.mxu1  ;;  %v308_v56 = vld [vmem:[%s4780_s26 + $0x280] sm:$0xff] }
 0x268   : > { %v2106_v61 = vmax.f32 %v1457_v59, 0.0  ;;  %v3228_v62 = vadd.f32 %v5395_v36, %v3227_v60  ;;  %4264 = vmatmul.msk.f32.gmra.mxu0 %vm489_vm1, %v303_v58 }
 0x26a   : > { %v1840_v63 = vpop.f32.mrf.mxu2  ;;  %v3608_v0 = vpop.f32.mrf.mxu3  ;;  %3910 = vst.msk [vmem:[%s4994_s10 + $0x158] sm:$0xff] %vm3866_vm4, %v3228_v62  ;;  %4505 = vmatmul.msk.f32.gmra.mxu1 %vm2308_vm3, %v2106_v61 }
 0x26b   : > { %v1841_v1 = vadd.f32 %v5241_v34, %v1840_v63  ;;  %v3609_v2 = vadd.f32 %v5395_v36, %v3608_v0 }
 0x26d   : > { %v2234_v4 = vmax.f32 %v1841_v1, 0.0  ;;  %4037 = vst.msk [vmem:[%s4994_s10 + $0x550] sm:$0xff] %vm3866_vm4, %v3609_v2  ;;  %v1459_v5 = vpop.f32.mrf.mxu0  ;;  %v437_v1 = vld [vmem:[%s4780_s26 + $0x688] sm:$0xff] }
 0x26e   : > { %v1460_v7 = vadd.f32 %v5241_v34, %v1459_v5 }
 0x26f   : > { %4393 = vmatmul.msk.f32.gmra.mxu2 %vm489_vm1, %v432_v3  ;;  %4633 = vmatmul.msk.f32.gmra.mxu3 %vm2308_vm3, %v2234_v4  ;;  %v3230_v8 = vpop.f32.mrf.mxu1  ;;  %v309_v4 = vld [vmem:[%s4780_s26 + $0x288] sm:$0xff] }
 0x270   : > { %v2107_v9 = vmax.f32 %v1460_v7, 0.0  ;;  %v3231_v10 = vadd.f32 %v5395_v36, %v3230_v8  ;;  %4265 = vmatmul.msk.f32.gmra.mxu0 %vm489_vm1, %v304_v6 }
 0x272   : > { %v1843_v11 = vpop.f32.mrf.mxu2  ;;  %v3611_v12 = vpop.f32.mrf.mxu3  ;;  %3911 = vst.msk [vmem:[%s4994_s10 + $0x160] sm:$0xff] %vm3866_vm4, %v3231_v10  ;;  %4506 = vmatmul.msk.f32.gmra.mxu1 %vm2308_vm3, %v2107_v9 }
 0x273   : > { %v1844_v13 = vadd.f32 %v5241_v34, %v1843_v11  ;;  %v3612_v14 = vadd.f32 %v5395_v36, %v3611_v12 }
 0x275   : > { %v2235_v16 = vmax.f32 %v1844_v13, 0.0  ;;  %4038 = vst.msk [vmem:[%s4994_s10 + $0x558] sm:$0xff] %vm3866_vm4, %v3612_v14  ;;  %v1462_v17 = vpop.f32.mrf.mxu0  ;;  %v438_v13 = vld [vmem:[%s4780_s26 + $0x690] sm:$0xff] }
 0x276   : > { %v1463_v19 = vadd.f32 %v5241_v34, %v1462_v17 }
 0x277   : > { %4394 = vmatmul.msk.f32.gmra.mxu2 %vm489_vm1, %v433_v15  ;;  %4634 = vmatmul.msk.f32.gmra.mxu3 %vm2308_vm3, %v2235_v16  ;;  %v3233_v20 = vpop.f32.mrf.mxu1  ;;  %v310_v16 = vld [vmem:[%s4780_s26 + $0x290] sm:$0xff] }
 0x278   : > { %v2108_v21 = vmax.f32 %v1463_v19, 0.0  ;;  %v3234_v22 = vadd.f32 %v5395_v36, %v3233_v20  ;;  %4266 = vmatmul.msk.f32.gmra.mxu0 %vm489_vm1, %v305_v18 }
 0x27a   : > { %v1846_v23 = vpop.f32.mrf.mxu2  ;;  %v3614_v24 = vpop.f32.mrf.mxu3  ;;  %3912 = vst.msk [vmem:[%s4994_s10 + $0x168] sm:$0xff] %vm3866_vm4, %v3234_v22  ;;  %4507 = vmatmul.msk.f32.gmra.mxu1 %vm2308_vm3, %v2108_v21 }
 0x27b   : > { %v1847_v25 = vadd.f32 %v5241_v34, %v1846_v23  ;;  %v3615_v26 = vadd.f32 %v5395_v36, %v3614_v24 }
 0x27d   : > { %v2236_v28 = vmax.f32 %v1847_v25, 0.0  ;;  %4039 = vst.msk [vmem:[%s4994_s10 + $0x560] sm:$0xff] %vm3866_vm4, %v3615_v26  ;;  %v1465_v29 = vpop.f32.mrf.mxu0  ;;  %v439_v25 = vld [vmem:[%s4780_s26 + $0x698] sm:$0xff] }
 0x27e   : > { %v1466_v31 = vadd.f32 %v5241_v34, %v1465_v29  ;;  %v5657_v34 = vld [vmem:[%s6634_s2] ss:$0 sm:$0xff] }
 0x27f   : > { %4395 = vmatmul.msk.f32.gmra.mxu2 %vm489_vm1, %v434_v27  ;;  %4635 = vmatmul.msk.f32.gmra.mxu3 %vm2308_vm3, %v2236_v28  ;;  %v3236_v32 = vpop.f32.mrf.mxu1  ;;  %v311_v28 = vld [vmem:[%s4780_s26 + $0x298] sm:$0xff] }
 0x280   : > { %v2109_v33 = vmax.f32 %v1466_v31, 0.0  ;;  %v3237_v35 = vadd.f32 %v5395_v36, %v3236_v32  ;;  %4267 = vmatmul.msk.f32.gmra.mxu0 %vm489_vm1, %v306_v30 }
 0x282   : > { %v1849_v37 = vpop.f32.mrf.mxu2  ;;  %v3617_v38 = vpop.f32.mrf.mxu3  ;;  %3913 = vst.msk [vmem:[%s4994_s10 + $0x170] sm:$0xff] %vm3866_vm4, %v3237_v35  ;;  %4508 = vmatmul.msk.f32.gmra.mxu1 %vm2308_vm3, %v2109_v33 }
 0x283   : > { %v1850_v39 = vadd.f32 %v5657_v34, %v1849_v37  ;;  %v3618_v40 = vadd.f32 %v5395_v36, %v3617_v38 }
 0x285   : > { %v2237_v42 = vmax.f32 %v1850_v39, 0.0  ;;  %4040 = vst.msk [vmem:[%s4994_s10 + $0x568] sm:$0xff] %vm3866_vm4, %v3618_v40  ;;  %v1468_v43 = vpop.f32.mrf.mxu0  ;;  %v440_v39 = vld [vmem:[%s4780_s26 + $0x6a0] sm:$0xff] }
 0x286   : > { %v1469_v45 = vadd.f32 %v5657_v34, %v1468_v43 }
 0x287   : > { %4396 = vmatmul.msk.f32.gmra.mxu2 %vm489_vm1, %v435_v41  ;;  %4636 = vmatmul.msk.f32.gmra.mxu3 %vm2308_vm3, %v2237_v42  ;;  %v3239_v46 = vpop.f32.mrf.mxu1  ;;  %v312_v42 = vld [vmem:[%s4780_s26 + $0x2a0] sm:$0xff] }
 0x288   : > { %v2110_v47 = vmax.f32 %v1469_v45, 0.0  ;;  %v3240_v48 = vadd.f32 %v5395_v36, %v3239_v46  ;;  %4268 = vmatmul.msk.f32.gmra.mxu0 %vm489_vm1, %v307_v44 }
 0x28a   : > { %v1852_v49 = vpop.f32.mrf.mxu2  ;;  %v3620_v50 = vpop.f32.mrf.mxu3  ;;  %3914 = vst.msk [vmem:[%s4994_s10 + $0x178] sm:$0xff] %vm3866_vm4, %v3240_v48  ;;  %4509 = vmatmul.msk.f32.gmra.mxu1 %vm2308_vm3, %v2110_v47 }
 0x28b   : > { %v1853_v51 = vadd.f32 %v5657_v34, %v1852_v49  ;;  %v3621_v52 = vadd.f32 %v5395_v36, %v3620_v50 }
 0x28d   : > { %v2238_v54 = vmax.f32 %v1853_v51, 0.0  ;;  %4041 = vst.msk [vmem:[%s4994_s10 + $0x570] sm:$0xff] %vm3866_vm4, %v3621_v52  ;;  %v1471_v55 = vpop.f32.mrf.mxu0  ;;  %v441_v51 = vld [vmem:[%s4780_s26 + $0x6a8] sm:$0xff] }
 0x28e   : > { %v1472_v57 = vadd.f32 %v5657_v34, %v1471_v55 }
 0x28f   : > { %4397 = vmatmul.msk.f32.gmra.mxu2 %vm489_vm1, %v436_v53  ;;  %4637 = vmatmul.msk.f32.gmra.mxu3 %vm2308_vm3, %v2238_v54  ;;  %v3242_v58 = vpop.f32.mrf.mxu1  ;;  %v313_v54 = vld [vmem:[%s4780_s26 + $0x2a8] sm:$0xff] }
 0x290   : > { %v2111_v59 = vmax.f32 %v1472_v57, 0.0  ;;  %v3243_v60 = vadd.f32 %v5395_v36, %v3242_v58  ;;  %4269 = vmatmul.msk.f32.gmra.mxu0 %vm489_vm1, %v308_v56 }
 0x292   : > { %v1855_v61 = vpop.f32.mrf.mxu2  ;;  %v3623_v62 = vpop.f32.mrf.mxu3  ;;  %3915 = vst.msk [vmem:[%s4994_s10 + $0x180] sm:$0xff] %vm3866_vm4, %v3243_v60  ;;  %4510 = vmatmul.msk.f32.gmra.mxu1 %vm2308_vm3, %v2111_v59 }
 0x293   : > { %v1856_v63 = vadd.f32 %v5657_v34, %v1855_v61  ;;  %v3624_v0 = vadd.f32 %v5395_v36, %v3623_v62 }
 0x295   : > { %v2239_v2 = vmax.f32 %v1856_v63, 0.0  ;;  %4042 = vst.msk [vmem:[%s4994_s10 + $0x578] sm:$0xff] %vm3866_vm4, %v3624_v0  ;;  %v1474_v3 = vpop.f32.mrf.mxu0  ;;  %v442_v63 = vld [vmem:[%s4780_s26 + $0x6b0] sm:$0xff] }
 0x296   : > { %v1475_v5 = vadd.f32 %v5657_v34, %v1474_v3 }
 0x297   : > { %4398 = vmatmul.msk.f32.gmra.mxu2 %vm489_vm1, %v437_v1  ;;  %4638 = vmatmul.msk.f32.gmra.mxu3 %vm2308_vm3, %v2239_v2  ;;  %v3245_v6 = vpop.f32.mrf.mxu1  ;;  %v314_v2 = vld [vmem:[%s4780_s26 + $0x2b0] sm:$0xff] }
 0x298   : > { %v2112_v7 = vmax.f32 %v1475_v5, 0.0  ;;  %v3246_v8 = vadd.f32 %v5395_v36, %v3245_v6  ;;  %4270 = vmatmul.msk.f32.gmra.mxu0 %vm489_vm1, %v309_v4 }
 0x29a   : > { %v1858_v9 = vpop.f32.mrf.mxu2  ;;  %v3626_v10 = vpop.f32.mrf.mxu3  ;;  %3916 = vst.msk [vmem:[%s4994_s10 + $0x188] sm:$0xff] %vm3866_vm4, %v3246_v8  ;;  %4511 = vmatmul.msk.f32.gmra.mxu1 %vm2308_vm3, %v2112_v7 }
 0x29b   : > { %v1859_v11 = vadd.f32 %v5657_v34, %v1858_v9  ;;  %v3627_v12 = vadd.f32 %v5395_v36, %v3626_v10 }
 0x29d   : > { %v2240_v14 = vmax.f32 %v1859_v11, 0.0  ;;  %4043 = vst.msk [vmem:[%s4994_s10 + $0x580] sm:$0xff] %vm3866_vm4, %v3627_v12  ;;  %v1477_v15 = vpop.f32.mrf.mxu0  ;;  %v443_v11 = vld [vmem:[%s4780_s26 + $0x6b8] sm:$0xff] }
 0x29e   : > { %v1478_v17 = vadd.f32 %v5657_v34, %v1477_v15 }
 0x29f   : > { %4399 = vmatmul.msk.f32.gmra.mxu2 %vm489_vm1, %v438_v13  ;;  %4639 = vmatmul.msk.f32.gmra.mxu3 %vm2308_vm3, %v2240_v14  ;;  %v3248_v18 = vpop.f32.mrf.mxu1  ;;  %v315_v14 = vld [vmem:[%s4780_s26 + $0x2b8] sm:$0xff] }
 0x2a0   : > { %v2113_v19 = vmax.f32 %v1478_v17, 0.0  ;;  %v3249_v20 = vadd.f32 %v5395_v36, %v3248_v18  ;;  %4271 = vmatmul.msk.f32.gmra.mxu0 %vm489_vm1, %v310_v16 }
 0x2a2   : > { %v1861_v21 = vpop.f32.mrf.mxu2  ;;  %v3629_v22 = vpop.f32.mrf.mxu3  ;;  %3917 = vst.msk [vmem:[%s4994_s10 + $0x190] sm:$0xff] %vm3866_vm4, %v3249_v20  ;;  %4512 = vmatmul.msk.f32.gmra.mxu1 %vm2308_vm3, %v2113_v19 }
 0x2a3   : > { %v1862_v23 = vadd.f32 %v5657_v34, %v1861_v21  ;;  %v3630_v24 = vadd.f32 %v5395_v36, %v3629_v22 }
 0x2a5   : > { %v2241_v26 = vmax.f32 %v1862_v23, 0.0  ;;  %4044 = vst.msk [vmem:[%s4994_s10 + $0x588] sm:$0xff] %vm3866_vm4, %v3630_v24  ;;  %v1480_v27 = vpop.f32.mrf.mxu0  ;;  %v444_v23 = vld [vmem:[%s4780_s26 + $0x6c0] sm:$0xff] }
 0x2a6   : > { %v1481_v29 = vadd.f32 %v5657_v34, %v1480_v27 }
 0x2a7   : > { %4400 = vmatmul.msk.f32.gmra.mxu2 %vm489_vm1, %v439_v25  ;;  %4640 = vmatmul.msk.f32.gmra.mxu3 %vm2308_vm3, %v2241_v26  ;;  %v3251_v30 = vpop.f32.mrf.mxu1  ;;  %v316_v26 = vld [vmem:[%s4780_s26 + $0x2c0] sm:$0xff] }
 0x2a8   : > { %v2114_v31 = vmax.f32 %v1481_v29, 0.0  ;;  %v3252_v32 = vadd.f32 %v5395_v36, %v3251_v30  ;;  %4272 = vmatmul.msk.f32.gmra.mxu0 %vm489_vm1, %v311_v28 }
 0x2aa   : > { %v1864_v33 = vpop.f32.mrf.mxu2  ;;  %v3632_v35 = vpop.f32.mrf.mxu3  ;;  %3918 = vst.msk [vmem:[%s4994_s10 + $0x198] sm:$0xff] %vm3866_vm4, %v3252_v32  ;;  %4513 = vmatmul.msk.f32.gmra.mxu1 %vm2308_vm3, %v2114_v31 }
 0x2ab   : > { %v1865_v37 = vadd.f32 %v5657_v34, %v1864_v33  ;;  %v3633_v38 = vadd.f32 %v5395_v36, %v3632_v35 }
 0x2ad   : > { %v2242_v40 = vmax.f32 %v1865_v37, 0.0  ;;  %4045 = vst.msk [vmem:[%s4994_s10 + $0x590] sm:$0xff] %vm3866_vm4, %v3633_v38  ;;  %v1483_v41 = vpop.f32.mrf.mxu0  ;;  %v445_v37 = vld [vmem:[%s4780_s26 + $0x6c8] sm:$0xff] }
 0x2ae   : > { %v1484_v43 = vadd.f32 %v5657_v34, %v1483_v41 }
 0x2af   : > { %4401 = vmatmul.msk.f32.gmra.mxu2 %vm489_vm1, %v440_v39  ;;  %4641 = vmatmul.msk.f32.gmra.mxu3 %vm2308_vm3, %v2242_v40  ;;  %v3254_v44 = vpop.f32.mrf.mxu1  ;;  %v317_v40 = vld [vmem:[%s4780_s26 + $0x2c8] sm:$0xff] }
 0x2b0   : > { %v2115_v45 = vmax.f32 %v1484_v43, 0.0  ;;  %v3255_v46 = vadd.f32 %v5395_v36, %v3254_v44  ;;  %4273 = vmatmul.msk.f32.gmra.mxu0 %vm489_vm1, %v312_v42 }
 0x2b2   : > { %v1867_v47 = vpop.f32.mrf.mxu2  ;;  %v3635_v48 = vpop.f32.mrf.mxu3  ;;  %3919 = vst.msk [vmem:[%s4994_s10 + $0x1a0] sm:$0xff] %vm3866_vm4, %v3255_v46  ;;  %4514 = vmatmul.msk.f32.gmra.mxu1 %vm2308_vm3, %v2115_v45 }
 0x2b3   : > { %v1868_v49 = vadd.f32 %v5657_v34, %v1867_v47  ;;  %v3636_v50 = vadd.f32 %v5395_v36, %v3635_v48 }
 0x2b5   : > { %v2243_v52 = vmax.f32 %v1868_v49, 0.0  ;;  %4046 = vst.msk [vmem:[%s4994_s10 + $0x598] sm:$0xff] %vm3866_vm4, %v3636_v50  ;;  %v1486_v53 = vpop.f32.mrf.mxu0  ;;  %v446_v49 = vld [vmem:[%s4780_s26 + $0x6d0] sm:$0xff] }
 0x2b6   : > { %v1487_v55 = vadd.f32 %v5657_v34, %v1486_v53 }
 0x2b7   : > { %4402 = vmatmul.msk.f32.gmra.mxu2 %vm489_vm1, %v441_v51  ;;  %4642 = vmatmul.msk.f32.gmra.mxu3 %vm2308_vm3, %v2243_v52  ;;  %v3257_v56 = vpop.f32.mrf.mxu1  ;;  %v318_v52 = vld [vmem:[%s4780_s26 + $0x2d0] sm:$0xff] }
 0x2b8   : > { %v2116_v57 = vmax.f32 %v1487_v55, 0.0  ;;  %v3258_v58 = vadd.f32 %v5395_v36, %v3257_v56  ;;  %4274 = vmatmul.msk.f32.gmra.mxu0 %vm489_vm1, %v313_v54 }
 0x2ba   : > { %v1870_v59 = vpop.f32.mrf.mxu2  ;;  %v3638_v60 = vpop.f32.mrf.mxu3  ;;  %3920 = vst.msk [vmem:[%s4994_s10 + $0x1a8] sm:$0xff] %vm3866_vm4, %v3258_v58  ;;  %4515 = vmatmul.msk.f32.gmra.mxu1 %vm2308_vm3, %v2116_v57 }
 0x2bb   : > { %v1871_v61 = vadd.f32 %v5657_v34, %v1870_v59  ;;  %v3639_v62 = vadd.f32 %v5395_v36, %v3638_v60 }
 0x2bd   : > { %v2244_v0 = vmax.f32 %v1871_v61, 0.0  ;;  %4047 = vst.msk [vmem:[%s4994_s10 + $0x5a0] sm:$0xff] %vm3866_vm4, %v3639_v62  ;;  %v1489_v1 = vpop.f32.mrf.mxu0  ;;  %v447_v61 = vld [vmem:[%s4780_s26 + $0x6d8] sm:$0xff] }
 0x2be   : > { %v1490_v3 = vadd.f32 %v5657_v34, %v1489_v1 }
 0x2bf   : > { %4403 = vmatmul.msk.f32.gmra.mxu2 %vm489_vm1, %v442_v63  ;;  %4643 = vmatmul.msk.f32.gmra.mxu3 %vm2308_vm3, %v2244_v0  ;;  %v3260_v4 = vpop.f32.mrf.mxu1  ;;  %v319_v0 = vld [vmem:[%s4780_s26 + $0x2d8] sm:$0xff] }
 0x2c0   : > { %v2117_v5 = vmax.f32 %v1490_v3, 0.0  ;;  %v3261_v6 = vadd.f32 %v5395_v36, %v3260_v4  ;;  %4275 = vmatmul.msk.f32.gmra.mxu0 %vm489_vm1, %v314_v2 }
 0x2c2   : > { %v1873_v7 = vpop.f32.mrf.mxu2  ;;  %v3641_v8 = vpop.f32.mrf.mxu3  ;;  %3921 = vst.msk [vmem:[%s4994_s10 + $0x1b0] sm:$0xff] %vm3866_vm4, %v3261_v6  ;;  %4516 = vmatmul.msk.f32.gmra.mxu1 %vm2308_vm3, %v2117_v5 }
 0x2c3   : > { %v1874_v9 = vadd.f32 %v5657_v34, %v1873_v7  ;;  %v3642_v10 = vadd.f32 %v5395_v36, %v3641_v8 }
 0x2c5   : > { %v2245_v12 = vmax.f32 %v1874_v9, 0.0  ;;  %4048 = vst.msk [vmem:[%s4994_s10 + $0x5a8] sm:$0xff] %vm3866_vm4, %v3642_v10  ;;  %v1492_v13 = vpop.f32.mrf.mxu0  ;;  %v448_v9 = vld [vmem:[%s4780_s26 + $0x6e0] sm:$0xff] }
 0x2c6   : > { %v1493_v15 = vadd.f32 %v5657_v34, %v1492_v13 }
 0x2c7   : > { %4404 = vmatmul.msk.f32.gmra.mxu2 %vm489_vm1, %v443_v11  ;;  %4644 = vmatmul.msk.f32.gmra.mxu3 %vm2308_vm3, %v2245_v12  ;;  %v3263_v16 = vpop.f32.mrf.mxu1  ;;  %v320_v12 = vld [vmem:[%s4780_s26 + $0x2e0] sm:$0xff] }
 0x2c8   : > { %v2118_v17 = vmax.f32 %v1493_v15, 0.0  ;;  %v3264_v18 = vadd.f32 %v5395_v36, %v3263_v16  ;;  %4276 = vmatmul.msk.f32.gmra.mxu0 %vm489_vm1, %v315_v14 }
 0x2ca   : > { %v1876_v19 = vpop.f32.mrf.mxu2  ;;  %v3644_v20 = vpop.f32.mrf.mxu3  ;;  %3922 = vst.msk [vmem:[%s4994_s10 + $0x1b8] sm:$0xff] %vm3866_vm4, %v3264_v18  ;;  %4517 = vmatmul.msk.f32.gmra.mxu1 %vm2308_vm3, %v2118_v17 }
 0x2cb   : > { %v1877_v21 = vadd.f32 %v5657_v34, %v1876_v19  ;;  %v3645_v22 = vadd.f32 %v5395_v36, %v3644_v20 }
 0x2cd   : > { %v2246_v24 = vmax.f32 %v1877_v21, 0.0  ;;  %4049 = vst.msk [vmem:[%s4994_s10 + $0x5b0] sm:$0xff] %vm3866_vm4, %v3645_v22  ;;  %v1495_v25 = vpop.f32.mrf.mxu0  ;;  %v449_v21 = vld [vmem:[%s4780_s26 + $0x6e8] sm:$0xff] }
 0x2ce   : > { %v1496_v27 = vadd.f32 %v5657_v34, %v1495_v25 }
 0x2cf   : > { %4405 = vmatmul.msk.f32.gmra.mxu2 %vm489_vm1, %v444_v23  ;;  %4645 = vmatmul.msk.f32.gmra.mxu3 %vm2308_vm3, %v2246_v24  ;;  %v3266_v28 = vpop.f32.mrf.mxu1  ;;  %v321_v24 = vld [vmem:[%s4780_s26 + $0x2e8] sm:$0xff] }
 0x2d0   : > { %v2119_v29 = vmax.f32 %v1496_v27, 0.0  ;;  %v3267_v30 = vadd.f32 %v5395_v36, %v3266_v28  ;;  %4277 = vmatmul.msk.f32.gmra.mxu0 %vm489_vm1, %v316_v26 }
 0x2d2   : > { %v1879_v31 = vpop.f32.mrf.mxu2  ;;  %v3647_v32 = vpop.f32.mrf.mxu3  ;;  %3923 = vst.msk [vmem:[%s4994_s10 + $0x1c0] sm:$0xff] %vm3866_vm4, %v3267_v30  ;;  %4518 = vmatmul.msk.f32.gmra.mxu1 %vm2308_vm3, %v2119_v29 }
 0x2d3   : > { %v1880_v33 = vadd.f32 %v5657_v34, %v1879_v31  ;;  %v3648_v35 = vadd.f32 %v5395_v36, %v3647_v32  ;;  %v5811_v36 = vld [vmem:[%s6636_s4] ss:$0 sm:$0xff] }
 0x2d5   : > { %v2247_v38 = vmax.f32 %v1880_v33, 0.0  ;;  %4050 = vst.msk [vmem:[%s4994_s10 + $0x5b8] sm:$0xff] %vm3866_vm4, %v3648_v35  ;;  %v1498_v39 = vpop.f32.mrf.mxu0  ;;  %v450_v33 = vld [vmem:[%s4780_s26 + $0x6f0] sm:$0xff] }
 0x2d6   : > { %v1499_v41 = vadd.f32 %v5657_v34, %v1498_v39 }
 0x2d7   : > { %4406 = vmatmul.msk.f32.gmra.mxu2 %vm489_vm1, %v445_v37  ;;  %4646 = vmatmul.msk.f32.gmra.mxu3 %vm2308_vm3, %v2247_v38  ;;  %v3269_v42 = vpop.f32.mrf.mxu1  ;;  %v322_v38 = vld [vmem:[%s4780_s26 + $0x2f0] sm:$0xff] }
 0x2d8   : > { %v2120_v43 = vmax.f32 %v1499_v41, 0.0  ;;  %v3270_v44 = vadd.f32 %v5811_v36, %v3269_v42  ;;  %4278 = vmatmul.msk.f32.gmra.mxu0 %vm489_vm1, %v317_v40 }
 0x2da   : > { %v1882_v45 = vpop.f32.mrf.mxu2  ;;  %v3650_v46 = vpop.f32.mrf.mxu3  ;;  %3924 = vst.msk [vmem:[%s4994_s10 + $0x1c8] sm:$0xff] %vm3866_vm4, %v3270_v44  ;;  %4519 = vmatmul.msk.f32.gmra.mxu1 %vm2308_vm3, %v2120_v43 }
 0x2db   : > { %v1883_v47 = vadd.f32 %v5657_v34, %v1882_v45  ;;  %v3651_v48 = vadd.f32 %v5811_v36, %v3650_v46 }
 0x2dd   : > { %v2248_v50 = vmax.f32 %v1883_v47, 0.0  ;;  %4051 = vst.msk [vmem:[%s4994_s10 + $0x5c0] sm:$0xff] %vm3866_vm4, %v3651_v48  ;;  %v1501_v51 = vpop.f32.mrf.mxu0  ;;  %v451_v47 = vld [vmem:[%s4780_s26 + $0x6f8] sm:$0xff] }
 0x2de   : > { %v1502_v53 = vadd.f32 %v5657_v34, %v1501_v51 }
 0x2df   : > { %4407 = vmatmul.msk.f32.gmra.mxu2 %vm489_vm1, %v446_v49  ;;  %4647 = vmatmul.msk.f32.gmra.mxu3 %vm2308_vm3, %v2248_v50  ;;  %v3272_v54 = vpop.f32.mrf.mxu1  ;;  %v323_v50 = vld [vmem:[%s4780_s26 + $0x2f8] sm:$0xff] }
 0x2e0   : > { %v2121_v55 = vmax.f32 %v1502_v53, 0.0  ;;  %v3273_v56 = vadd.f32 %v5811_v36, %v3272_v54  ;;  %4279 = vmatmul.msk.f32.gmra.mxu0 %vm489_vm1, %v318_v52 }
 0x2e2   : > { %v1885_v57 = vpop.f32.mrf.mxu2  ;;  %v3653_v58 = vpop.f32.mrf.mxu3  ;;  %3925 = vst.msk [vmem:[%s4994_s10 + $0x1d0] sm:$0xff] %vm3866_vm4, %v3273_v56  ;;  %4520 = vmatmul.msk.f32.gmra.mxu1 %vm2308_vm3, %v2121_v55 }
 0x2e3   : > { %v1886_v59 = vadd.f32 %v5657_v34, %v1885_v57  ;;  %v3654_v60 = vadd.f32 %v5811_v36, %v3653_v58 }
 0x2e5   : > { %v2249_v62 = vmax.f32 %v1886_v59, 0.0  ;;  %4052 = vst.msk [vmem:[%s4994_s10 + $0x5c8] sm:$0xff] %vm3866_vm4, %v3654_v60  ;;  %v1504_v63 = vpop.f32.mrf.mxu0  ;;  %v452_v59 = vld [vmem:[%s4780_s26 + $0x700] sm:$0xff] }
 0x2e6   : > { %v1505_v1 = vadd.f32 %v5657_v34, %v1504_v63 }
 0x2e7   : > { %4408 = vmatmul.msk.f32.gmra.mxu2 %vm489_vm1, %v447_v61  ;;  %4648 = vmatmul.msk.f32.gmra.mxu3 %vm2308_vm3, %v2249_v62  ;;  %v3275_v2 = vpop.f32.mrf.mxu1  ;;  %v324_v62 = vld [vmem:[%s4780_s26 + $0x300] sm:$0xff] }
 0x2e8   : > { %v2122_v3 = vmax.f32 %v1505_v1, 0.0  ;;  %v3276_v4 = vadd.f32 %v5811_v36, %v3275_v2  ;;  %4280 = vmatmul.msk.f32.gmra.mxu0 %vm489_vm1, %v319_v0 }
 0x2ea   : > { %v1888_v5 = vpop.f32.mrf.mxu2  ;;  %v3656_v6 = vpop.f32.mrf.mxu3  ;;  %3926 = vst.msk [vmem:[%s4994_s10 + $0x1d8] sm:$0xff] %vm3866_vm4, %v3276_v4  ;;  %4521 = vmatmul.msk.f32.gmra.mxu1 %vm2308_vm3, %v2122_v3 }
 0x2eb   : > { %v1889_v7 = vadd.f32 %v5657_v34, %v1888_v5  ;;  %v3657_v8 = vadd.f32 %v5811_v36, %v3656_v6 }
 0x2ed   : > { %v2250_v10 = vmax.f32 %v1889_v7, 0.0  ;;  %4053 = vst.msk [vmem:[%s4994_s10 + $0x5d0] sm:$0xff] %vm3866_vm4, %v3657_v8  ;;  %v1507_v11 = vpop.f32.mrf.mxu0  ;;  %v453_v7 = vld [vmem:[%s4780_s26 + $0x708] sm:$0xff] }
 0x2ee   : > { %v1508_v13 = vadd.f32 %v5657_v34, %v1507_v11 }
 0x2ef   : > { %4409 = vmatmul.msk.f32.gmra.mxu2 %vm489_vm1, %v448_v9  ;;  %4649 = vmatmul.msk.f32.gmra.mxu3 %vm2308_vm3, %v2250_v10  ;;  %v3278_v14 = vpop.f32.mrf.mxu1  ;;  %v325_v10 = vld [vmem:[%s4780_s26 + $0x308] sm:$0xff] }
 0x2f0   : > { %v2123_v15 = vmax.f32 %v1508_v13, 0.0  ;;  %v3279_v16 = vadd.f32 %v5811_v36, %v3278_v14  ;;  %4281 = vmatmul.msk.f32.gmra.mxu0 %vm489_vm1, %v320_v12 }
 0x2f2   : > { %v1891_v17 = vpop.f32.mrf.mxu2  ;;  %v3659_v18 = vpop.f32.mrf.mxu3  ;;  %3927 = vst.msk [vmem:[%s4994_s10 + $0x1e0] sm:$0xff] %vm3866_vm4, %v3279_v16  ;;  %4522 = vmatmul.msk.f32.gmra.mxu1 %vm2308_vm3, %v2123_v15 }
 0x2f3   : > { %v1892_v19 = vadd.f32 %v5657_v34, %v1891_v17  ;;  %v3660_v20 = vadd.f32 %v5811_v36, %v3659_v18 }
 0x2f5   : > { %v2251_v22 = vmax.f32 %v1892_v19, 0.0  ;;  %4054 = vst.msk [vmem:[%s4994_s10 + $0x5d8] sm:$0xff] %vm3866_vm4, %v3660_v20  ;;  %v1510_v23 = vpop.f32.mrf.mxu0  ;;  %v454_v19 = vld [vmem:[%s4780_s26 + $0x710] sm:$0xff] }
 0x2f6   : > { %v1511_v25 = vadd.f32 %v5657_v34, %v1510_v23 }
 0x2f7   : > { %4410 = vmatmul.msk.f32.gmra.mxu2 %vm489_vm1, %v449_v21  ;;  %4650 = vmatmul.msk.f32.gmra.mxu3 %vm2308_vm3, %v2251_v22  ;;  %v3281_v26 = vpop.f32.mrf.mxu1  ;;  %v326_v22 = vld [vmem:[%s4780_s26 + $0x310] sm:$0xff] }
 0x2f8   : > { %v2124_v27 = vmax.f32 %v1511_v25, 0.0  ;;  %v3282_v28 = vadd.f32 %v5811_v36, %v3281_v26  ;;  %4282 = vmatmul.msk.f32.gmra.mxu0 %vm489_vm1, %v321_v24 }
 0x2fa   : > { %v1894_v29 = vpop.f32.mrf.mxu2  ;;  %v3662_v30 = vpop.f32.mrf.mxu3  ;;  %3928 = vst.msk [vmem:[%s4994_s10 + $0x1e8] sm:$0xff] %vm3866_vm4, %v3282_v28  ;;  %4523 = vmatmul.msk.f32.gmra.mxu1 %vm2308_vm3, %v2124_v27 }
 0x2fb   : > { %v1895_v31 = vadd.f32 %v5657_v34, %v1894_v29  ;;  %v3663_v32 = vadd.f32 %v5811_v36, %v3662_v30 }
 0x2fd   : > { %v2252_v35 = vmax.f32 %v1895_v31, 0.0  ;;  %4055 = vst.msk [vmem:[%s4994_s10 + $0x5e0] sm:$0xff] %vm3866_vm4, %v3663_v32  ;;  %v1513_v37 = vpop.f32.mrf.mxu0  ;;  %v455_v31 = vld [vmem:[%s4780_s26 + $0x718] sm:$0xff] }
 0x2fe   : > { %v1514_v39 = vadd.f32 %v5657_v34, %v1513_v37 }
 0x2ff   : > { %4411 = vmatmul.msk.f32.gmra.mxu2 %vm489_vm1, %v450_v33  ;;  %4651 = vmatmul.msk.f32.gmra.mxu3 %vm2308_vm3, %v2252_v35  ;;  %v3284_v40 = vpop.f32.mrf.mxu1  ;;  %v327_v35 = vld [vmem:[%s4780_s26 + $0x318] sm:$0xff] }
 0x300   : > { %v2125_v41 = vmax.f32 %v1514_v39, 0.0  ;;  %v3285_v42 = vadd.f32 %v5811_v36, %v3284_v40  ;;  %4283 = vmatmul.msk.f32.gmra.mxu0 %vm489_vm1, %v322_v38 }
 0x302   : > { %v1897_v43 = vpop.f32.mrf.mxu2  ;;  %v3665_v44 = vpop.f32.mrf.mxu3  ;;  %3929 = vst.msk [vmem:[%s4994_s10 + $0x1f0] sm:$0xff] %vm3866_vm4, %v3285_v42  ;;  %4524 = vmatmul.msk.f32.gmra.mxu1 %vm2308_vm3, %v2125_v41 }
 0x303   : > { %v1898_v45 = vadd.f32 %v5657_v34, %v1897_v43  ;;  %v3666_v46 = vadd.f32 %v5811_v36, %v3665_v44 }
 0x305   : > { %v2253_v48 = vmax.f32 %v1898_v45, 0.0  ;;  %4056 = vst.msk [vmem:[%s4994_s10 + $0x5e8] sm:$0xff] %vm3866_vm4, %v3666_v46  ;;  %v1516_v49 = vpop.f32.mrf.mxu0  ;;  %v456_v45 = vld [vmem:[%s4780_s26 + $0x720] sm:$0xff] }
 0x306   : > { %v1517_v51 = vadd.f32 %v5657_v34, %v1516_v49 }
 0x307   : > { %4412 = vmatmul.msk.f32.gmra.mxu2 %vm489_vm1, %v451_v47  ;;  %4652 = vmatmul.msk.f32.gmra.mxu3 %vm2308_vm3, %v2253_v48  ;;  %v3287_v52 = vpop.f32.mrf.mxu1  ;;  %v328_v48 = vld [vmem:[%s4780_s26 + $0x320] sm:$0xff] }
 0x308   : > { %v2126_v53 = vmax.f32 %v1517_v51, 0.0  ;;  %v3288_v54 = vadd.f32 %v5811_v36, %v3287_v52  ;;  %4284 = vmatmul.msk.f32.gmra.mxu0 %vm489_vm1, %v323_v50 }
 0x30a   : > { %v1900_v55 = vpop.f32.mrf.mxu2  ;;  %v3668_v56 = vpop.f32.mrf.mxu3  ;;  %3930 = vst.msk [vmem:[%s4994_s10 + $0x1f8] sm:$0xff] %vm3866_vm4, %v3288_v54  ;;  %4525 = vmatmul.msk.f32.gmra.mxu1 %vm2308_vm3, %v2126_v53 }
 0x30b   : > { %v1901_v57 = vadd.f32 %v5657_v34, %v1900_v55  ;;  %v3669_v58 = vadd.f32 %v5811_v36, %v3668_v56 }
 0x30d   : > { %v2254_v60 = vmax.f32 %v1901_v57, 0.0  ;;  %4057 = vst.msk [vmem:[%s4994_s10 + $0x5f0] sm:$0xff] %vm3866_vm4, %v3669_v58  ;;  %v1519_v61 = vpop.f32.mrf.mxu0  ;;  %v457_v57 = vld [vmem:[%s4780_s26 + $0x728] sm:$0xff] }
 0x30e   : > { %v1520_v63 = vadd.f32 %v5657_v34, %v1519_v61 }
 0x30f   : > { %4413 = vmatmul.msk.f32.gmra.mxu2 %vm489_vm1, %v452_v59  ;;  %4653 = vmatmul.msk.f32.gmra.mxu3 %vm2308_vm3, %v2254_v60  ;;  %v3290_v0 = vpop.f32.mrf.mxu1  ;;  %v329_v60 = vld [vmem:[%s4780_s26 + $0x328] sm:$0xff] }
 0x310   : > { %v2127_v1 = vmax.f32 %v1520_v63, 0.0  ;;  %v3291_v2 = vadd.f32 %v5811_v36, %v3290_v0  ;;  %4285 = vmatmul.msk.f32.gmra.mxu0 %vm489_vm1, %v324_v62 }
 0x312   : > { %v1903_v3 = vpop.f32.mrf.mxu2  ;;  %v3671_v4 = vpop.f32.mrf.mxu3  ;;  %3931 = vst.msk [vmem:[%s4994_s10 + $0x200] sm:$0xff] %vm3866_vm4, %v3291_v2  ;;  %4526 = vmatmul.msk.f32.gmra.mxu1 %vm2308_vm3, %v2127_v1 }
 0x313   : > { %v1904_v5 = vadd.f32 %v5657_v34, %v1903_v3  ;;  %v3672_v6 = vadd.f32 %v5811_v36, %v3671_v4 }
 0x315   : > { %v2255_v8 = vmax.f32 %v1904_v5, 0.0  ;;  %4058 = vst.msk [vmem:[%s4994_s10 + $0x5f8] sm:$0xff] %vm3866_vm4, %v3672_v6  ;;  %v1522_v9 = vpop.f32.mrf.mxu0  ;;  %v458_v5 = vld [vmem:[%s4780_s26 + $0x730] sm:$0xff] }
 0x316   : > { %v1523_v11 = vadd.f32 %v5657_v34, %v1522_v9 }
 0x317   : > { %4414 = vmatmul.msk.f32.gmra.mxu2 %vm489_vm1, %v453_v7  ;;  %4654 = vmatmul.msk.f32.gmra.mxu3 %vm2308_vm3, %v2255_v8  ;;  %v3293_v12 = vpop.f32.mrf.mxu1  ;;  %v330_v8 = vld [vmem:[%s4780_s26 + $0x330] sm:$0xff] }
 0x318   : > { %v2128_v13 = vmax.f32 %v1523_v11, 0.0  ;;  %v3294_v14 = vadd.f32 %v5811_v36, %v3293_v12  ;;  %4286 = vmatmul.msk.f32.gmra.mxu0 %vm489_vm1, %v325_v10 }
 0x31a   : > { %v1906_v15 = vpop.f32.mrf.mxu2  ;;  %v3674_v16 = vpop.f32.mrf.mxu3  ;;  %3932 = vst.msk [vmem:[%s4994_s10 + $0x208] sm:$0xff] %vm3866_vm4, %v3294_v14  ;;  %4527 = vmatmul.msk.f32.gmra.mxu1 %vm2308_vm3, %v2128_v13 }
 0x31b   : > { %v1907_v17 = vadd.f32 %v5657_v34, %v1906_v15  ;;  %v3675_v18 = vadd.f32 %v5811_v36, %v3674_v16 }
 0x31d   : > { %v2256_v20 = vmax.f32 %v1907_v17, 0.0  ;;  %4059 = vst.msk [vmem:[%s4994_s10 + $0x600] sm:$0xff] %vm3866_vm4, %v3675_v18  ;;  %v1525_v21 = vpop.f32.mrf.mxu0  ;;  %v459_v17 = vld [vmem:[%s4780_s26 + $0x738] sm:$0xff] }
 0x31e   : > { %v1526_v23 = vadd.f32 %v5657_v34, %v1525_v21 }
 0x31f   : > { %4415 = vmatmul.msk.f32.gmra.mxu2 %vm489_vm1, %v454_v19  ;;  %4655 = vmatmul.msk.f32.gmra.mxu3 %vm2308_vm3, %v2256_v20  ;;  %v3296_v24 = vpop.f32.mrf.mxu1  ;;  %v331_v20 = vld [vmem:[%s4780_s26 + $0x338] sm:$0xff] }
 0x320   : > { %v2129_v25 = vmax.f32 %v1526_v23, 0.0  ;;  %v3297_v26 = vadd.f32 %v5811_v36, %v3296_v24  ;;  %4287 = vmatmul.msk.f32.gmra.mxu0 %vm489_vm1, %v326_v22 }
 0x322   : > { %v1909_v27 = vpop.f32.mrf.mxu2  ;;  %v3677_v28 = vpop.f32.mrf.mxu3  ;;  %3933 = vst.msk [vmem:[%s4994_s10 + $0x210] sm:$0xff] %vm3866_vm4, %v3297_v26  ;;  %4528 = vmatmul.msk.f32.gmra.mxu1 %vm2308_vm3, %v2129_v25 }
 0x323   : > { %v1910_v29 = vadd.f32 %v5657_v34, %v1909_v27  ;;  %v3678_v30 = vadd.f32 %v5811_v36, %v3677_v28 }
 0x325   : > { %v2257_v32 = vmax.f32 %v1910_v29, 0.0  ;;  %4060 = vst.msk [vmem:[%s4994_s10 + $0x608] sm:$0xff] %vm3866_vm4, %v3678_v30  ;;  %v1528_v33 = vpop.f32.mrf.mxu0  ;;  %v460_v29 = vld [vmem:[%s4780_s26 + $0x740] sm:$0xff] }
 0x326   : > { %v1529_v37 = vadd.f32 %v5657_v34, %v1528_v33 }
 0x327   : > { %4416 = vmatmul.msk.f32.gmra.mxu2 %vm489_vm1, %v455_v31  ;;  %4656 = vmatmul.msk.f32.gmra.mxu3 %vm2308_vm3, %v2257_v32  ;;  %v3299_v38 = vpop.f32.mrf.mxu1  ;;  %v332_v32 = vld [vmem:[%s4780_s26 + $0x340] sm:$0xff] }
 0x328   : > { %v2130_v39 = vmax.f32 %v1529_v37, 0.0  ;;  %v3300_v40 = vadd.f32 %v5811_v36, %v3299_v38  ;;  %4288 = vmatmul.msk.f32.gmra.mxu0 %vm489_vm1, %v327_v35 }
 0x32a   : > { %v1912_v41 = vpop.f32.mrf.mxu2  ;;  %v3680_v42 = vpop.f32.mrf.mxu3  ;;  %3934 = vst.msk [vmem:[%s4994_s10 + $0x218] sm:$0xff] %vm3866_vm4, %v3300_v40  ;;  %4529 = vmatmul.msk.f32.gmra.mxu1 %vm2308_vm3, %v2130_v39 }
 0x32b   : > { %v1913_v43 = vadd.f32 %v5657_v34, %v1912_v41  ;;  %v3681_v44 = vadd.f32 %v5811_v36, %v3680_v42 }
 0x32d   : > { %v2258_v46 = vmax.f32 %v1913_v43, 0.0  ;;  %4061 = vst.msk [vmem:[%s4994_s10 + $0x610] sm:$0xff] %vm3866_vm4, %v3681_v44  ;;  %v1531_v47 = vpop.f32.mrf.mxu0  ;;  %v461_v43 = vld [vmem:[%s4780_s26 + $0x748] sm:$0xff] }
 0x32e   : > { %v1532_v49 = vadd.f32 %v5657_v34, %v1531_v47 }
 0x32f   : > { %4417 = vmatmul.msk.f32.gmra.mxu2 %vm489_vm1, %v456_v45  ;;  %4657 = vmatmul.msk.f32.gmra.mxu3 %vm2308_vm3, %v2258_v46  ;;  %v3302_v50 = vpop.f32.mrf.mxu1  ;;  %v333_v46 = vld [vmem:[%s4780_s26 + $0x348] sm:$0xff] }
 0x330   : > { %v2131_v51 = vmax.f32 %v1532_v49, 0.0  ;;  %v3303_v52 = vadd.f32 %v5811_v36, %v3302_v50  ;;  %4289 = vmatmul.msk.f32.gmra.mxu0 %vm489_vm1, %v328_v48 }
 0x332   : > { %v1915_v53 = vpop.f32.mrf.mxu2  ;;  %v3683_v54 = vpop.f32.mrf.mxu3  ;;  %3935 = vst.msk [vmem:[%s4994_s10 + $0x220] sm:$0xff] %vm3866_vm4, %v3303_v52  ;;  %4530 = vmatmul.msk.f32.gmra.mxu1 %vm2308_vm3, %v2131_v51 }
 0x333   : > { %v1916_v55 = vadd.f32 %v5657_v34, %v1915_v53  ;;  %v3684_v56 = vadd.f32 %v5811_v36, %v3683_v54 }
 0x335   : > { %v2259_v58 = vmax.f32 %v1916_v55, 0.0  ;;  %4062 = vst.msk [vmem:[%s4994_s10 + $0x618] sm:$0xff] %vm3866_vm4, %v3684_v56  ;;  %v1534_v59 = vpop.f32.mrf.mxu0  ;;  %v462_v55 = vld [vmem:[%s4780_s26 + $0x750] sm:$0xff] }
 0x336   : > { %v1535_v61 = vadd.f32 %v5657_v34, %v1534_v59 }
 0x337   : > { %4418 = vmatmul.msk.f32.gmra.mxu2 %vm489_vm1, %v457_v57  ;;  %4658 = vmatmul.msk.f32.gmra.mxu3 %vm2308_vm3, %v2259_v58  ;;  %v3305_v62 = vpop.f32.mrf.mxu1  ;;  %v334_v58 = vld [vmem:[%s4780_s26 + $0x350] sm:$0xff] }
 0x338   : > { %v2132_v63 = vmax.f32 %v1535_v61, 0.0  ;;  %v3306_v0 = vadd.f32 %v5811_v36, %v3305_v62  ;;  %4290 = vmatmul.msk.f32.gmra.mxu0 %vm489_vm1, %v329_v60 }
 0x33a   : > { %v1918_v1 = vpop.f32.mrf.mxu2  ;;  %v3686_v2 = vpop.f32.mrf.mxu3  ;;  %3936 = vst.msk [vmem:[%s4994_s10 + $0x228] sm:$0xff] %vm3866_vm4, %v3306_v0  ;;  %4531 = vmatmul.msk.f32.gmra.mxu1 %vm2308_vm3, %v2132_v63 }
 0x33b   : > { %v1919_v3 = vadd.f32 %v5657_v34, %v1918_v1  ;;  %v3687_v4 = vadd.f32 %v5811_v36, %v3686_v2 }
 0x33d   : > { %v2260_v6 = vmax.f32 %v1919_v3, 0.0  ;;  %4063 = vst.msk [vmem:[%s4994_s10 + $0x620] sm:$0xff] %vm3866_vm4, %v3687_v4  ;;  %v1537_v7 = vpop.f32.mrf.mxu0  ;;  %v463_v3 = vld [vmem:[%s4780_s26 + $0x758] sm:$0xff] }
 0x33e   : > { %v1538_v9 = vadd.f32 %v5657_v34, %v1537_v7 }
 0x33f   : > { %4419 = vmatmul.msk.f32.gmra.mxu2 %vm489_vm1, %v458_v5  ;;  %4659 = vmatmul.msk.f32.gmra.mxu3 %vm2308_vm3, %v2260_v6  ;;  %v3308_v10 = vpop.f32.mrf.mxu1  ;;  %v335_v6 = vld [vmem:[%s4780_s26 + $0x358] sm:$0xff] }
 0x340   : > { %v2133_v11 = vmax.f32 %v1538_v9, 0.0  ;;  %v3309_v12 = vadd.f32 %v5811_v36, %v3308_v10  ;;  %4291 = vmatmul.msk.f32.gmra.mxu0 %vm489_vm1, %v330_v8 }
 0x342   : > { %v1921_v13 = vpop.f32.mrf.mxu2  ;;  %v3689_v14 = vpop.f32.mrf.mxu3  ;;  %3937 = vst.msk [vmem:[%s4994_s10 + $0x230] sm:$0xff] %vm3866_vm4, %v3309_v12  ;;  %4532 = vmatmul.msk.f32.gmra.mxu1 %vm2308_vm3, %v2133_v11 }
 0x343   : > { %v1922_v15 = vadd.f32 %v5657_v34, %v1921_v13  ;;  %v3690_v16 = vadd.f32 %v5811_v36, %v3689_v14 }
 0x345   : > { %v2261_v18 = vmax.f32 %v1922_v15, 0.0  ;;  %4064 = vst.msk [vmem:[%s4994_s10 + $0x628] sm:$0xff] %vm3866_vm4, %v3690_v16  ;;  %v1540_v19 = vpop.f32.mrf.mxu0  ;;  %v464_v15 = vld [vmem:[%s4780_s26 + $0x760] sm:$0xff] }
 0x346   : > { %v1541_v21 = vadd.f32 %v5657_v34, %v1540_v19 }
 0x347   : > { %4420 = vmatmul.msk.f32.gmra.mxu2 %vm489_vm1, %v459_v17  ;;  %4660 = vmatmul.msk.f32.gmra.mxu3 %vm2308_vm3, %v2261_v18  ;;  %v3311_v22 = vpop.f32.mrf.mxu1  ;;  %v336_v18 = vld [vmem:[%s4780_s26 + $0x360] sm:$0xff] }
 0x348   : > { %v2134_v23 = vmax.f32 %v1541_v21, 0.0  ;;  %v3312_v24 = vadd.f32 %v5811_v36, %v3311_v22  ;;  %4292 = vmatmul.msk.f32.gmra.mxu0 %vm489_vm1, %v331_v20 }
 0x34a   : > { %v1924_v25 = vpop.f32.mrf.mxu2  ;;  %v3692_v26 = vpop.f32.mrf.mxu3  ;;  %3938 = vst.msk [vmem:[%s4994_s10 + $0x238] sm:$0xff] %vm3866_vm4, %v3312_v24  ;;  %4533 = vmatmul.msk.f32.gmra.mxu1 %vm2308_vm3, %v2134_v23 }
 0x34b   : > { %v1925_v27 = vadd.f32 %v5657_v34, %v1924_v25  ;;  %v3693_v28 = vadd.f32 %v5811_v36, %v3692_v26 }
 0x34d   : > { %v2262_v30 = vmax.f32 %v1925_v27, 0.0  ;;  %4065 = vst.msk [vmem:[%s4994_s10 + $0x630] sm:$0xff] %vm3866_vm4, %v3693_v28  ;;  %v1543_v31 = vpop.f32.mrf.mxu0  ;;  %v465_v27 = vld [vmem:[%s4780_s26 + $0x768] sm:$0xff] }
 0x34e   : > { %v1544_v33 = vadd.f32 %v5657_v34, %v1543_v31 }
 0x34f   : > { %4421 = vmatmul.msk.f32.gmra.mxu2 %vm489_vm1, %v460_v29  ;;  %4661 = vmatmul.msk.f32.gmra.mxu3 %vm2308_vm3, %v2262_v30  ;;  %v3314_v35 = vpop.f32.mrf.mxu1  ;;  %v337_v30 = vld [vmem:[%s4780_s26 + $0x368] sm:$0xff] }
 0x350   : > { %v2135_v37 = vmax.f32 %v1544_v33, 0.0  ;;  %v3315_v38 = vadd.f32 %v5811_v36, %v3314_v35  ;;  %4293 = vmatmul.msk.f32.gmra.mxu0 %vm489_vm1, %v332_v32 }
 0x352   : > { %v1927_v39 = vpop.f32.mrf.mxu2  ;;  %v3695_v40 = vpop.f32.mrf.mxu3  ;;  %3939 = vst.msk [vmem:[%s4994_s10 + $0x240] sm:$0xff] %vm3866_vm4, %v3315_v38  ;;  %4534 = vmatmul.msk.f32.gmra.mxu1 %vm2308_vm3, %v2135_v37 }
 0x353   : > { %v1928_v41 = vadd.f32 %v5657_v34, %v1927_v39  ;;  %v3696_v42 = vadd.f32 %v5811_v36, %v3695_v40 }
 0x355   : > { %v2263_v44 = vmax.f32 %v1928_v41, 0.0  ;;  %4066 = vst.msk [vmem:[%s4994_s10 + $0x638] sm:$0xff] %vm3866_vm4, %v3696_v42  ;;  %v1546_v45 = vpop.f32.mrf.mxu0  ;;  %v466_v41 = vld [vmem:[%s4780_s26 + $0x770] sm:$0xff] }
 0x356   : > { %v1547_v47 = vadd.f32 %v5657_v34, %v1546_v45 }
 0x357   : > { %4422 = vmatmul.msk.f32.gmra.mxu2 %vm489_vm1, %v461_v43  ;;  %4662 = vmatmul.msk.f32.gmra.mxu3 %vm2308_vm3, %v2263_v44  ;;  %v3317_v48 = vpop.f32.mrf.mxu1  ;;  %v338_v44 = vld [vmem:[%s4780_s26 + $0x370] sm:$0xff] }
 0x358   : > { %v2136_v49 = vmax.f32 %v1547_v47, 0.0  ;;  %v3318_v50 = vadd.f32 %v5811_v36, %v3317_v48  ;;  %4294 = vmatmul.msk.f32.gmra.mxu0 %vm489_vm1, %v333_v46 }
 0x35a   : > { %v1930_v51 = vpop.f32.mrf.mxu2  ;;  %v3698_v52 = vpop.f32.mrf.mxu3  ;;  %3940 = vst.msk [vmem:[%s4994_s10 + $0x248] sm:$0xff] %vm3866_vm4, %v3318_v50  ;;  %4535 = vmatmul.msk.f32.gmra.mxu1 %vm2308_vm3, %v2136_v49 }
 0x35b   : > { %v1931_v53 = vadd.f32 %v5657_v34, %v1930_v51  ;;  %v3699_v54 = vadd.f32 %v5811_v36, %v3698_v52 }
 0x35d   : > { %v2264_v56 = vmax.f32 %v1931_v53, 0.0  ;;  %4067 = vst.msk [vmem:[%s4994_s10 + $0x640] sm:$0xff] %vm3866_vm4, %v3699_v54  ;;  %v1549_v57 = vpop.f32.mrf.mxu0  ;;  %v467_v53 = vld [vmem:[%s4780_s26 + $0x778] sm:$0xff] }
 0x35e   : > { %v1550_v59 = vadd.f32 %v5657_v34, %v1549_v57 }
 0x35f   : > { %4423 = vmatmul.msk.f32.gmra.mxu2 %vm489_vm1, %v462_v55  ;;  %4663 = vmatmul.msk.f32.gmra.mxu3 %vm2308_vm3, %v2264_v56  ;;  %v3320_v60 = vpop.f32.mrf.mxu1  ;;  %v339_v56 = vld [vmem:[%s4780_s26 + $0x378] sm:$0xff] }
 0x360   : > { %v2137_v61 = vmax.f32 %v1550_v59, 0.0  ;;  %v3321_v62 = vadd.f32 %v5811_v36, %v3320_v60  ;;  %4295 = vmatmul.msk.f32.gmra.mxu0 %vm489_vm1, %v334_v58 }
 0x362   : > { %v1933_v63 = vpop.f32.mrf.mxu2  ;;  %v3701_v0 = vpop.f32.mrf.mxu3  ;;  %3941 = vst.msk [vmem:[%s4994_s10 + $0x250] sm:$0xff] %vm3866_vm4, %v3321_v62  ;;  %4536 = vmatmul.msk.f32.gmra.mxu1 %vm2308_vm3, %v2137_v61 }
 0x363   : > { %v1934_v1 = vadd.f32 %v5657_v34, %v1933_v63  ;;  %v3702_v2 = vadd.f32 %v5811_v36, %v3701_v0 }
 0x365   : > { %v2265_v4 = vmax.f32 %v1934_v1, 0.0  ;;  %4068 = vst.msk [vmem:[%s4994_s10 + $0x648] sm:$0xff] %vm3866_vm4, %v3702_v2  ;;  %v1552_v5 = vpop.f32.mrf.mxu0  ;;  %v468_v1 = vld [vmem:[%s4780_s26 + $0x780] sm:$0xff] }
 0x366   : > { %v1553_v7 = vadd.f32 %v5657_v34, %v1552_v5  ;;  %v6073_v34 = vld [vmem:[%s6634_s2] ss:$0 sm:$0xff] }
 0x367   : > { %4424 = vmatmul.msk.f32.gmra.mxu2 %vm489_vm1, %v463_v3  ;;  %4664 = vmatmul.msk.f32.gmra.mxu3 %vm2308_vm3, %v2265_v4  ;;  %v3323_v8 = vpop.f32.mrf.mxu1  ;;  %v340_v4 = vld [vmem:[%s4780_s26 + $0x380] sm:$0xff] }
 0x368   : > { %v2138_v9 = vmax.f32 %v1553_v7, 0.0  ;;  %v3324_v10 = vadd.f32 %v5811_v36, %v3323_v8  ;;  %4296 = vmatmul.msk.f32.gmra.mxu0 %vm489_vm1, %v335_v6 }
 0x36a   : > { %v1936_v11 = vpop.f32.mrf.mxu2  ;;  %v3704_v12 = vpop.f32.mrf.mxu3  ;;  %3942 = vst.msk [vmem:[%s4994_s10 + $0x258] sm:$0xff] %vm3866_vm4, %v3324_v10  ;;  %4537 = vmatmul.msk.f32.gmra.mxu1 %vm2308_vm3, %v2138_v9 }
 0x36b   : > { %v1937_v13 = vadd.f32 %v6073_v34, %v1936_v11  ;;  %v3705_v14 = vadd.f32 %v5811_v36, %v3704_v12 }
 0x36d   : > { %v2266_v16 = vmax.f32 %v1937_v13, 0.0  ;;  %4069 = vst.msk [vmem:[%s4994_s10 + $0x650] sm:$0xff] %vm3866_vm4, %v3705_v14  ;;  %v1555_v17 = vpop.f32.mrf.mxu0  ;;  %v469_v13 = vld [vmem:[%s4780_s26 + $0x788] sm:$0xff] }
 0x36e   : > { %v1556_v19 = vadd.f32 %v6073_v34, %v1555_v17 }
 0x36f   : > { %4425 = vmatmul.msk.f32.gmra.mxu2 %vm489_vm1, %v464_v15  ;;  %4665 = vmatmul.msk.f32.gmra.mxu3 %vm2308_vm3, %v2266_v16  ;;  %v3326_v20 = vpop.f32.mrf.mxu1  ;;  %v341_v16 = vld [vmem:[%s4780_s26 + $0x388] sm:$0xff] }
 0x370   : > { %v2139_v21 = vmax.f32 %v1556_v19, 0.0  ;;  %v3327_v22 = vadd.f32 %v5811_v36, %v3326_v20  ;;  %4297 = vmatmul.msk.f32.gmra.mxu0 %vm489_vm1, %v336_v18 }
 0x372   : > { %v1939_v23 = vpop.f32.mrf.mxu2  ;;  %v3707_v24 = vpop.f32.mrf.mxu3  ;;  %3943 = vst.msk [vmem:[%s4994_s10 + $0x260] sm:$0xff] %vm3866_vm4, %v3327_v22  ;;  %4538 = vmatmul.msk.f32.gmra.mxu1 %vm2308_vm3, %v2139_v21 }
 0x373   : > { %v1940_v25 = vadd.f32 %v6073_v34, %v1939_v23  ;;  %v3708_v26 = vadd.f32 %v5811_v36, %v3707_v24 }
 0x375   : > { %v2267_v28 = vmax.f32 %v1940_v25, 0.0  ;;  %4070 = vst.msk [vmem:[%s4994_s10 + $0x658] sm:$0xff] %vm3866_vm4, %v3708_v26  ;;  %v1558_v29 = vpop.f32.mrf.mxu0  ;;  %v470_v25 = vld [vmem:[%s4780_s26 + $0x790] sm:$0xff] }
 0x376   : > { %v1559_v31 = vadd.f32 %v6073_v34, %v1558_v29 }
 0x377   : > { %4426 = vmatmul.msk.f32.gmra.mxu2 %vm489_vm1, %v465_v27  ;;  %4666 = vmatmul.msk.f32.gmra.mxu3 %vm2308_vm3, %v2267_v28  ;;  %v3329_v32 = vpop.f32.mrf.mxu1  ;;  %v342_v28 = vld [vmem:[%s4780_s26 + $0x390] sm:$0xff] }
 0x378   : > { %v2140_v33 = vmax.f32 %v1559_v31, 0.0  ;;  %v3330_v35 = vadd.f32 %v5811_v36, %v3329_v32  ;;  %4298 = vmatmul.msk.f32.gmra.mxu0 %vm489_vm1, %v337_v30 }
 0x37a   : > { %v1942_v37 = vpop.f32.mrf.mxu2  ;;  %v3710_v38 = vpop.f32.mrf.mxu3  ;;  %3944 = vst.msk [vmem:[%s4994_s10 + $0x268] sm:$0xff] %vm3866_vm4, %v3330_v35  ;;  %4539 = vmatmul.msk.f32.gmra.mxu1 %vm2308_vm3, %v2140_v33 }
 0x37b   : > { %v1943_v39 = vadd.f32 %v6073_v34, %v1942_v37  ;;  %v3711_v40 = vadd.f32 %v5811_v36, %v3710_v38 }
 0x37d   : > { %v2268_v42 = vmax.f32 %v1943_v39, 0.0  ;;  %4071 = vst.msk [vmem:[%s4994_s10 + $0x660] sm:$0xff] %vm3866_vm4, %v3711_v40  ;;  %v1561_v43 = vpop.f32.mrf.mxu0  ;;  %v471_v39 = vld [vmem:[%s4780_s26 + $0x798] sm:$0xff] }
 0x37e   : > { %v1562_v45 = vadd.f32 %v6073_v34, %v1561_v43 }
 0x37f   : > { %4427 = vmatmul.msk.f32.gmra.mxu2 %vm489_vm1, %v466_v41  ;;  %4667 = vmatmul.msk.f32.gmra.mxu3 %vm2308_vm3, %v2268_v42  ;;  %v3332_v46 = vpop.f32.mrf.mxu1  ;;  %v343_v42 = vld [vmem:[%s4780_s26 + $0x398] sm:$0xff] }
 0x380   : > { %v2141_v47 = vmax.f32 %v1562_v45, 0.0  ;;  %v3333_v48 = vadd.f32 %v5811_v36, %v3332_v46  ;;  %4299 = vmatmul.msk.f32.gmra.mxu0 %vm489_vm1, %v338_v44 }
 0x382   : > { %v1945_v49 = vpop.f32.mrf.mxu2  ;;  %v3713_v50 = vpop.f32.mrf.mxu3  ;;  %3945 = vst.msk [vmem:[%s4994_s10 + $0x270] sm:$0xff] %vm3866_vm4, %v3333_v48  ;;  %4540 = vmatmul.msk.f32.gmra.mxu1 %vm2308_vm3, %v2141_v47 }
 0x383   : > { %v1946_v51 = vadd.f32 %v6073_v34, %v1945_v49  ;;  %v3714_v52 = vadd.f32 %v5811_v36, %v3713_v50 }
 0x385   : > { %v2269_v54 = vmax.f32 %v1946_v51, 0.0  ;;  %4072 = vst.msk [vmem:[%s4994_s10 + $0x668] sm:$0xff] %vm3866_vm4, %v3714_v52  ;;  %v1564_v55 = vpop.f32.mrf.mxu0  ;;  %v472_v51 = vld [vmem:[%s4780_s26 + $0x7a0] sm:$0xff] }
 0x386   : > { %v1565_v57 = vadd.f32 %v6073_v34, %v1564_v55 }
 0x387   : > { %4428 = vmatmul.msk.f32.gmra.mxu2 %vm489_vm1, %v467_v53  ;;  %4668 = vmatmul.msk.f32.gmra.mxu3 %vm2308_vm3, %v2269_v54  ;;  %v3335_v58 = vpop.f32.mrf.mxu1  ;;  %v344_v54 = vld [vmem:[%s4780_s26 + $0x3a0] sm:$0xff] }
 0x388   : > { %v2142_v59 = vmax.f32 %v1565_v57, 0.0  ;;  %v3336_v60 = vadd.f32 %v5811_v36, %v3335_v58  ;;  %4300 = vmatmul.msk.f32.gmra.mxu0 %vm489_vm1, %v339_v56 }
 0x38a   : > { %v1948_v61 = vpop.f32.mrf.mxu2  ;;  %v3716_v62 = vpop.f32.mrf.mxu3  ;;  %3946 = vst.msk [vmem:[%s4994_s10 + $0x278] sm:$0xff] %vm3866_vm4, %v3336_v60  ;;  %4541 = vmatmul.msk.f32.gmra.mxu1 %vm2308_vm3, %v2142_v59 }
 0x38b   : > { %v1949_v63 = vadd.f32 %v6073_v34, %v1948_v61  ;;  %v3717_v0 = vadd.f32 %v5811_v36, %v3716_v62 }
 0x38d   : > { %v2270_v2 = vmax.f32 %v1949_v63, 0.0  ;;  %4073 = vst.msk [vmem:[%s4994_s10 + $0x670] sm:$0xff] %vm3866_vm4, %v3717_v0  ;;  %v1567_v3 = vpop.f32.mrf.mxu0  ;;  %v473_v63 = vld [vmem:[%s4780_s26 + $0x7a8] sm:$0xff] }
 0x38e   : > { %v1568_v5 = vadd.f32 %v6073_v34, %v1567_v3 }
 0x38f   : > { %4429 = vmatmul.msk.f32.gmra.mxu2 %vm489_vm1, %v468_v1  ;;  %4669 = vmatmul.msk.f32.gmra.mxu3 %vm2308_vm3, %v2270_v2  ;;  %v3338_v6 = vpop.f32.mrf.mxu1  ;;  %v345_v2 = vld [vmem:[%s4780_s26 + $0x3a8] sm:$0xff] }
 0x390   : > { %v2143_v7 = vmax.f32 %v1568_v5, 0.0  ;;  %v3339_v8 = vadd.f32 %v5811_v36, %v3338_v6  ;;  %4301 = vmatmul.msk.f32.gmra.mxu0 %vm489_vm1, %v340_v4 }
 0x392   : > { %v1951_v9 = vpop.f32.mrf.mxu2  ;;  %v3719_v10 = vpop.f32.mrf.mxu3  ;;  %3947 = vst.msk [vmem:[%s4994_s10 + $0x280] sm:$0xff] %vm3866_vm4, %v3339_v8  ;;  %4542 = vmatmul.msk.f32.gmra.mxu1 %vm2308_vm3, %v2143_v7 }
 0x393   : > { %v1952_v11 = vadd.f32 %v6073_v34, %v1951_v9  ;;  %v3720_v12 = vadd.f32 %v5811_v36, %v3719_v10 }
 0x395   : > { %v2271_v14 = vmax.f32 %v1952_v11, 0.0  ;;  %4074 = vst.msk [vmem:[%s4994_s10 + $0x678] sm:$0xff] %vm3866_vm4, %v3720_v12  ;;  %v1570_v15 = vpop.f32.mrf.mxu0  ;;  %v474_v11 = vld [vmem:[%s4780_s26 + $0x7b0] sm:$0xff] }
 0x396   : > { %v1571_v17 = vadd.f32 %v6073_v34, %v1570_v15 }
 0x397   : > { %4430 = vmatmul.msk.f32.gmra.mxu2 %vm489_vm1, %v469_v13  ;;  %4670 = vmatmul.msk.f32.gmra.mxu3 %vm2308_vm3, %v2271_v14  ;;  %v3341_v18 = vpop.f32.mrf.mxu1  ;;  %v346_v14 = vld [vmem:[%s4780_s26 + $0x3b0] sm:$0xff] }
 0x398   : > { %v2144_v19 = vmax.f32 %v1571_v17, 0.0  ;;  %v3342_v20 = vadd.f32 %v5811_v36, %v3341_v18  ;;  %4302 = vmatmul.msk.f32.gmra.mxu0 %vm489_vm1, %v341_v16 }
 0x39a   : > { %v1954_v21 = vpop.f32.mrf.mxu2  ;;  %v3722_v22 = vpop.f32.mrf.mxu3  ;;  %3948 = vst.msk [vmem:[%s4994_s10 + $0x288] sm:$0xff] %vm3866_vm4, %v3342_v20  ;;  %4543 = vmatmul.msk.f32.gmra.mxu1 %vm2308_vm3, %v2144_v19 }
 0x39b   : > { %v1955_v23 = vadd.f32 %v6073_v34, %v1954_v21  ;;  %v3723_v24 = vadd.f32 %v5811_v36, %v3722_v22 }
 0x39d   : > { %v2272_v26 = vmax.f32 %v1955_v23, 0.0  ;;  %4075 = vst.msk [vmem:[%s4994_s10 + $0x680] sm:$0xff] %vm3866_vm4, %v3723_v24  ;;  %v1573_v27 = vpop.f32.mrf.mxu0  ;;  %v475_v23 = vld [vmem:[%s4780_s26 + $0x7b8] sm:$0xff] }
 0x39e   : > { %v1574_v29 = vadd.f32 %v6073_v34, %v1573_v27 }
 0x39f   : > { %4431 = vmatmul.msk.f32.gmra.mxu2 %vm489_vm1, %v470_v25  ;;  %4671 = vmatmul.msk.f32.gmra.mxu3 %vm2308_vm3, %v2272_v26  ;;  %v3344_v30 = vpop.f32.mrf.mxu1  ;;  %v347_v26 = vld [vmem:[%s4780_s26 + $0x3b8] sm:$0xff] }
 0x3a0   : > { %v2145_v31 = vmax.f32 %v1574_v29, 0.0  ;;  %v3345_v32 = vadd.f32 %v5811_v36, %v3344_v30  ;;  %4303 = vmatmul.msk.f32.gmra.mxu0 %vm489_vm1, %v342_v28 }
 0x3a2   : > { %v1957_v33 = vpop.f32.mrf.mxu2  ;;  %v3725_v35 = vpop.f32.mrf.mxu3  ;;  %3949 = vst.msk [vmem:[%s4994_s10 + $0x290] sm:$0xff] %vm3866_vm4, %v3345_v32  ;;  %4544 = vmatmul.msk.f32.gmra.mxu1 %vm2308_vm3, %v2145_v31 }
 0x3a3   : > { %v1958_v37 = vadd.f32 %v6073_v34, %v1957_v33  ;;  %v3726_v38 = vadd.f32 %v5811_v36, %v3725_v35 }
 0x3a5   : > { %v2273_v40 = vmax.f32 %v1958_v37, 0.0  ;;  %4076 = vst.msk [vmem:[%s4994_s10 + $0x688] sm:$0xff] %vm3866_vm4, %v3726_v38  ;;  %v1576_v41 = vpop.f32.mrf.mxu0  ;;  %v476_v37 = vld [vmem:[%s4780_s26 + $0x7c0] sm:$0xff] }
 0x3a6   : > { %v1577_v43 = vadd.f32 %v6073_v34, %v1576_v41 }
 0x3a7   : > { %4432 = vmatmul.msk.f32.gmra.mxu2 %vm489_vm1, %v471_v39  ;;  %4672 = vmatmul.msk.f32.gmra.mxu3 %vm2308_vm3, %v2273_v40  ;;  %v3347_v44 = vpop.f32.mrf.mxu1  ;;  %v348_v40 = vld [vmem:[%s4780_s26 + $0x3c0] sm:$0xff] }
 0x3a8   : > { %v2146_v45 = vmax.f32 %v1577_v43, 0.0  ;;  %v3348_v46 = vadd.f32 %v5811_v36, %v3347_v44  ;;  %4304 = vmatmul.msk.f32.gmra.mxu0 %vm489_vm1, %v343_v42 }
 0x3aa   : > { %v1960_v47 = vpop.f32.mrf.mxu2  ;;  %v3728_v48 = vpop.f32.mrf.mxu3  ;;  %3950 = vst.msk [vmem:[%s4994_s10 + $0x298] sm:$0xff] %vm3866_vm4, %v3348_v46  ;;  %4545 = vmatmul.msk.f32.gmra.mxu1 %vm2308_vm3, %v2146_v45 }
 0x3ab   : > { %v1961_v49 = vadd.f32 %v6073_v34, %v1960_v47  ;;  %v3729_v50 = vadd.f32 %v5811_v36, %v3728_v48 }
 0x3ad   : > { %v2274_v52 = vmax.f32 %v1961_v49, 0.0  ;;  %4077 = vst.msk [vmem:[%s4994_s10 + $0x690] sm:$0xff] %vm3866_vm4, %v3729_v50  ;;  %v1579_v53 = vpop.f32.mrf.mxu0  ;;  %v477_v49 = vld [vmem:[%s4780_s26 + $0x7c8] sm:$0xff] }
 0x3ae   : > { %v1580_v55 = vadd.f32 %v6073_v34, %v1579_v53 }
 0x3af   : > { %4433 = vmatmul.msk.f32.gmra.mxu2 %vm489_vm1, %v472_v51  ;;  %4673 = vmatmul.msk.f32.gmra.mxu3 %vm2308_vm3, %v2274_v52  ;;  %v3350_v56 = vpop.f32.mrf.mxu1  ;;  %v349_v52 = vld [vmem:[%s4780_s26 + $0x3c8] sm:$0xff] }
 0x3b0   : > { %v2147_v57 = vmax.f32 %v1580_v55, 0.0  ;;  %v3351_v58 = vadd.f32 %v5811_v36, %v3350_v56  ;;  %4305 = vmatmul.msk.f32.gmra.mxu0 %vm489_vm1, %v344_v54 }
 0x3b2   : > { %v1963_v59 = vpop.f32.mrf.mxu2  ;;  %v3731_v60 = vpop.f32.mrf.mxu3  ;;  %3951 = vst.msk [vmem:[%s4994_s10 + $0x2a0] sm:$0xff] %vm3866_vm4, %v3351_v58  ;;  %4546 = vmatmul.msk.f32.gmra.mxu1 %vm2308_vm3, %v2147_v57 }
 0x3b3   : > { %v1964_v61 = vadd.f32 %v6073_v34, %v1963_v59  ;;  %v3732_v62 = vadd.f32 %v5811_v36, %v3731_v60 }
 0x3b5   : > { %v2275_v0 = vmax.f32 %v1964_v61, 0.0  ;;  %4078 = vst.msk [vmem:[%s4994_s10 + $0x698] sm:$0xff] %vm3866_vm4, %v3732_v62  ;;  %v1582_v1 = vpop.f32.mrf.mxu0  ;;  %v478_v61 = vld [vmem:[%s4780_s26 + $0x7d0] sm:$0xff] }
 0x3b6   : > { %v1583_v3 = vadd.f32 %v6073_v34, %v1582_v1 }
 0x3b7   : > { %4434 = vmatmul.msk.f32.gmra.mxu2 %vm489_vm1, %v473_v63  ;;  %4674 = vmatmul.msk.f32.gmra.mxu3 %vm2308_vm3, %v2275_v0  ;;  %v3353_v4 = vpop.f32.mrf.mxu1  ;;  %v350_v0 = vld [vmem:[%s4780_s26 + $0x3d0] sm:$0xff] }
 0x3b8   : > { %v2148_v5 = vmax.f32 %v1583_v3, 0.0  ;;  %v3354_v6 = vadd.f32 %v5811_v36, %v3353_v4  ;;  %4306 = vmatmul.msk.f32.gmra.mxu0 %vm489_vm1, %v345_v2 }
 0x3ba   : > { %v1966_v7 = vpop.f32.mrf.mxu2  ;;  %v3734_v8 = vpop.f32.mrf.mxu3  ;;  %3952 = vst.msk [vmem:[%s4994_s10 + $0x2a8] sm:$0xff] %vm3866_vm4, %v3354_v6  ;;  %4547 = vmatmul.msk.f32.gmra.mxu1 %vm2308_vm3, %v2148_v5 }
 0x3bb   : > { %v1967_v9 = vadd.f32 %v6073_v34, %v1966_v7  ;;  %v3735_v10 = vadd.f32 %v5811_v36, %v3734_v8  ;;  %v6227_v36 = vld [vmem:[%s6636_s4] ss:$0 sm:$0xff] }
 0x3bd   : > { %v2276_v12 = vmax.f32 %v1967_v9, 0.0  ;;  %4079 = vst.msk [vmem:[%s4994_s10 + $0x6a0] sm:$0xff] %vm3866_vm4, %v3735_v10  ;;  %v1585_v13 = vpop.f32.mrf.mxu0  ;;  %v479_v9 = vld [vmem:[%s4780_s26 + $0x7d8] sm:$0xff] }
 0x3be   : > { %v1586_v15 = vadd.f32 %v6073_v34, %v1585_v13 }
 0x3bf   : > { %4435 = vmatmul.msk.f32.gmra.mxu2 %vm489_vm1, %v474_v11  ;;  %4675 = vmatmul.msk.f32.gmra.mxu3 %vm2308_vm3, %v2276_v12  ;;  %v3356_v16 = vpop.f32.mrf.mxu1  ;;  %v351_v12 = vld [vmem:[%s4780_s26 + $0x3d8] sm:$0xff] }
 0x3c0   : > { %v2149_v17 = vmax.f32 %v1586_v15, 0.0  ;;  %v3357_v18 = vadd.f32 %v6227_v36, %v3356_v16  ;;  %4307 = vmatmul.msk.f32.gmra.mxu0 %vm489_vm1, %v346_v14 }
 0x3c2   : > { %v1969_v19 = vpop.f32.mrf.mxu2  ;;  %v3737_v20 = vpop.f32.mrf.mxu3  ;;  %3953 = vst.msk [vmem:[%s4994_s10 + $0x2b0] sm:$0xff] %vm3866_vm4, %v3357_v18  ;;  %4548 = vmatmul.msk.f32.gmra.mxu1 %vm2308_vm3, %v2149_v17 }
 0x3c3   : > { %v1970_v21 = vadd.f32 %v6073_v34, %v1969_v19  ;;  %v3738_v22 = vadd.f32 %v6227_v36, %v3737_v20 }
 0x3c5   : > { %v2277_v24 = vmax.f32 %v1970_v21, 0.0  ;;  %4080 = vst.msk [vmem:[%s4994_s10 + $0x6a8] sm:$0xff] %vm3866_vm4, %v3738_v22  ;;  %v1588_v25 = vpop.f32.mrf.mxu0  ;;  %v480_v21 = vld [vmem:[%s4780_s26 + $0x7e0] sm:$0xff] }
 0x3c6   : > { %v1589_v27 = vadd.f32 %v6073_v34, %v1588_v25 }
 0x3c7   : > { %4436 = vmatmul.msk.f32.gmra.mxu2 %vm489_vm1, %v475_v23  ;;  %4676 = vmatmul.msk.f32.gmra.mxu3 %vm2308_vm3, %v2277_v24  ;;  %v3359_v28 = vpop.f32.mrf.mxu1  ;;  %v352_v24 = vld [vmem:[%s4780_s26 + $0x3e0] sm:$0xff] }
 0x3c8   : > { %v2150_v29 = vmax.f32 %v1589_v27, 0.0  ;;  %v3360_v30 = vadd.f32 %v6227_v36, %v3359_v28  ;;  %4308 = vmatmul.msk.f32.gmra.mxu0 %vm489_vm1, %v347_v26 }
 0x3ca   : > { %v1972_v31 = vpop.f32.mrf.mxu2  ;;  %v3740_v32 = vpop.f32.mrf.mxu3  ;;  %3954 = vst.msk [vmem:[%s4994_s10 + $0x2b8] sm:$0xff] %vm3866_vm4, %v3360_v30  ;;  %4549 = vmatmul.msk.f32.gmra.mxu1 %vm2308_vm3, %v2150_v29 }
 0x3cb   : > { %v1973_v33 = vadd.f32 %v6073_v34, %v1972_v31  ;;  %v3741_v35 = vadd.f32 %v6227_v36, %v3740_v32 }
 0x3cd   : > { %v2278_v38 = vmax.f32 %v1973_v33, 0.0  ;;  %4081 = vst.msk [vmem:[%s4994_s10 + $0x6b0] sm:$0xff] %vm3866_vm4, %v3741_v35  ;;  %v1591_v39 = vpop.f32.mrf.mxu0  ;;  %v481_v33 = vld [vmem:[%s4780_s26 + $0x7e8] sm:$0xff] }
 0x3ce   : > { %v1592_v41 = vadd.f32 %v6073_v34, %v1591_v39 }
 0x3cf   : > { %4437 = vmatmul.msk.f32.gmra.mxu2 %vm489_vm1, %v476_v37  ;;  %4677 = vmatmul.msk.f32.gmra.mxu3 %vm2308_vm3, %v2278_v38  ;;  %v3362_v42 = vpop.f32.mrf.mxu1  ;;  %v353_v38 = vld [vmem:[%s4780_s26 + $0x3e8] sm:$0xff] }
 0x3d0   : > { %v2151_v43 = vmax.f32 %v1592_v41, 0.0  ;;  %v3363_v44 = vadd.f32 %v6227_v36, %v3362_v42  ;;  %4309 = vmatmul.msk.f32.gmra.mxu0 %vm489_vm1, %v348_v40 }
 0x3d2   : > { %v1975_v45 = vpop.f32.mrf.mxu2  ;;  %v3743_v46 = vpop.f32.mrf.mxu3  ;;  %3955 = vst.msk [vmem:[%s4994_s10 + $0x2c0] sm:$0xff] %vm3866_vm4, %v3363_v44  ;;  %4550 = vmatmul.msk.f32.gmra.mxu1 %vm2308_vm3, %v2151_v43 }
 0x3d3   : > { %v1976_v47 = vadd.f32 %v6073_v34, %v1975_v45  ;;  %v3744_v48 = vadd.f32 %v6227_v36, %v3743_v46 }
 0x3d5   : > { %v2279_v50 = vmax.f32 %v1976_v47, 0.0  ;;  %4082 = vst.msk [vmem:[%s4994_s10 + $0x6b8] sm:$0xff] %vm3866_vm4, %v3744_v48  ;;  %v1594_v51 = vpop.f32.mrf.mxu0  ;;  %v482_v47 = vld [vmem:[%s4780_s26 + $0x7f0] sm:$0xff] }
 0x3d6   : > { %v1595_v53 = vadd.f32 %v6073_v34, %v1594_v51 }
 0x3d7   : > { %4438 = vmatmul.msk.f32.gmra.mxu2 %vm489_vm1, %v477_v49  ;;  %4678 = vmatmul.msk.f32.gmra.mxu3 %vm2308_vm3, %v2279_v50  ;;  %v3365_v54 = vpop.f32.mrf.mxu1  ;;  %v354_v50 = vld [vmem:[%s4780_s26 + $0x3f0] sm:$0xff] }
 0x3d8   : > { %v2152_v55 = vmax.f32 %v1595_v53, 0.0  ;;  %v3366_v56 = vadd.f32 %v6227_v36, %v3365_v54  ;;  %4310 = vmatmul.msk.f32.gmra.mxu0 %vm489_vm1, %v349_v52 }
 0x3da   : > { %v1978_v57 = vpop.f32.mrf.mxu2  ;;  %v3746_v58 = vpop.f32.mrf.mxu3  ;;  %3956 = vst.msk [vmem:[%s4994_s10 + $0x2c8] sm:$0xff] %vm3866_vm4, %v3366_v56  ;;  %4551 = vmatmul.msk.f32.gmra.mxu1 %vm2308_vm3, %v2152_v55 }
 0x3db   : > { %v1979_v59 = vadd.f32 %v6073_v34, %v1978_v57  ;;  %v3747_v60 = vadd.f32 %v6227_v36, %v3746_v58 }
 0x3dd   : > { %v2280_v62 = vmax.f32 %v1979_v59, 0.0  ;;  %4083 = vst.msk [vmem:[%s4994_s10 + $0x6c0] sm:$0xff] %vm3866_vm4, %v3747_v60  ;;  %v1597_v63 = vpop.f32.mrf.mxu0  ;;  %v483_v59 = vld [vmem:[%s4780_s26 + $0x7f8] sm:$0xff] }
 0x3de   : > { %v1598_v1 = vadd.f32 %v6073_v34, %v1597_v63 }
 0x3df   : > { %4439 = vmatmul.msk.f32.gmra.mxu2 %vm489_vm1, %v478_v61  ;;  %4679 = vmatmul.msk.f32.gmra.mxu3 %vm2308_vm3, %v2280_v62  ;;  %v3368_v2 = vpop.f32.mrf.mxu1  ;;  %v355_v62 = vld [vmem:[%s4780_s26 + $0x3f8] sm:$0xff] }
 0x3e0   : > { %v2153_v3 = vmax.f32 %v1598_v1, 0.0  ;;  %v3369_v4 = vadd.f32 %v6227_v36, %v3368_v2  ;;  %4311 = vmatmul.msk.f32.gmra.mxu0 %vm489_vm1, %v350_v0 }
 0x3e2   : > { %v1981_v5 = vpop.f32.mrf.mxu2  ;;  %v3749_v6 = vpop.f32.mrf.mxu3  ;;  %3957 = vst.msk [vmem:[%s4994_s10 + $0x2d0] sm:$0xff] %vm3866_vm4, %v3369_v4  ;;  %4552 = vmatmul.msk.f32.gmra.mxu1 %vm2308_vm3, %v2153_v3 }
 0x3e3   : > { %v1982_v7 = vadd.f32 %v6073_v34, %v1981_v5  ;;  %v3750_v8 = vadd.f32 %v6227_v36, %v3749_v6 }
 0x3e5   : > { %v2281_v10 = vmax.f32 %v1982_v7, 0.0  ;;  %4084 = vst.msk [vmem:[%s4994_s10 + $0x6c8] sm:$0xff] %vm3866_vm4, %v3750_v8  ;;  %v1600_v11 = vpop.f32.mrf.mxu0 }
 0x3e6   : > { %v1601_v13 = vadd.f32 %v6073_v34, %v1600_v11 }
 0x3e7   : > { %4440 = vmatmul.msk.f32.gmra.mxu2 %vm489_vm1, %v479_v9  ;;  %4680 = vmatmul.msk.f32.gmra.mxu3 %vm2308_vm3, %v2281_v10  ;;  %v3371_v14 = vpop.f32.mrf.mxu1 }
 0x3e8   : > { %v2154_v15 = vmax.f32 %v1601_v13, 0.0  ;;  %v3372_v16 = vadd.f32 %v6227_v36, %v3371_v14  ;;  %4312 = vmatmul.msk.f32.gmra.mxu0 %vm489_vm1, %v351_v12 }
 0x3ea   : > { %v1984_v17 = vpop.f32.mrf.mxu2  ;;  %v3752_v18 = vpop.f32.mrf.mxu3  ;;  %3958 = vst.msk [vmem:[%s4994_s10 + $0x2d8] sm:$0xff] %vm3866_vm4, %v3372_v16  ;;  %4553 = vmatmul.msk.f32.gmra.mxu1 %vm2308_vm3, %v2154_v15 }
 0x3eb   : > { %v1985_v19 = vadd.f32 %v6073_v34, %v1984_v17  ;;  %v3753_v20 = vadd.f32 %v6227_v36, %v3752_v18 }
 0x3ed   : > { %v2282_v22 = vmax.f32 %v1985_v19, 0.0  ;;  %4085 = vst.msk [vmem:[%s4994_s10 + $0x6d0] sm:$0xff] %vm3866_vm4, %v3753_v20  ;;  %v1603_v23 = vpop.f32.mrf.mxu0 }
 0x3ee   : > { %v1604_v25 = vadd.f32 %v6073_v34, %v1603_v23 }
 0x3ef   : > { %4441 = vmatmul.msk.f32.gmra.mxu2 %vm489_vm1, %v480_v21  ;;  %4681 = vmatmul.msk.f32.gmra.mxu3 %vm2308_vm3, %v2282_v22  ;;  %v3374_v26 = vpop.f32.mrf.mxu1 }
 0x3f0   : > { %v2155_v27 = vmax.f32 %v1604_v25, 0.0  ;;  %v3375_v28 = vadd.f32 %v6227_v36, %v3374_v26  ;;  %4313 = vmatmul.msk.f32.gmra.mxu0 %vm489_vm1, %v352_v24 }
 0x3f2   : > { %v1987_v29 = vpop.f32.mrf.mxu2  ;;  %v3755_v30 = vpop.f32.mrf.mxu3  ;;  %3959 = vst.msk [vmem:[%s4994_s10 + $0x2e0] sm:$0xff] %vm3866_vm4, %v3375_v28  ;;  %4554 = vmatmul.msk.f32.gmra.mxu1 %vm2308_vm3, %v2155_v27 }
 0x3f3   : > { %v1988_v31 = vadd.f32 %v6073_v34, %v1987_v29  ;;  %v3756_v32 = vadd.f32 %v6227_v36, %v3755_v30 }
 0x3f5   : > { %v2283_v35 = vmax.f32 %v1988_v31, 0.0  ;;  %4086 = vst.msk [vmem:[%s4994_s10 + $0x6d8] sm:$0xff] %vm3866_vm4, %v3756_v32  ;;  %v1606_v37 = vpop.f32.mrf.mxu0 }
 0x3f6   : > { %v1607_v39 = vadd.f32 %v6073_v34, %v1606_v37 }
 0x3f7   : > { %4442 = vmatmul.msk.f32.gmra.mxu2 %vm489_vm1, %v481_v33  ;;  %4682 = vmatmul.msk.f32.gmra.mxu3 %vm2308_vm3, %v2283_v35  ;;  %v3377_v40 = vpop.f32.mrf.mxu1 }
 0x3f8   : > { %v2156_v41 = vmax.f32 %v1607_v39, 0.0  ;;  %v3378_v42 = vadd.f32 %v6227_v36, %v3377_v40  ;;  %4314 = vmatmul.msk.f32.gmra.mxu0 %vm489_vm1, %v353_v38 }
 0x3fa   : > { %v1990_v43 = vpop.f32.mrf.mxu2  ;;  %v3758_v44 = vpop.f32.mrf.mxu3  ;;  %3960 = vst.msk [vmem:[%s4994_s10 + $0x2e8] sm:$0xff] %vm3866_vm4, %v3378_v42  ;;  %4555 = vmatmul.msk.f32.gmra.mxu1 %vm2308_vm3, %v2156_v41 }
 0x3fb   : > { %v1991_v45 = vadd.f32 %v6073_v34, %v1990_v43  ;;  %v3759_v46 = vadd.f32 %v6227_v36, %v3758_v44 }
 0x3fd   : > { %v2284_v48 = vmax.f32 %v1991_v45, 0.0  ;;  %4087 = vst.msk [vmem:[%s4994_s10 + $0x6e0] sm:$0xff] %vm3866_vm4, %v3759_v46  ;;  %v1609_v49 = vpop.f32.mrf.mxu0 }
 0x3fe   : > { %v1610_v51 = vadd.f32 %v6073_v34, %v1609_v49 }
 0x3ff   : > { %4443 = vmatmul.msk.f32.gmra.mxu2 %vm489_vm1, %v482_v47  ;;  %4683 = vmatmul.msk.f32.gmra.mxu3 %vm2308_vm3, %v2284_v48  ;;  %v3380_v52 = vpop.f32.mrf.mxu1 }
 0x400   : > { %v2157_v53 = vmax.f32 %v1610_v51, 0.0  ;;  %v3381_v54 = vadd.f32 %v6227_v36, %v3380_v52  ;;  %4315 = vmatmul.msk.f32.gmra.mxu0 %vm489_vm1, %v354_v50 }
 0x402   : > { %v1993_v55 = vpop.f32.mrf.mxu2  ;;  %v3761_v56 = vpop.f32.mrf.mxu3  ;;  %3961 = vst.msk [vmem:[%s4994_s10 + $0x2f0] sm:$0xff] %vm3866_vm4, %v3381_v54  ;;  %4556 = vmatmul.msk.f32.gmra.mxu1 %vm2308_vm3, %v2157_v53 }
 0x403   : > { %v1994_v57 = vadd.f32 %v6073_v34, %v1993_v55  ;;  %v3762_v58 = vadd.f32 %v6227_v36, %v3761_v56 }
 0x405   : > { %v2285_v60 = vmax.f32 %v1994_v57, 0.0  ;;  %4088 = vst.msk [vmem:[%s4994_s10 + $0x6e8] sm:$0xff] %vm3866_vm4, %v3762_v58  ;;  %v1612_v61 = vpop.f32.mrf.mxu0 }
 0x406   : > { %v1613_v63 = vadd.f32 %v6073_v34, %v1612_v61 }
 0x407   : > { %4444 = vmatmul.msk.f32.gmra.mxu2 %vm489_vm1, %v483_v59  ;;  %4684 = vmatmul.msk.f32.gmra.mxu3 %vm2308_vm3, %v2285_v60  ;;  %v3383_v0 = vpop.f32.mrf.mxu1 }
 0x408   : > { %v2158_v1 = vmax.f32 %v1613_v63, 0.0  ;;  %v3384_v2 = vadd.f32 %v6227_v36, %v3383_v0  ;;  %4316 = vmatmul.msk.f32.gmra.mxu0 %vm489_vm1, %v355_v62 }
 0x40a   : > { %v1996_v3 = vpop.f32.mrf.mxu2  ;;  %v3764_v4 = vpop.f32.mrf.mxu3  ;;  %3962 = vst.msk [vmem:[%s4994_s10 + $0x2f8] sm:$0xff] %vm3866_vm4, %v3384_v2  ;;  %4557 = vmatmul.msk.f32.gmra.mxu1 %vm2308_vm3, %v2158_v1 }
 0x40b   : > { %v1997_v5 = vadd.f32 %v6073_v34, %v1996_v3  ;;  %v3765_v6 = vadd.f32 %v6227_v36, %v3764_v4 }
 0x40d   : > { %v2286_v7 = vmax.f32 %v1997_v5, 0.0  ;;  %4089 = vst.msk [vmem:[%s4994_s10 + $0x6f0] sm:$0xff] %vm3866_vm4, %v3765_v6  ;;  %v1615_v8 = vpop.f32.mrf.mxu0 }
 0x40e   : > { %v1616_v9 = vadd.f32 %v6073_v34, %v1615_v8 }
 0x40f   : > { %4685 = vmatmul.msk.f32.gmra.mxu3 %vm2308_vm3, %v2286_v7  ;;  %v3386_v10 = vpop.f32.mrf.mxu1 }
 0x410   : > { %v2159_v11 = vmax.f32 %v1616_v9, 0.0  ;;  %v3387_v12 = vadd.f32 %v6227_v36, %v3386_v10 }
 0x412   : > { %v1999_v13 = vpop.f32.mrf.mxu2  ;;  %v3767_v14 = vpop.f32.mrf.mxu3  ;;  %3963 = vst.msk [vmem:[%s4994_s10 + $0x300] sm:$0xff] %vm3866_vm4, %v3387_v12  ;;  %4558 = vmatmul.msk.f32.gmra.mxu1 %vm2308_vm3, %v2159_v11 }
 0x413   : > { %v2000_v15 = vadd.f32 %v6073_v34, %v1999_v13  ;;  %v3768_v16 = vadd.f32 %v6227_v36, %v3767_v14 }
 0x415   : > { %v2287_v17 = vmax.f32 %v2000_v15, 0.0  ;;  %4090 = vst.msk [vmem:[%s4994_s10 + $0x6f8] sm:$0xff] %vm3866_vm4, %v3768_v16  ;;  %v1618_v18 = vpop.f32.mrf.mxu0 }
 0x416   : > { %v1619_v19 = vadd.f32 %v6073_v34, %v1618_v18 }
 0x417   : > { %4686 = vmatmul.msk.f32.gmra.mxu3 %vm2308_vm3, %v2287_v17  ;;  %v3389_v20 = vpop.f32.mrf.mxu1 }
 0x418   : > { %v2160_v21 = vmax.f32 %v1619_v19, 0.0  ;;  %v3390_v22 = vadd.f32 %v6227_v36, %v3389_v20 }
 0x41a   : > { %v2002_v23 = vpop.f32.mrf.mxu2  ;;  %v3770_v24 = vpop.f32.mrf.mxu3  ;;  %3964 = vst.msk [vmem:[%s4994_s10 + $0x308] sm:$0xff] %vm3866_vm4, %v3390_v22  ;;  %4559 = vmatmul.msk.f32.gmra.mxu1 %vm2308_vm3, %v2160_v21 }
 0x41b   : > { %v2003_v25 = vadd.f32 %v6073_v34, %v2002_v23  ;;  %v3771_v26 = vadd.f32 %v6227_v36, %v3770_v24 }
 0x41d   : > { %v2288_v27 = vmax.f32 %v2003_v25, 0.0  ;;  %4091 = vst.msk [vmem:[%s4994_s10 + $0x700] sm:$0xff] %vm3866_vm4, %v3771_v26  ;;  %v1621_v28 = vpop.f32.mrf.mxu0 }
 0x41e   : > { %v1622_v29 = vadd.f32 %v6073_v34, %v1621_v28 }
 0x41f   : > { %4687 = vmatmul.msk.f32.gmra.mxu3 %vm2308_vm3, %v2288_v27  ;;  %v3392_v30 = vpop.f32.mrf.mxu1 }
 0x420   : > { %v2161_v31 = vmax.f32 %v1622_v29, 0.0  ;;  %v3393_v32 = vadd.f32 %v6227_v36, %v3392_v30 }
 0x422   : > { %v2005_v33 = vpop.f32.mrf.mxu2  ;;  %v3773_v35 = vpop.f32.mrf.mxu3  ;;  %3965 = vst.msk [vmem:[%s4994_s10 + $0x310] sm:$0xff] %vm3866_vm4, %v3393_v32  ;;  %4560 = vmatmul.msk.f32.gmra.mxu1 %vm2308_vm3, %v2161_v31 }
 0x423   : > { %v2006_v37 = vadd.f32 %v6073_v34, %v2005_v33  ;;  %v3774_v38 = vadd.f32 %v6227_v36, %v3773_v35 }
 0x425   : > { %v2289_v39 = vmax.f32 %v2006_v37, 0.0  ;;  %4092 = vst.msk [vmem:[%s4994_s10 + $0x708] sm:$0xff] %vm3866_vm4, %v3774_v38  ;;  %v1624_v40 = vpop.f32.mrf.mxu0 }
 0x426   : > { %v1625_v41 = vadd.f32 %v6073_v34, %v1624_v40 }
 0x427   : > { %4688 = vmatmul.msk.f32.gmra.mxu3 %vm2308_vm3, %v2289_v39  ;;  %v3395_v42 = vpop.f32.mrf.mxu1 }
 0x428   : > { %v2162_v43 = vmax.f32 %v1625_v41, 0.0  ;;  %v3396_v44 = vadd.f32 %v6227_v36, %v3395_v42 }
 0x42a   : > { %v2008_v45 = vpop.f32.mrf.mxu2  ;;  %v3776_v46 = vpop.f32.mrf.mxu3  ;;  %3966 = vst.msk [vmem:[%s4994_s10 + $0x318] sm:$0xff] %vm3866_vm4, %v3396_v44  ;;  %4561 = vmatmul.msk.f32.gmra.mxu1 %vm2308_vm3, %v2162_v43 }
 0x42b   : > { %v2009_v47 = vadd.f32 %v6073_v34, %v2008_v45  ;;  %v3777_v48 = vadd.f32 %v6227_v36, %v3776_v46 }
 0x42d   : > { %v2290_v49 = vmax.f32 %v2009_v47, 0.0  ;;  %4093 = vst.msk [vmem:[%s4994_s10 + $0x710] sm:$0xff] %vm3866_vm4, %v3777_v48  ;;  %v1627_v50 = vpop.f32.mrf.mxu0 }
 0x42e   : > { %v1628_v51 = vadd.f32 %v6073_v34, %v1627_v50 }
 0x42f   : > { %4689 = vmatmul.msk.f32.gmra.mxu3 %vm2308_vm3, %v2290_v49  ;;  %v3398_v52 = vpop.f32.mrf.mxu1 }
 0x430   : > { %v2163_v53 = vmax.f32 %v1628_v51, 0.0  ;;  %v3399_v54 = vadd.f32 %v6227_v36, %v3398_v52 }
 0x432   : > { %v2011_v55 = vpop.f32.mrf.mxu2  ;;  %v3779_v56 = vpop.f32.mrf.mxu3  ;;  %3967 = vst.msk [vmem:[%s4994_s10 + $0x320] sm:$0xff] %vm3866_vm4, %v3399_v54  ;;  %4562 = vmatmul.msk.f32.gmra.mxu1 %vm2308_vm3, %v2163_v53 }
 0x433   : > { %v2012_v57 = vadd.f32 %v6073_v34, %v2011_v55  ;;  %v3780_v58 = vadd.f32 %v6227_v36, %v3779_v56  ;;  %v6473_v55 = vld [vmem:[%s6634_s2] ss:$0 sm:$0xff] }
 0x435   : > { %v2291_v59 = vmax.f32 %v2012_v57, 0.0  ;;  %4094 = vst.msk [vmem:[%s4994_s10 + $0x718] sm:$0xff] %vm3866_vm4, %v3780_v58  ;;  %v1630_v60 = vpop.f32.mrf.mxu0 }
 0x436   : > { %v1631_v61 = vadd.f32 %v6073_v34, %v1630_v60 }
 0x437   : > { %4690 = vmatmul.msk.f32.gmra.mxu3 %vm2308_vm3, %v2291_v59  ;;  %v3401_v62 = vpop.f32.mrf.mxu1 }
 0x438   : > { %v2164_v63 = vmax.f32 %v1631_v61, 0.0  ;;  %v3402_v0 = vadd.f32 %v6227_v36, %v3401_v62 }
 0x43a   : > { %v2014_v1 = vpop.f32.mrf.mxu2  ;;  %v3782_v2 = vpop.f32.mrf.mxu3  ;;  %3968 = vst.msk [vmem:[%s4994_s10 + $0x328] sm:$0xff] %vm3866_vm4, %v3402_v0  ;;  %4563 = vmatmul.msk.f32.gmra.mxu1 %vm2308_vm3, %v2164_v63 }
 0x43b   : > { %v2015_v3 = vadd.f32 %v6073_v34, %v2014_v1  ;;  %v3783_v4 = vadd.f32 %v6227_v36, %v3782_v2 }
 0x43d   : > { %v2292_v5 = vmax.f32 %v2015_v3, 0.0  ;;  %4095 = vst.msk [vmem:[%s4994_s10 + $0x720] sm:$0xff] %vm3866_vm4, %v3783_v4  ;;  %v1633_v6 = vpop.f32.mrf.mxu0 }
 0x43e   : > { %v1634_v7 = vadd.f32 %v6073_v34, %v1633_v6 }
 0x43f   : > { %4691 = vmatmul.msk.f32.gmra.mxu3 %vm2308_vm3, %v2292_v5  ;;  %v3404_v8 = vpop.f32.mrf.mxu1 }
 0x440   : > { %v2165_v9 = vmax.f32 %v1634_v7, 0.0  ;;  %v3405_v10 = vadd.f32 %v6227_v36, %v3404_v8 }
 0x442   : > { %v2017_v11 = vpop.f32.mrf.mxu2  ;;  %v3785_v12 = vpop.f32.mrf.mxu3  ;;  %3969 = vst.msk [vmem:[%s4994_s10 + $0x330] sm:$0xff] %vm3866_vm4, %v3405_v10  ;;  %4564 = vmatmul.msk.f32.gmra.mxu1 %vm2308_vm3, %v2165_v9 }
 0x443   : > { %v2018_v13 = vadd.f32 %v6073_v34, %v2017_v11  ;;  %v3786_v14 = vadd.f32 %v6227_v36, %v3785_v12 }
 0x445   : > { %v2293_v15 = vmax.f32 %v2018_v13, 0.0  ;;  %4096 = vst.msk [vmem:[%s4994_s10 + $0x728] sm:$0xff] %vm3866_vm4, %v3786_v14  ;;  %v1636_v16 = vpop.f32.mrf.mxu0 }
 0x446   : > { %v1637_v17 = vadd.f32 %v6073_v34, %v1636_v16 }
 0x447   : > { %4692 = vmatmul.msk.f32.gmra.mxu3 %vm2308_vm3, %v2293_v15  ;;  %v3407_v18 = vpop.f32.mrf.mxu1 }
 0x448   : > { %v2166_v19 = vmax.f32 %v1637_v17, 0.0  ;;  %v3408_v20 = vadd.f32 %v6227_v36, %v3407_v18 }
 0x44a   : > { %v2020_v21 = vpop.f32.mrf.mxu2  ;;  %v3788_v22 = vpop.f32.mrf.mxu3  ;;  %3970 = vst.msk [vmem:[%s4994_s10 + $0x338] sm:$0xff] %vm3866_vm4, %v3408_v20  ;;  %4565 = vmatmul.msk.f32.gmra.mxu1 %vm2308_vm3, %v2166_v19 }
 0x44b   : > { %v2021_v23 = vadd.f32 %v6073_v34, %v2020_v21  ;;  %v3789_v24 = vadd.f32 %v6227_v36, %v3788_v22 }
 0x44d   : > { %v2294_v25 = vmax.f32 %v2021_v23, 0.0  ;;  %4097 = vst.msk [vmem:[%s4994_s10 + $0x730] sm:$0xff] %vm3866_vm4, %v3789_v24  ;;  %v1639_v26 = vpop.f32.mrf.mxu0 }
 0x44e   : > { %v1640_v27 = vadd.f32 %v6073_v34, %v1639_v26 }
 0x44f   : > { %4693 = vmatmul.msk.f32.gmra.mxu3 %vm2308_vm3, %v2294_v25  ;;  %v3410_v28 = vpop.f32.mrf.mxu1 }
 0x450   : > { %v2167_v29 = vmax.f32 %v1640_v27, 0.0  ;;  %v3411_v30 = vadd.f32 %v6227_v36, %v3410_v28 }
 0x452   : > { %v2023_v31 = vpop.f32.mrf.mxu2  ;;  %v3791_v32 = vpop.f32.mrf.mxu3  ;;  %3971 = vst.msk [vmem:[%s4994_s10 + $0x340] sm:$0xff] %vm3866_vm4, %v3411_v30  ;;  %4566 = vmatmul.msk.f32.gmra.mxu1 %vm2308_vm3, %v2167_v29 }
 0x453   : > { %v2024_v33 = vadd.f32 %v6073_v34, %v2023_v31  ;;  %v3792_v35 = vadd.f32 %v6227_v36, %v3791_v32 }
 0x455   : > { %v2295_v37 = vmax.f32 %v2024_v33, 0.0  ;;  %4098 = vst.msk [vmem:[%s4994_s10 + $0x738] sm:$0xff] %vm3866_vm4, %v3792_v35  ;;  %v1642_v38 = vpop.f32.mrf.mxu0 }
 0x456   : > { %v1643_v39 = vadd.f32 %v6073_v34, %v1642_v38 }
 0x457   : > { %4694 = vmatmul.msk.f32.gmra.mxu3 %vm2308_vm3, %v2295_v37  ;;  %v3413_v40 = vpop.f32.mrf.mxu1 }
 0x458   : > { %v2168_v41 = vmax.f32 %v1643_v39, 0.0  ;;  %v3414_v42 = vadd.f32 %v6227_v36, %v3413_v40 }
 0x45a   : > { %v2026_v43 = vpop.f32.mrf.mxu2  ;;  %v3794_v44 = vpop.f32.mrf.mxu3  ;;  %3972 = vst.msk [vmem:[%s4994_s10 + $0x348] sm:$0xff] %vm3866_vm4, %v3414_v42  ;;  %4567 = vmatmul.msk.f32.gmra.mxu1 %vm2308_vm3, %v2168_v41 }
 0x45b   : > { %v2027_v45 = vadd.f32 %v6073_v34, %v2026_v43  ;;  %v3795_v46 = vadd.f32 %v6227_v36, %v3794_v44 }
 0x45d   : > { %v2296_v47 = vmax.f32 %v2027_v45, 0.0  ;;  %4099 = vst.msk [vmem:[%s4994_s10 + $0x740] sm:$0xff] %vm3866_vm4, %v3795_v46  ;;  %v1645_v48 = vpop.f32.mrf.mxu0 }
 0x45e   : > { %v1646_v49 = vadd.f32 %v6073_v34, %v1645_v48 }
 0x45f   : > { %4695 = vmatmul.msk.f32.gmra.mxu3 %vm2308_vm3, %v2296_v47  ;;  %v3416_v50 = vpop.f32.mrf.mxu1 }
 0x460   : > { %v2169_v51 = vmax.f32 %v1646_v49, 0.0  ;;  %v3417_v52 = vadd.f32 %v6227_v36, %v3416_v50 }
 0x462   : > { %v2029_v53 = vpop.f32.mrf.mxu2  ;;  %v3797_v54 = vpop.f32.mrf.mxu3  ;;  %3973 = vst.msk [vmem:[%s4994_s10 + $0x350] sm:$0xff] %vm3866_vm4, %v3417_v52  ;;  %4568 = vmatmul.msk.f32.gmra.mxu1 %vm2308_vm3, %v2169_v51 }
 0x463   : > { %v2030_v34 = vadd.f32 %v6473_v55, %v2029_v53  ;;  %v3798_v56 = vadd.f32 %v6227_v36, %v3797_v54 }
 0x465   : > { %v2297_v57 = vmax.f32 %v2030_v34, 0.0  ;;  %4100 = vst.msk [vmem:[%s4994_s10 + $0x748] sm:$0xff] %vm3866_vm4, %v3798_v56  ;;  %v1648_v58 = vpop.f32.mrf.mxu0 }
 0x466   : > { %v1649_v59 = vadd.f32 %v6473_v55, %v1648_v58 }
 0x467   : > { %4696 = vmatmul.msk.f32.gmra.mxu3 %vm2308_vm3, %v2297_v57  ;;  %v3419_v60 = vpop.f32.mrf.mxu1 }
 0x468   : > { %v2170_v61 = vmax.f32 %v1649_v59, 0.0  ;;  %v3420_v62 = vadd.f32 %v6227_v36, %v3419_v60 }
 0x46a   : > { %v2032_v63 = vpop.f32.mrf.mxu2  ;;  %v3800_v0 = vpop.f32.mrf.mxu3  ;;  %3974 = vst.msk [vmem:[%s4994_s10 + $0x358] sm:$0xff] %vm3866_vm4, %v3420_v62  ;;  %4569 = vmatmul.msk.f32.gmra.mxu1 %vm2308_vm3, %v2170_v61 }
 0x46b   : > { %v2033_v1 = vadd.f32 %v6473_v55, %v2032_v63  ;;  %v3801_v2 = vadd.f32 %v6227_v36, %v3800_v0 }
 0x46d   : > { %v2298_v3 = vmax.f32 %v2033_v1, 0.0  ;;  %4101 = vst.msk [vmem:[%s4994_s10 + $0x750] sm:$0xff] %vm3866_vm4, %v3801_v2  ;;  %v1651_v4 = vpop.f32.mrf.mxu0 }
 0x46e   : > { %v1652_v5 = vadd.f32 %v6473_v55, %v1651_v4 }
 0x46f   : > { %4697 = vmatmul.msk.f32.gmra.mxu3 %vm2308_vm3, %v2298_v3  ;;  %v3422_v6 = vpop.f32.mrf.mxu1 }
 0x470   : > { %v2171_v7 = vmax.f32 %v1652_v5, 0.0  ;;  %v3423_v8 = vadd.f32 %v6227_v36, %v3422_v6 }
 0x472   : > { %v2035_v9 = vpop.f32.mrf.mxu2  ;;  %v3803_v10 = vpop.f32.mrf.mxu3  ;;  %3975 = vst.msk [vmem:[%s4994_s10 + $0x360] sm:$0xff] %vm3866_vm4, %v3423_v8  ;;  %4570 = vmatmul.msk.f32.gmra.mxu1 %vm2308_vm3, %v2171_v7 }
 0x473   : > { %v2036_v11 = vadd.f32 %v6473_v55, %v2035_v9  ;;  %v3804_v12 = vadd.f32 %v6227_v36, %v3803_v10 }
 0x475   : > { %v2299_v13 = vmax.f32 %v2036_v11, 0.0  ;;  %4102 = vst.msk [vmem:[%s4994_s10 + $0x758] sm:$0xff] %vm3866_vm4, %v3804_v12  ;;  %v1654_v14 = vpop.f32.mrf.mxu0 }
 0x476   : > { %v1655_v15 = vadd.f32 %v6473_v55, %v1654_v14 }
 0x477   : > { %4698 = vmatmul.msk.f32.gmra.mxu3 %vm2308_vm3, %v2299_v13  ;;  %v3425_v16 = vpop.f32.mrf.mxu1 }
 0x478   : > { %v2172_v17 = vmax.f32 %v1655_v15, 0.0  ;;  %v3426_v18 = vadd.f32 %v6227_v36, %v3425_v16 }
 0x47a   : > { %v2038_v19 = vpop.f32.mrf.mxu2  ;;  %v3806_v20 = vpop.f32.mrf.mxu3  ;;  %3976 = vst.msk [vmem:[%s4994_s10 + $0x368] sm:$0xff] %vm3866_vm4, %v3426_v18  ;;  %4571 = vmatmul.msk.f32.gmra.mxu1 %vm2308_vm3, %v2172_v17 }
 0x47b   : > { %v2039_v21 = vadd.f32 %v6473_v55, %v2038_v19  ;;  %v3807_v22 = vadd.f32 %v6227_v36, %v3806_v20 }
 0x47d   : > { %v2300_v23 = vmax.f32 %v2039_v21, 0.0  ;;  %4103 = vst.msk [vmem:[%s4994_s10 + $0x760] sm:$0xff] %vm3866_vm4, %v3807_v22  ;;  %v1657_v24 = vpop.f32.mrf.mxu0 }
 0x47e   : > { %v1658_v25 = vadd.f32 %v6473_v55, %v1657_v24 }
 0x47f   : > { %4699 = vmatmul.msk.f32.gmra.mxu3 %vm2308_vm3, %v2300_v23  ;;  %v3428_v26 = vpop.f32.mrf.mxu1 }
 0x480   : > { %v2173_v27 = vmax.f32 %v1658_v25, 0.0  ;;  %v3429_v28 = vadd.f32 %v6227_v36, %v3428_v26 }
 0x482   : > { %v2041_v29 = vpop.f32.mrf.mxu2  ;;  %v3809_v30 = vpop.f32.mrf.mxu3  ;;  %3977 = vst.msk [vmem:[%s4994_s10 + $0x370] sm:$0xff] %vm3866_vm4, %v3429_v28  ;;  %4572 = vmatmul.msk.f32.gmra.mxu1 %vm2308_vm3, %v2173_v27 }
 0x483   : > { %v2042_v31 = vadd.f32 %v6473_v55, %v2041_v29  ;;  %v3810_v32 = vadd.f32 %v6227_v36, %v3809_v30 }
 0x485   : > { %v2301_v33 = vmax.f32 %v2042_v31, 0.0  ;;  %4104 = vst.msk [vmem:[%s4994_s10 + $0x768] sm:$0xff] %vm3866_vm4, %v3810_v32  ;;  %v1660_v35 = vpop.f32.mrf.mxu0 }
 0x486   : > { %v1661_v37 = vadd.f32 %v6473_v55, %v1660_v35 }
 0x487   : > { %4700 = vmatmul.msk.f32.gmra.mxu3 %vm2308_vm3, %v2301_v33  ;;  %v3431_v38 = vpop.f32.mrf.mxu1 }
 0x488   : > { %v2174_v39 = vmax.f32 %v1661_v37, 0.0  ;;  %v3432_v40 = vadd.f32 %v6227_v36, %v3431_v38 }
 0x48a   : > { %v2044_v41 = vpop.f32.mrf.mxu2  ;;  %v3812_v42 = vpop.f32.mrf.mxu3  ;;  %3978 = vst.msk [vmem:[%s4994_s10 + $0x378] sm:$0xff] %vm3866_vm4, %v3432_v40  ;;  %4573 = vmatmul.msk.f32.gmra.mxu1 %vm2308_vm3, %v2174_v39 }
 0x48b   : > { %v2045_v43 = vadd.f32 %v6473_v55, %v2044_v41  ;;  %v3813_v44 = vadd.f32 %v6227_v36, %v3812_v42 }
 0x48d   : > { %v2302_v45 = vmax.f32 %v2045_v43, 0.0  ;;  %4105 = vst.msk [vmem:[%s4994_s10 + $0x770] sm:$0xff] %vm3866_vm4, %v3813_v44 }
 0x48f   : > { %4701 = vmatmul.msk.f32.gmra.mxu3 %vm2308_vm3, %v2302_v45  ;;  %v3434_v46 = vpop.f32.mrf.mxu1 }
 0x490   : > { %v3435_v47 = vadd.f32 %v6227_v36, %v3434_v46 }
 0x492   : > { %v3815_v48 = vpop.f32.mrf.mxu3  ;;  %3979 = vst.msk [vmem:[%s4994_s10 + $0x380] sm:$0xff] %vm3866_vm4, %v3435_v47 }
 0x493   : > { %v3816_v49 = vadd.f32 %v6227_v36, %v3815_v48 }
 0x495   : > { %4106 = vst.msk [vmem:[%s4994_s10 + $0x778] sm:$0xff] %vm3866_vm4, %v3816_v49 }
 0x497   : > { %v3437_v50 = vpop.f32.mrf.mxu1 }
 0x498   : > { %v3438_v51 = vadd.f32 %v6227_v36, %v3437_v50 }
 0x49a   : > { %v3818_v52 = vpop.f32.mrf.mxu3  ;;  %3980 = vst.msk [vmem:[%s4994_s10 + $0x388] sm:$0xff] %vm3866_vm4, %v3438_v51 }
 0x49b   : > { %v3819_v53 = vadd.f32 %v6227_v36, %v3818_v52 }
 0x49d   : > { %4107 = vst.msk [vmem:[%s4994_s10 + $0x780] sm:$0xff] %vm3866_vm4, %v3819_v53 }
 0x49f   : > { %v3440_v54 = vpop.f32.mrf.mxu1 }
 0x4a0   : > { %v3441_v55 = vadd.f32 %v6227_v36, %v3440_v54 }
 0x4a2   : > { %v3821_v34 = vpop.f32.mrf.mxu3  ;;  %3981 = vst.msk [vmem:[%s4994_s10 + $0x390] sm:$0xff] %vm3866_vm4, %v3441_v55 }
 0x4a3   : > { %v3822_v56 = vadd.f32 %v6227_v36, %v3821_v34 }
 0x4a5   : > { %4108 = vst.msk [vmem:[%s4994_s10 + $0x788] sm:$0xff] %vm3866_vm4, %v3822_v56 }
 0x4a7   : > { %v3443_v57 = vpop.f32.mrf.mxu1 }
 0x4a8   : > { %v3444_v58 = vadd.f32 %v6227_v36, %v3443_v57 }
 0x4aa   : > { %v3824_v59 = vpop.f32.mrf.mxu3  ;;  %3982 = vst.msk [vmem:[%s4994_s10 + $0x398] sm:$0xff] %vm3866_vm4, %v3444_v58 }
 0x4ab   : > { %v3825_v60 = vadd.f32 %v6227_v36, %v3824_v59 }
 0x4ad   : > { %4109 = vst.msk [vmem:[%s4994_s10 + $0x790] sm:$0xff] %vm3866_vm4, %v3825_v60 }
 0x4af   : > { %v3446_v61 = vpop.f32.mrf.mxu1 }
 0x4b0   : > { %v3447_v62 = vadd.f32 %v6227_v36, %v3446_v61 }
 0x4b2   : > { %v3827_v63 = vpop.f32.mrf.mxu3  ;;  %3983 = vst.msk [vmem:[%s4994_s10 + $0x3a0] sm:$0xff] %vm3866_vm4, %v3447_v62 }
 0x4b3   : > { %v3828_v0 = vadd.f32 %v6227_v36, %v3827_v63 }
 0x4b5   : > { %4110 = vst.msk [vmem:[%s4994_s10 + $0x798] sm:$0xff] %vm3866_vm4, %v3828_v0 }
 0x4b7   : > { %v3449_v1 = vpop.f32.mrf.mxu1 }
 0x4b8   : > { %v3450_v2 = vadd.f32 %v6227_v36, %v3449_v1 }
 0x4ba   : > { %v3830_v3 = vpop.f32.mrf.mxu3  ;;  %3984 = vst.msk [vmem:[%s4994_s10 + $0x3a8] sm:$0xff] %vm3866_vm4, %v3450_v2 }
 0x4bb   : > { %v3831_v4 = vadd.f32 %v6227_v36, %v3830_v3 }
 0x4bd   : > { %4111 = vst.msk [vmem:[%s4994_s10 + $0x7a0] sm:$0xff] %vm3866_vm4, %v3831_v4 }
 0x4bf   : > { %v3452_v5 = vpop.f32.mrf.mxu1 }
 0x4c0   : > { %v3453_v6 = vadd.f32 %v6227_v36, %v3452_v5 }
 0x4c2   : > { %v3833_v7 = vpop.f32.mrf.mxu3  ;;  %3985 = vst.msk [vmem:[%s4994_s10 + $0x3b0] sm:$0xff] %vm3866_vm4, %v3453_v6 }
 0x4c3   : > { %v3834_v8 = vadd.f32 %v6227_v36, %v3833_v7 }
 0x4c5   : > { %4112 = vst.msk [vmem:[%s4994_s10 + $0x7a8] sm:$0xff] %vm3866_vm4, %v3834_v8 }
 0x4c7   : > { %v3455_v9 = vpop.f32.mrf.mxu1 }
 0x4c8   : > { %v3456_v10 = vadd.f32 %v6227_v36, %v3455_v9 }
 0x4ca   : > { %v3836_v11 = vpop.f32.mrf.mxu3  ;;  %3986 = vst.msk [vmem:[%s4994_s10 + $0x3b8] sm:$0xff] %vm3866_vm4, %v3456_v10 }
 0x4cb   : > { %v3837_v12 = vadd.f32 %v6227_v36, %v3836_v11 }
 0x4cd   : > { %4113 = vst.msk [vmem:[%s4994_s10 + $0x7b0] sm:$0xff] %vm3866_vm4, %v3837_v12 }
 0x4cf   : > { %v3458_v13 = vpop.f32.mrf.mxu1 }
 0x4d0   : > { %v3459_v14 = vadd.f32 %v6227_v36, %v3458_v13 }
 0x4d2   : > { %v3839_v15 = vpop.f32.mrf.mxu3  ;;  %3987 = vst.msk [vmem:[%s4994_s10 + $0x3c0] sm:$0xff] %vm3866_vm4, %v3459_v14 }
 0x4d3   : > { %v3840_v16 = vadd.f32 %v6227_v36, %v3839_v15 }
 0x4d5   : > { %4114 = vst.msk [vmem:[%s4994_s10 + $0x7b8] sm:$0xff] %vm3866_vm4, %v3840_v16 }
 0x4d7   : > { %v3461_v17 = vpop.f32.mrf.mxu1 }
 0x4d8   : > { %v3462_v18 = vadd.f32 %v6227_v36, %v3461_v17 }
 0x4da   : > { %v3842_v19 = vpop.f32.mrf.mxu3  ;;  %3988 = vst.msk [vmem:[%s4994_s10 + $0x3c8] sm:$0xff] %vm3866_vm4, %v3462_v18 }
 0x4db   : > { %v3843_v20 = vadd.f32 %v6227_v36, %v3842_v19 }
 0x4dd   : > { %4115 = vst.msk [vmem:[%s4994_s10 + $0x7c0] sm:$0xff] %vm3866_vm4, %v3843_v20 }
 0x4df   : > { %v3464_v21 = vpop.f32.mrf.mxu1 }
 0x4e0   : > { %v3465_v22 = vadd.f32 %v6227_v36, %v3464_v21 }
 0x4e2   : > { %v3845_v23 = vpop.f32.mrf.mxu3  ;;  %3989 = vst.msk [vmem:[%s4994_s10 + $0x3d0] sm:$0xff] %vm3866_vm4, %v3465_v22 }
 0x4e3   : > { %v3846_v24 = vadd.f32 %v6227_v36, %v3845_v23 }
 0x4e5   : > { %4116 = vst.msk [vmem:[%s4994_s10 + $0x7c8] sm:$0xff] %vm3866_vm4, %v3846_v24 }
 0x4e7   : > { %v3467_v25 = vpop.f32.mrf.mxu1 }
 0x4e8   : > { %v3468_v26 = vadd.f32 %v6227_v36, %v3467_v25 }
 0x4ea   : > { %v3848_v27 = vpop.f32.mrf.mxu3  ;;  %3990 = vst.msk [vmem:[%s4994_s10 + $0x3d8] sm:$0xff] %vm3866_vm4, %v3468_v26 }
 0x4eb   : > { %v3849_v28 = vadd.f32 %v6227_v36, %v3848_v27 }
 0x4ed   : > { %4117 = vst.msk [vmem:[%s4994_s10 + $0x7d0] sm:$0xff] %vm3866_vm4, %v3849_v28 }
 0x4ef   : > { %v3470_v29 = vpop.f32.mrf.mxu1 }
 0x4f0   : > { %v3471_v30 = vadd.f32 %v6227_v36, %v3470_v29 }
 0x4f2   : > { %v3851_v31 = vpop.f32.mrf.mxu3  ;;  %3991 = vst.msk [vmem:[%s4994_s10 + $0x3e0] sm:$0xff] %vm3866_vm4, %v3471_v30 }
 0x4f3   : > { %v3852_v32 = vadd.f32 %v6227_v36, %v3851_v31 }
 0x4f5   : > { %4118 = vst.msk [vmem:[%s4994_s10 + $0x7d8] sm:$0xff] %vm3866_vm4, %v3852_v32 }
 0x4f7   : > { %v3473_v33 = vpop.f32.mrf.mxu1 }
 0x4f8   : > { %v3474_v35 = vadd.f32 %v6227_v36, %v3473_v33 }
 0x4fa   : > { %v3854_v37 = vpop.f32.mrf.mxu3  ;;  %3992 = vst.msk [vmem:[%s4994_s10 + $0x3e8] sm:$0xff] %vm3866_vm4, %v3474_v35 }
 0x4fb   : > { %v3855_v38 = vadd.f32 %v6227_v36, %v3854_v37 }
 0x4fd   : > { %4119 = vst.msk [vmem:[%s4994_s10 + $0x7e0] sm:$0xff] %vm3866_vm4, %v3855_v38 }
 0x4ff   : > { %v3476_v39 = vpop.f32.mrf.mxu1 }
 0x500   : > { %v3477_v40 = vadd.f32 %v6227_v36, %v3476_v39 }
 0x502   : > { %v3857_v41 = vpop.f32.mrf.mxu3  ;;  %3993 = vst.msk [vmem:[%s4994_s10 + $0x3f0] sm:$0xff] %vm3866_vm4, %v3477_v40 }
 0x503   : > { %v3858_v42 = vadd.f32 %v6227_v36, %v3857_v41 }
 0x505   : > { %4120 = vst.msk [vmem:[%s4994_s10 + $0x7e8] sm:$0xff] %vm3866_vm4, %v3858_v42 }
 0x507   : > { %v3479_v43 = vpop.f32.mrf.mxu1 }
 0x508   : > { %v3480_v44 = vadd.f32 %v6227_v36, %v3479_v43 }
 0x50a   : > { %v3860_v45 = vpop.f32.mrf.mxu3  ;;  %3994 = vst.msk [vmem:[%s4994_s10 + $0x3f8] sm:$0xff] %vm3866_vm4, %v3480_v44 }
 0x50b   : > { %v3861_v46 = vadd.f32 %v6227_v36, %v3860_v45 }
 0x50d   : > { %4121 = vst.msk [vmem:[%s4994_s10 + $0x7f0] sm:$0xff] %vm3866_vm4, %v3861_v46 }
 0x512   : > { %v3863_v47 = vpop.f32.mrf.mxu3 }
 0x513   : > { %v3864_v48 = vadd.f32 %v6227_v36, %v3863_v47 }
 0x515   : > { %4122 = vst.msk [vmem:[%s4994_s10 + $0x7f8] sm:$0xff] %vm3866_vm4, %v3864_v48 }
 0x516 PF: > { %s15_s18 = sadd.s32 1, %s4729_s18  }
 0x517   : > { %p12_p4 = scmp.ge.s32.totalorder %s15_s18, 4  }
 0x519   :  { %14 = sbr.rel (!%p12_p4) target bundleno = 1 (0x1), region = 70 }

</bundles_post_ra>
